<compile_context>
chip_gen: v5e
topology: v5e:2x2
jax: 0.10.0
libtpu: 0.0.40
codegen_flags: <defaults>
</compile_context>

<pallas_src>
import functools

import jax
import jax.numpy as jnp
from jax.experimental import pallas as pl
from jax.experimental.pallas import tpu as pltpu


# ----------------------------------------------------------------------------
# Small helpers
# ----------------------------------------------------------------------------
def _sublane_granule(dtype):
    """Minimum second-minor tile granule for this dtype (8 for f32, 16 for bf16)."""
    return max(8, 32 // jnp.dtype(dtype).itemsize)


def _pick_tile(dim, target, granules):
    """Largest divisor of `dim` that is <= target and a multiple of one of the
    (descending-preference) granules; falls back to the full dim."""
    if dim <= target:
        return dim
    for g in granules:
        t = (target // g) * g
        while t >= g:
            if dim % t == 0:
                return t
            t -= g
    return dim


def _vmem_cap(nbytes):
    """Footprint-derived VMEM limit: 2x headroom + 4 MiB, clamped to 64 MiB (v7x-safe)."""
    return int(min(max(2 * nbytes + (4 << 20), 16 << 20), 64 << 20))


def _to_compute_dtype(x):
    """MXU is natively bf16; f32 operands force multi-pass decomposition."""
    return x.astype(jnp.bfloat16) if x.dtype == jnp.float32 else x


# ----------------------------------------------------------------------------
# Tiled linear kernels: y = x @ W.T  (W kept as (d_out, d_in); contract last dims)
# ----------------------------------------------------------------------------
def _linear_kernel_fullk(x_ref, w_ref, o_ref):
    # Full contraction in one step: no accumulator, direct lane-dense store.
    # NOTE: NT contraction (((1,),(1,))) is assumed to use the MXU transposed
    # latch; if a bundle dump ever shows a per-step vxpose, pre-transpose W.
    o_ref[...] = jax.lax.dot_general(
        _to_compute_dtype(x_ref[...]), _to_compute_dtype(w_ref[...]),
        dimension_numbers=(((1,), (1,)), ((), ())),
        preferred_element_type=jnp.float32,
    ).astype(o_ref.dtype)


def _linear_kernel_ktiled(x_ref, w_ref, o_ref, acc_ref):
    @pl.when(pl.program_id(2) == 0)
    def _():
        acc_ref[...] = jnp.zeros(acc_ref.shape, dtype=jnp.float32)

    acc_ref[...] += jax.lax.dot_general(
        _to_compute_dtype(x_ref[...]), _to_compute_dtype(w_ref[...]),
        dimension_numbers=(((1,), (1,)), ((), ())),
        preferred_element_type=jnp.float32,
    )

    @pl.when(pl.program_id(2) == pl.num_programs(2) - 1)
    def _():
        o_ref[...] = acc_ref[...].astype(o_ref.dtype)


def pallas_linear(x, w, *, tm_target=512, tn_target=512, tk_full_limit=1024):
    """x: (M, d_in); w: (d_out, d_in) torch-Linear weight (bias=False)."""
    M, d_in = x.shape
    d_out, d_in2 = w.shape
    assert d_in == d_in2
    sub = _sublane_granule(x.dtype)

    tm = _pick_tile(M, tm_target, granules=(128, sub))
    tn = _pick_tile(d_out, tn_target, granules=(128, sub))
    # Full-K whenever the contraction fits: removes the reduction axis entirely.
    tk = d_in if d_in <= tk_full_limit else _pick_tile(d_in, 512, granules=(128, sub))
    nk = d_in // tk

    # Keep >= 2 parallel grid cells so both v7x TensorCores get work.
    while (M // tm) * (d_out // tn) < 2 and tm > sub and tm % 2 == 0 and (tm // 2) % sub == 0:
        tm //= 2

    itemsize = jnp.dtype(x.dtype).itemsize
    est = (2 * (tm * tk + tn * tk) * itemsize   # double-buffered input blocks
           + 2 * tm * tn * itemsize             # output block
           + (tm * tn * 4 if nk > 1 else 0))    # f32 accumulator
    cost = pl.CostEstimate(
        flops=2 * M * d_out * d_in, transcendentals=0,
        bytes_accessed=(M * d_in + d_out * d_in + M * d_out) * itemsize,
    )

    if nk == 1:
        return pl.pallas_call(
            _linear_kernel_fullk,
            grid=(M // tm, d_out // tn),
            out_shape=jax.ShapeDtypeStruct((M, d_out), x.dtype),
            in_specs=[pl.BlockSpec((tm, tk), lambda i, j: (i, 0)),
                      pl.BlockSpec((tn, tk), lambda i, j: (j, 0))],
            out_specs=pl.BlockSpec((tm, tn), lambda i, j: (i, j)),
            compiler_params=pltpu.CompilerParams(
                dimension_semantics=("parallel", "parallel"),
                vmem_limit_bytes=_vmem_cap(est)),
            cost_estimate=cost,
        )(x, w)

    return pl.pallas_call(
        _linear_kernel_ktiled,
        grid=(M // tm, d_out // tn, nk),
        out_shape=jax.ShapeDtypeStruct((M, d_out), x.dtype),
        in_specs=[pl.BlockSpec((tm, tk), lambda i, j, k: (i, k)),
                  pl.BlockSpec((tn, tk), lambda i, j, k: (j, k))],
        out_specs=pl.BlockSpec((tm, tn), lambda i, j, k: (i, j)),
        scratch_shapes=[pltpu.VMEM((tm, tn), jnp.float32)],
        compiler_params=pltpu.CompilerParams(
            dimension_semantics=("parallel", "parallel", "arbitrary"),
            vmem_limit_bytes=_vmem_cap(est)),
        cost_estimate=cost,
    )(x, w)


# ----------------------------------------------------------------------------
# Flash-style scaled-dot-product attention (online softmax over kv tiles).
# Heads are looped INSIDE the kernel on d_model-wide blocks, so all HBM I/O is
# lane-dense and K/V are streamed once per (b, q-tile), not once per head.
# ----------------------------------------------------------------------------
def _flash_mha_kernel(q_ref, k_ref, v_ref, o_ref, m_ref, l_ref, acc_ref, *,
                      num_heads, d_k, scale):
    kv_idx = pl.program_id(2)

    @pl.when(kv_idx == 0)
    def _():
        m_ref[...] = jnp.full(m_ref.shape, -jnp.inf, dtype=jnp.float32)
        l_ref[...] = jnp.zeros(l_ref.shape, dtype=jnp.float32)
        acc_ref[...] = jnp.zeros(acc_ref.shape, dtype=jnp.float32)

    compute_dtype = jnp.bfloat16 if q_ref.dtype == jnp.float32 else q_ref.dtype

    for h in range(num_heads):                     # static unroll over heads
        sl = slice(h * d_k, (h + 1) * d_k)
        # Fold 1/sqrt(d_k) into q (tq*d_k mults instead of a tq*tkv score scale).
        qh = (q_ref[0, :, sl] * scale).astype(compute_dtype)   # (tq, d_k)
        kh = k_ref[0, :, sl].astype(compute_dtype)             # (tkv, d_k)
        vh = v_ref[0, :, sl].astype(compute_dtype)             # (tkv, d_k)

        # scores = (Q/sqrt(d_k)) @ K^T : contract last dims directly (no K.T copy).
        s = jax.lax.dot_general(
            qh, kh, dimension_numbers=(((1,), (1,)), ((), ())),
            preferred_element_type=jnp.float32)                # (tq, tkv) f32

        m_prev = m_ref[h]                                      # (tq, 1)
        m_new = jnp.maximum(m_prev, jnp.max(s, axis=-1, keepdims=True))
        alpha = jnp.exp(m_prev - m_new)
        p = jnp.exp(s - m_new)                                 # (tq, tkv) f32

        l_ref[h] = alpha * l_ref[h] + jnp.sum(p, axis=-1, keepdims=True)
        acc_ref[h] = alpha * acc_ref[h] + jax.lax.dot_general(
            p.astype(compute_dtype), vh,
            dimension_numbers=(((1,), (0,)), ((), ())),
            preferred_element_type=jnp.float32)
        m_ref[h] = m_new

    # TODO(synk): masked_fill(mask==0, -inf) not implemented (mask=None path only).
    # TODO(synk): attention dropout not implemented (eval-mode identity).

    @pl.when(kv_idx == pl.num_programs(2) - 1)
    def _():
        for h in range(num_heads):
            inv_l = pl.reciprocal(l_ref[h], approx=True)
            o_ref[0, :, h * d_k:(h + 1) * d_k] = (acc_ref[h] * inv_l).astype(o_ref.dtype)


def pallas_flash_mha(q, k, v, *, num_heads, d_model, q_col=0, k_col=0, v_col=0,
                     tq_target=512, tkv_target=512):
    """q/k/v: (B, T, W) with W a multiple of d_model.  The logical Q/K/V slab is
    the d_model-wide column block `*_col` of the corresponding array (this lets a
    fused QKV projection output be consumed without any XLA split/transpose).
    Returns the multi-head SDPA output as (B, T, d_model)."""
    B, T, _ = q.shape
    H = num_heads
    assert d_model % H == 0
    d_k = d_model // H
    scale = 1.0 / (d_k ** 0.5)

    sub = _sublane_granule(q.dtype)
    tq = _pick_tile(T, tq_target, granules=(128, sub))
    tkv = _pick_tile(T, tkv_target, granules=(128, sub))

    # Keep >= 2 cells on the parallel axes so both v7x TensorCores get work.
    while B * (T // tq) < 2 and tq > sub and tq % 2 == 0 and (tq // 2) % sub == 0:
        tq //= 2

    nq, nkv = T // tq, T // tkv
    itemsize = jnp.dtype(q.dtype).itemsize
    dk_pad = ((d_k + 127) // 128) * 128
    est = (2 * (tq + 2 * tkv) * d_model * itemsize    # double-buffered input blocks
           + 2 * tq * d_model * itemsize              # output block
           + H * tq * dk_pad * 4                      # f32 accumulator
           + 2 * H * tq * 128 * 4)                    # m/l stats (lane-padded)
    cost = pl.CostEstimate(
        flops=4 * B * T * T * d_model,
        transcendentals=B * H * T * T,
        bytes_accessed=4 * B * T * d_model * itemsize,
    )

    kernel = functools.partial(_flash_mha_kernel, num_heads=H, d_k=d_k, scale=scale)
    return pl.pallas_call(
        kernel,
        grid=(B, nq, nkv),
        out_shape=jax.ShapeDtypeStruct((B, T, d_model), q.dtype),
        in_specs=[
            pl.BlockSpec((1, tq, d_model), lambda b, qi, ki: (b, qi, q_col)),
            pl.BlockSpec((1, tkv, d_model), lambda b, qi, ki: (b, ki, k_col)),
            pl.BlockSpec((1, tkv, d_model), lambda b, qi, ki: (b, ki, v_col)),
        ],
        out_specs=pl.BlockSpec((1, tq, d_model), lambda b, qi, ki: (b, qi, 0)),
        scratch_shapes=[
            pltpu.VMEM((H, tq, 1), jnp.float32),     # running max per head
            pltpu.VMEM((H, tq, 1), jnp.float32),     # running sum per head
            pltpu.VMEM((H, tq, d_k), jnp.float32),   # per-head output accumulator
        ],
        compiler_params=pltpu.CompilerParams(
            dimension_semantics=("parallel", "parallel", "arbitrary"),
            vmem_limit_bytes=_vmem_cap(est)),
        cost_estimate=cost,
    )(q, k, v)


# ----------------------------------------------------------------------------
# Full module forward (mask=None, eval-mode dropout)
# ----------------------------------------------------------------------------
def multi_head_attention(params, Q, K, V, *, num_heads, qkv_proj=False,
                         tq_target=512, tkv_target=512):
    B, T, d_model = Q.shape
    mha = functools.partial(pallas_flash_mha, num_heads=num_heads, d_model=d_model,
                            tq_target=tq_target, tkv_target=tkv_target)

    if qkv_proj:
        if (Q is K) and (K is V) and d_model % 128 == 0:
            # Self-attention: fused QKV projection (activation read once, 3x-wide
            # lane-dense stores); attention reads the q/k/v slabs straight out of
            # the fused result via BlockSpec column indices.
            w_qkv = jnp.concatenate(
                [params["q_proj"], params["k_proj"], params["v_proj"]], axis=0)
            qkv = pallas_linear(Q.reshape(B * T, d_model), w_qkv).reshape(B, T, 3 * d_model)
            attn = mha(qkv, qkv, qkv, q_col=0, k_col=1, v_col=2)
        else:
            Qp = pallas_linear(Q.reshape(B * T, d_model), params["q_proj"]).reshape(B, T, d_model)
            Kp = pallas_linear(K.reshape(B * T, d_model), params["k_proj"]).reshape(B, T, d_model)
            Vp = pallas_linear(V.reshape(B * T, d_model), params["v_proj"]).reshape(B, T, d_model)
            attn = mha(Qp, Kp, Vp)
    else:
        attn = mha(Q, K, V)

    out = pallas_linear(attn.reshape(B * T, d_model), params["output_fc"])
    return out.reshape(B, T, d_model)


# ----------------------------------------------------------------------------
# Pure-JAX f32 reference (for correctness check)
# ----------------------------------------------------------------------------
def reference_mha(params, Q, K, V, *, num_heads, qkv_proj=False):
    B, T, d_model = Q.shape
    d_k = d_model // num_heads
    if qkv_proj:
        Q = Q @ params["q_proj"].T
        K = K @ params["k_proj"].T
        V = V @ params["v_proj"].T
    qh = Q.reshape(B, T, num_heads, d_k).transpose(0, 2, 1, 3)
    kh = K.reshape(B, T, num_heads, d_k).transpose(0, 2, 1, 3)
    vh = V.reshape(B, T, num_heads, d_k).transpose(0, 2, 1, 3)
    scores = jnp.einsum("bhqd,bhkd->bhqk", qh, kh) / (d_k ** 0.5)
    attn = jax.nn.softmax(scores, axis=-1)
    out = jnp.einsum("bhqk,bhkd->bhqd", attn, vh)
    out = out.transpose(0, 2, 1, 3).reshape(B, T, d_model)
    return out @ params["output_fc"].T


# ----------------------------------------------------------------------------
# Main
# ----------------------------------------------------------------------------
def _make_params(key, d_model, qkv_proj):
    ks = jax.random.split(key, 4)
    bound = 1.0 / (d_model ** 0.5)
    params = {"output_fc": jax.random.uniform(ks[3], (d_model, d_model), jnp.float32, -bound, bound)}
    if qkv_proj:
        params["q_proj"] = jax.random.uniform(ks[0], (d_model, d_model), jnp.float32, -bound, bound)
        params["k_proj"] = jax.random.uniform(ks[1], (d_model, d_model), jnp.float32, -bound, bound)
        params["v_proj"] = jax.random.uniform(ks[2], (d_model, d_model), jnp.float32, -bound, bound)
    return params


def _run_case(key, *, B, T, d_model, num_heads, qkv_proj, self_attn=False,
              tq_target=512, tkv_target=512):
    kq, kk, kv, kp = jax.random.split(key, 4)
    Q = jax.random.normal(kq, (B, T, d_model), dtype=jnp.float32)
    if self_attn:
        K = V = Q
    else:
        K = jax.random.normal(kk, (B, T, d_model), dtype=jnp.float32)
        V = jax.random.normal(kv, (B, T, d_model), dtype=jnp.float32)
    params = _make_params(kp, d_model, qkv_proj)

    out = multi_head_attention(params, Q, K, V, num_heads=num_heads, qkv_proj=qkv_proj,
                               tq_target=tq_target, tkv_target=tkv_target)
    out = jax.block_until_ready(out)
    ref = reference_mha(params, Q, K, V, num_heads=num_heads, qkv_proj=qkv_proj)

    assert out.shape == (B, T, d_model)
    max_err = float(jnp.max(jnp.abs(out - ref)))
    # bf16 MXU operands with f32 accumulation -> relaxed tolerance vs f32 reference.
    assert jnp.allclose(out, ref, atol=2.5e-2, rtol=2.5e-2), \
        f"mismatch vs reference (max_err={max_err})"


if __name__ == "__main__":
    key = jax.random.PRNGKey(0)
    k1, k2, k3 = jax.random.split(key, 3)
    # d_k = 128, separate Q/K/V projections, multi-step online softmax (tkv=128 -> 2 kv steps).
    _run_case(k1, B=2, T=256, d_model=512, num_heads=4, qkv_proj=True, tkv_target=128)
    # d_k = 64, self-attention -> fused QKV projection; heads sliced inside the kernel.
    _run_case(k2, B=2, T=256, d_model=512, num_heads=8, qkv_proj=True, self_attn=True,
              tkv_target=128)
    # Module default: qkv_proj=False (no projections), d_k = 64.
    _run_case(k3, B=2, T=128, d_model=256, num_heads=4, qkv_proj=False)
    print("KERNEL_OK")
</pallas_src>

<mosaic_0001>
module attributes {stable_mosaic.version = 11 : i64} {
  func.func @_linear_kernel_fullk(%arg0: i32, %arg1: i32, %arg2: memref<256x512xf32, #tpu.memory_space<vmem>>, %arg3: memref<512x512xf32, #tpu.memory_space<vmem>>, %arg4: memref<256x512xf32, #tpu.memory_space<vmem>>) attributes {dimension_semantics = [#tpu.dimension_semantics<parallel>, #tpu.dimension_semantics<parallel>], iteration_bounds = array<i64: 2, 1>, scalar_prefetch = 0 : i64, scratch_operands = 0 : i64, tpu.core_type = #tpu.core_type<tc>, window_params = [{transform_indices = @transform_0, window_bounds = array<i64: 256, 512>}, {transform_indices = @transform_1, window_bounds = array<i64: 512, 512>}, {transform_indices = @transform_2, window_bounds = array<i64: 256, 512>}]} {
    %c0 = arith.constant 0 : index
    %c0_0 = arith.constant 0 : index
    %0 = vector.load %arg2[%c0, %c0_0] : memref<256x512xf32, #tpu.memory_space<vmem>>, vector<256x512xf32>
    %1 = arith.truncf %0 : vector<256x512xf32> to vector<256x512xbf16>
    %c0_1 = arith.constant 0 : index
    %c0_2 = arith.constant 0 : index
    %2 = vector.load %arg3[%c0_1, %c0_2] : memref<512x512xf32, #tpu.memory_space<vmem>>, vector<512x512xf32>
    %3 = arith.truncf %2 : vector<512x512xf32> to vector<512x512xbf16>
    %cst = arith.constant dense<0.000000e+00> : vector<256x512xf32>
    %4 = tpu.matmul %1, %3, %cst {dimension_numbers = #tpu.dot_dimension_numbers<[1], [1], [0], [0], [0, 0, 1, 0], [], []>} : vector<256x512xbf16>, vector<512x512xbf16>, vector<256x512xf32> -> vector<256x512xf32>
    %c0_3 = arith.constant 0 : index
    %c0_4 = arith.constant 0 : index
    %5 = vector.load %arg4[%c0_3, %c0_4] : memref<256x512xf32, #tpu.memory_space<vmem>>, vector<256x512xf32>
    tpu.vector_store %arg4[%c0_3, %c0_4], %4 {strides = array<i32>} : memref<256x512xf32, #tpu.memory_space<vmem>>, vector<256x512xf32>,
    return
  }
  func.func @transform_0(%arg0: i32, %arg1: i32) -> (i32, i32) {
    %c0_i32 = arith.constant 0 : i32
    %c0_i32_0 = arith.constant 0 : i32
    return %arg0, %c0_i32 : i32, i32
  }
  func.func @transform_1(%arg0: i32, %arg1: i32) -> (i32, i32) {
    %c0_i32 = arith.constant 0 : i32
    %c0_i32_0 = arith.constant 0 : i32
    return %arg1, %c0_i32 : i32, i32
  }
  func.func @transform_2(%arg0: i32, %arg1: i32) -> (i32, i32) {
    %c0_i32 = arith.constant 0 : i32
    return %arg0, %arg1 : i32, i32
  }
}

</mosaic_0001>

<bundles_post_ra>
// kernel: tpu_custom_call.1
= control target key start
LH: loop header
LB: loop body
LE: loop exit
PB: predicated region body
PF: predicated region fallthrough
CT: control target
= control target key end

     0   :  { %7 = vsyncpa [#allocation3], 0  ;;  %s3524_s0 = inlined_call_operand.hbm [shape: f32[512,512], index: 0, kind: input, shape index: {}]   ;;  %s3525_s1 = inlined_call_operand.hbm [shape: f32[512,512], index: 1, kind: input, shape index: {}]   ;;  %s3526_s2 = inlined_call_operand.hbm [shape: f32[512,512], index: 2, kind: output, shape index: {}]  }
   0x1   :  { %9 = vsyncpa [#allocation3 + $0x1], 0 }
   0x2   :  { %10 = vsyncpa [#allocation6], 0 }
   0x3   :  { %11 = vsyncpa [#allocation4], 0 }
   0x4   :  { %13 = vsyncpa [#allocation4 + $0x1], 0  ;;  %s2720_s9 = smov 0   ;;  %s2722_s10 = smov 0  }
   0x5   :  { %s2724_s11 = smov 0   ;;  %s2726_s12 = smov 0  }
   0x6   :  { %s2728_s13 = smov 0   ;;  %s2730_s14 = smov 0  }
   0x7 LB: > { %s2452_s15 = sadd.s32 4294967295, %s2698_s14   ;;  %s2453_s16 = sadd.s32 4294967294, %s2698_s14   ;;  %s2698_s14 = sphi %s2730_s14, %s19_s14   ;;  %s2694_s13 = sphi %s2728_s13, %s3653_s13   ;;  %s2690_s12 = sphi %s2726_s12, %s3652_s12   ;;  %s2686_s11 = sphi %s2724_s11, %s3651_s11   ;;  %s2682_s10 = sphi %s2722_s10, %s3650_s10   ;;  %s2678_s9 = sphi %s2720_s9, %s3649_s9  }
   0x8   : > { %p51_p0 = scmp.ne.s32.totalorder %s2682_s10, %s2678_s9  ;;  %p2754_p1 = scmp.eq.s32.totalorder %s2452_s15, 0 }
   0x9   : > { %p2758_p2 = scmp.eq.s32.totalorder %s2452_s15, 1  ;;  %p109_p3 = scmp.eq.s32.totalorder %s2453_s16, 1 }
   0xa   : > { %p2764_p4 = por %p2754_p1, %p51_p0  ;;  %p2454_p5 = scmp.ge.s32.totalorder %s2698_s14, 1 }
   0xb   : > { %p2769_p6 = por %p109_p3, %p51_p0  ;;  %p116_p7 = scmp.lt.s32.totalorder %s2698_s14, 3 }
   0xc   : > { %s131_s23 = sshll.u32 %s3525_s1, 4  ;;  %s2700_s25 = smov [#allocation5]   ;;  %s132_s23 = int_to_ptr.hbm [resolvable:$true] %s131_s23 }
   0xd   : > { %p2777_p8 = pnand %p2454_p5, %p116_p7  ;;  %s133_s26 = sshll.u32 %s2700_s25, 4  ;;  %s134_s26 = int_to_ptr.vmem [resolvable:$true] %s133_s26 }
   0xe   : > { %p2456_p11 = scmp.ge.s32.totalorder %s2698_s14, 2  ;;  %s2701_s27 = smov 512  }
   0xf   : > { %p2483_p9 = pneg %p2777_p8  ;;  %s2702_s28 = smov 32  }
  0x10   : > { %s31_s29 = sadd.s32 1, %s2694_s13  ;;  %s38_s30 = sadd.s32 1, %s2686_s11 }
  0x11   : > { %p2484_p10 = pnand %p2483_p9, %p2754_p1  ;;  %p33_p12 = scmp.ge.s32.totalorder %s31_s29, 2 }
  0x12   : > { %p45_p13 = scmp.ne.s32.totalorder %s2686_s11, %s2682_s10  ;;  %p46_p0 = scmp.eq.s32.totalorder %s2698_s14, 0 }
  0x13   : > { %2486 = dma.hbm_to_vmem [thread:$0]  (!%p2484_p10), %s132_s23, 32768, %s134_s26, [#allocation6], %s2701_s27, %s2701_s27, %s2702_s28  }
  0x14   : > { %s3655_s29 = smov (%p33_p12, %s31_s29), 0  ;;  %p2796_p3 = por %p46_p0, %p45_p13 }
  0x15   : > { %p2802_p5 = por %p2758_p2, %p45_p13  ;;  %s35_s5 = ssub.s32 %s2694_s13, %s3655_s29 }
  0x16   : > { %p2496_p7 = scmp.lt.s32.totalorder %s2698_s14, 2  ;;  %p36_p9 = scmp.eq.s32.totalorder %s35_s5, 0 }
  0x17   : > { %s147_s6 = sand.u32 1, %s2686_s11   ;;  %s2472_s15 = sshll.u32 %s2694_s13, 10 }
  0x18   : > { %s2457_s7 = sshll.u32 %s147_s6, 10  ;;  %s157_s22 = scalar_lea.hbm %s3524_s0, %s2472_s15 }
  0x19   : > { %s2811_s8 = scalar_select %p36_p9, %s2686_s11, %s38_s30  }
  0x1a   : > { %s151_s23 = scalar_lea.vmem [#allocation2], %s2457_s7  ;;  %s158_s18 = sshll.u32 %s157_s22, 4  ;;  %s159_s18 = int_to_ptr.hbm [resolvable:$true] %s158_s18 }
  0x1b   : > { %s160_s25 = sshll.u32 %s151_s23, 4  ;;  %p2488_p2 = pnand %p2496_p7, %p2796_p3  ;;  %s161_s25 = int_to_ptr.vmem [resolvable:$true] %s160_s25 }
  0x1c   : > { %s148_s26 = scalar_lea.sflag [#allocation3], %s147_s6  ;;  %172 = sbr.rel (%p2777_p8) target bundleno = 1265 (0x4f1), region = 28 }
  0x1d   : > { %2490 = dma.hbm_to_vmem [thread:$0]  (!%p2488_p2), %s159_s18, 16384, %s161_s25, %s148_s26, %s2701_s27, %s2701_s27, %s2702_s28  }
  0x21   : > { %s2825_s30 = sand.u32 1, %s2682_s10  }
  0x22   : > { %s2462_s5 = sshll.u32 %s2825_s30, 10  ;;  %s175_s7 = scalar_lea.sflag [#allocation3], %s2825_s30 }
  0x23   : > { %s2831_s3 = scalar_lea.vmem [#allocation2], %s2462_s5 }
  0x24   : > { %2665 = dma.done.wait (%p2764_p4), %s175_s7, 16384  }
  0x25   : > { %2667 = vsyncadd (%p2764_p4), %s175_s7, 4294950912 }
  0x26   : > { %2669 = dma.done.wait (%p2754_p1), [#allocation6], 32768  }
  0x27   : > { %2671 = vsyncadd (%p2754_p1), [#allocation6], 4294934528  ;;  %v457_v0 = vld [vmem:[#allocation5 + $0x1c0] sm:$0xff]  ;;  %v458_v2 = vld [vmem:[#allocation5 + $0x1c8] sm:$0xff]  ;;  %s3027_s17 = scalar_lea.vmem [#allocation7], %s2462_s5  ;;  %s2474_s19 = sshll.u32 %s2690_s12, 10 }
  0x28   : > { %v461_v1 = vld [vmem:[#allocation5 + $0x1e0] sm:$0xff]  ;;  %v462_v4 = vld [vmem:[#allocation5 + $0x1e8] sm:$0xff]  ;;  %v459_v5 = vld [vmem:[#allocation5 + $0x1d0] sm:$0xff]  ;;  %s2352_s28 = scalar_lea.hbm %s3526_s2, %s2474_s19  ;;  %s2353_s6 = sshll.u32 %s3027_s17, 4  ;;  %s2354_s6 = int_to_ptr.vmem [resolvable:$true] %s2353_s6 }
  0x29   : > { %v685_v3 = vpack.c.bf16 %v461_v1, %v457_v0  ;;  %v463_v6 = vld [vmem:[#allocation5 + $0x1f0] sm:$0xff]  ;;  %v686_v7 = vpack.c.bf16 %v462_v4, %v458_v2  ;;  %v460_v9 = vld [vmem:[#allocation5 + $0x1d8] sm:$0xff]  ;;  %v449_v12 = vld [vmem:[#allocation5 + $0x180] sm:$0xff]  ;;  %s2355_s15 = sshll.u32 %s2352_s28, 4  ;;  %s2338_s12 = scalar_lea.sflag [#allocation4], %s2825_s30  ;;  %s2356_s15 = int_to_ptr.hbm [resolvable:$true] %s2355_s15 }
  0x2a   : > { %v687_v8 = vpack.c.bf16 %v463_v6, %v459_v5  ;;  %v464_v10 = vld [vmem:[#allocation5 + $0x1f8] sm:$0xff]  ;;  %v453_v13 = vld [vmem:[#allocation5 + $0x1a0] sm:$0xff]  ;;  %v450_v14 = vld [vmem:[#allocation5 + $0x188] sm:$0xff]  ;;  %s2626_s16 = sshra.s32 %s2356_s15, 4  ;;  %s2632_s25 = scalar_lea.hbm %s3526_s2, 2048  ;;  %s2627_s16 = int_to_ptr.hbm [resolvable:$true] %s2626_s16 }
  0x2b   : > { %785 = vmatpush.bf16.xpose.msra.mxu0 %v685_v3  ;;  %v688_v11 = vpack.c.bf16 %v464_v10, %v460_v9  ;;  %874 = vmatpush.bf16.xpose.msra.mxu1 %v686_v7  ;;  %v454_v15 = vld [vmem:[#allocation5 + $0x1a8] sm:$0xff]  ;;  %v451_v16 = vld [vmem:[#allocation5 + $0x190] sm:$0xff]  ;;  %v452_v18 = vld [vmem:[#allocation5 + $0x198] sm:$0xff]  ;;  %v681_v20 = vpack.c.bf16 %v453_v13, %v449_v12  ;;  %s2628_s21 = scalar_lea.hbm %s2627_s16, 1024  ;;  %p2633_p10 = scmp.lt.s32.totalorder %s2627_s16, %s3526_s2 }
  0x2c   : > { %963 = vmatpush.bf16.xpose.msra.mxu2 %v687_v8  ;;  %v455_v17 = vld [vmem:[#allocation5 + $0x1b0] sm:$0xff]  ;;  %v456_v19 = vld [vmem:[#allocation5 + $0x1b8] sm:$0xff]  ;;  %v682_v21 = vpack.c.bf16 %v454_v15, %v450_v14  ;;  %v441_v24 = vld [vmem:[#allocation5 + $0x140] sm:$0xff]  ;;  %p2629_p1 = scmp.ne.s32.totalorder %s2627_s16, %s2628_s21  ;;  %p2634_p12 = scmp.lt.s32.totalorder %s2632_s25, %s2628_s21 }
  0x2d   : > { %1052 = vmatpush.bf16.xpose.msra.mxu3 %v688_v11  ;;  %v683_v22 = vpack.c.bf16 %v455_v17, %v451_v16  ;;  %v684_v23 = vpack.c.bf16 %v456_v19, %v452_v18  ;;  %v445_v25 = vld [vmem:[#allocation5 + $0x160] sm:$0xff]  ;;  %v442_v26 = vld [vmem:[#allocation5 + $0x148] sm:$0xff]  ;;  %v443_v28 = vld [vmem:[#allocation5 + $0x150] sm:$0xff] }
  0x2e   : > { %v446_v27 = vld [vmem:[#allocation5 + $0x168] sm:$0xff]  ;;  %v447_v29 = vld [vmem:[#allocation5 + $0x170] sm:$0xff]  ;;  %v444_v30 = vld [vmem:[#allocation5 + $0x158] sm:$0xff]  ;;  %v677_v32 = vpack.c.bf16 %v445_v25, %v441_v24  ;;  %p2630_p4 = pnand %p2629_p1, %p2802_p5  ;;  %p2635_p13 = por %p2634_p12, %p2633_p10 }
  0x2f   : > { %v448_v31 = vld [vmem:[#allocation5 + $0x178] sm:$0xff]  ;;  %v678_v33 = vpack.c.bf16 %v446_v27, %v442_v26  ;;  %v679_v34 = vpack.c.bf16 %v447_v29, %v443_v28  ;;  %v433_v36 = vld [vmem:[#allocation5 + $0x100] sm:$0xff]  ;;  %v434_v38 = vld [vmem:[#allocation5 + $0x108] sm:$0xff] }
  0x30   : > { %v680_v35 = vpack.c.bf16 %v448_v31, %v444_v30  ;;  %v437_v37 = vld [vmem:[#allocation5 + $0x120] sm:$0xff]  ;;  %v438_v39 = vld [vmem:[#allocation5 + $0x128] sm:$0xff]  ;;  %v435_v40 = vld [vmem:[#allocation5 + $0x110] sm:$0xff]  ;;  %p2631_p8 = pneg %p2630_p4 }
  0x31   : > { %v439_v41 = vld [vmem:[#allocation5 + $0x130] sm:$0xff]  ;;  %v436_v42 = vld [vmem:[#allocation5 + $0x118] sm:$0xff]  ;;  %v673_v44 = vpack.c.bf16 %v437_v37, %v433_v36  ;;  %v674_v45 = vpack.c.bf16 %v438_v39, %v434_v38  ;;  %v425_v48 = vld [vmem:[#allocation5 + $0xc0] sm:$0xff] }
  0x32   : > { %v440_v43 = vld [vmem:[#allocation5 + $0x138] sm:$0xff]  ;;  %v675_v46 = vpack.c.bf16 %v439_v41, %v435_v40  ;;  %v429_v49 = vld [vmem:[#allocation5 + $0xe0] sm:$0xff]  ;;  %v426_v50 = vld [vmem:[#allocation5 + $0xc8] sm:$0xff]  ;;  %p2636_p0 = pnand %p2635_p13, %p2631_p8 }
  0x33   : > { %786 = vmatpush.bf16.xpose.msra.mxu0 %v681_v20  ;;  %875 = vmatpush.bf16.xpose.msra.mxu1 %v682_v21  ;;  %v676_v47 = vpack.c.bf16 %v440_v43, %v436_v42  ;;  %v430_v51 = vld [vmem:[#allocation5 + $0xe8] sm:$0xff]  ;;  %v427_v52 = vld [vmem:[#allocation5 + $0xd0] sm:$0xff]  ;;  %v428_v54 = vld [vmem:[#allocation5 + $0xd8] sm:$0xff]  ;;  %v669_v56 = vpack.c.bf16 %v429_v49, %v425_v48 }
  0x34   : > { %964 = vmatpush.bf16.xpose.msra.mxu2 %v683_v22  ;;  %v431_v53 = vld [vmem:[#allocation5 + $0xf0] sm:$0xff]  ;;  %v432_v55 = vld [vmem:[#allocation5 + $0xf8] sm:$0xff]  ;;  %v670_v57 = vpack.c.bf16 %v430_v51, %v426_v50  ;;  %v417_v60 = vld [vmem:[#allocation5 + $0x80] sm:$0xff] }
  0x35   : > { %1053 = vmatpush.bf16.xpose.msra.mxu3 %v684_v23  ;;  %v671_v58 = vpack.c.bf16 %v431_v53, %v427_v52  ;;  %v672_v59 = vpack.c.bf16 %v432_v55, %v428_v54  ;;  %v421_v61 = vld [vmem:[#allocation5 + $0xa0] sm:$0xff]  ;;  %v418_v62 = vld [vmem:[#allocation5 + $0x88] sm:$0xff]  ;;  %v419_v0 = vld [vmem:[#allocation5 + $0x90] sm:$0xff] }
  0x36   : > { %v422_v63 = vld [vmem:[#allocation5 + $0xa8] sm:$0xff]  ;;  %v423_v1 = vld [vmem:[#allocation5 + $0xb0] sm:$0xff]  ;;  %v420_v2 = vld [vmem:[#allocation5 + $0x98] sm:$0xff]  ;;  %v665_v4 = vpack.c.bf16 %v421_v61, %v417_v60 }
  0x37   : > { %v424_v3 = vld [vmem:[#allocation5 + $0xb8] sm:$0xff]  ;;  %v666_v5 = vpack.c.bf16 %v422_v63, %v418_v62  ;;  %v667_v6 = vpack.c.bf16 %v423_v1, %v419_v0  ;;  %v409_v8 = vld [vmem:[#allocation5 + $0x40] sm:$0xff]  ;;  %v410_v10 = vld [vmem:[#allocation5 + $0x48] sm:$0xff] }
  0x38   : > { %v668_v7 = vpack.c.bf16 %v424_v3, %v420_v2  ;;  %v413_v9 = vld [vmem:[#allocation5 + $0x60] sm:$0xff]  ;;  %v414_v11 = vld [vmem:[#allocation5 + $0x68] sm:$0xff]  ;;  %v411_v12 = vld [vmem:[#allocation5 + $0x50] sm:$0xff] }
  0x39   : > { %v415_v13 = vld [vmem:[#allocation5 + $0x70] sm:$0xff]  ;;  %v412_v14 = vld [vmem:[#allocation5 + $0x58] sm:$0xff]  ;;  %v661_v16 = vpack.c.bf16 %v413_v9, %v409_v8  ;;  %v662_v17 = vpack.c.bf16 %v414_v11, %v410_v10  ;;  %v401_v20 = vld [vmem:[#allocation5] sm:$0xff] }
  0x3a   : > { %v416_v15 = vld [vmem:[#allocation5 + $0x78] sm:$0xff]  ;;  %v663_v18 = vpack.c.bf16 %v415_v13, %v411_v12  ;;  %v405_v21 = vld [vmem:[#allocation5 + $0x20] sm:$0xff]  ;;  %v402_v22 = vld [vmem:[#allocation5 + $0x8] sm:$0xff] }
  0x3b   : > { %787 = vmatpush.bf16.xpose.msra.mxu0 %v677_v32  ;;  %876 = vmatpush.bf16.xpose.msra.mxu1 %v678_v33  ;;  %v664_v19 = vpack.c.bf16 %v416_v15, %v412_v14  ;;  %v406_v23 = vld [vmem:[#allocation5 + $0x28] sm:$0xff]  ;;  %v403_v24 = vld [vmem:[#allocation5 + $0x10] sm:$0xff]  ;;  %v404_v26 = vld [vmem:[#allocation5 + $0x18] sm:$0xff]  ;;  %v657_v31 = vpack.c.bf16 %v405_v21, %v401_v20 }
  0x3c   : > { %965 = vmatpush.bf16.xpose.msra.mxu2 %v679_v34  ;;  %v407_v25 = vld [vmem:[#allocation5 + $0x30] sm:$0xff]  ;;  %v408_v27 = vld [vmem:[#allocation5 + $0x38] sm:$0xff]  ;;  %v521_v33 = vld [vmem:[#allocation5 + $0x3c0] sm:$0xff] }
  0x3d   : > { %1054 = vmatpush.bf16.xpose.msra.mxu3 %v680_v35  ;;  %v523_v28 = vld [vmem:[#allocation5 + $0x3d0] sm:$0xff]  ;;  %v524_v30 = vld [vmem:[#allocation5 + $0x3d8] sm:$0xff]  ;;  %v525_v34 = vld [vmem:[#allocation5 + $0x3e0] sm:$0xff]  ;;  %v658_v35 = vpack.c.bf16 %v406_v23, %v402_v22  ;;  %v659_v36 = vpack.c.bf16 %v407_v25, %v403_v24  ;;  %v660_v39 = vpack.c.bf16 %v408_v27, %v404_v26 }
  0x3e   : > { %v527_v29 = vld [vmem:[#allocation5 + $0x3f0] sm:$0xff]  ;;  %v528_v32 = vld [vmem:[#allocation5 + $0x3f8] sm:$0xff]  ;;  %v522_v37 = vld [vmem:[#allocation5 + $0x3c8] sm:$0xff]  ;;  %v717_v42 = vpack.c.bf16 %v525_v34, %v521_v33 }
  0x3f   : > { %v526_v38 = vld [vmem:[#allocation5 + $0x3e8] sm:$0xff]  ;;  %v719_v40 = vpack.c.bf16 %v527_v29, %v523_v28  ;;  %v720_v41 = vpack.c.bf16 %v528_v32, %v524_v30  ;;  %v209_v43 = vld [vmem:[%s2831_s3] sm:$0xff]  ;;  %v211_v48 = vld [vmem:[%s2831_s3 + $0x10] sm:$0xff] }
  0x40   : > { %v215_v49 = vld [vmem:[%s2831_s3 + $0x30] sm:$0xff]  ;;  %v212_v50 = vld [vmem:[%s2831_s3 + $0x18] sm:$0xff]  ;;  %v513_v61 = vld [vmem:[#allocation5 + $0x380] sm:$0xff] }
  0x41   : > { %v216_v51 = vld [vmem:[%s2831_s3 + $0x38] sm:$0xff]  ;;  %v2853_v54 = vpack.c.bf16 %v215_v49, %v211_v48  ;;  %v517_v62 = vld [vmem:[#allocation5 + $0x3a0] sm:$0xff]  ;;  %v514_v1 = vld [vmem:[#allocation5 + $0x388] sm:$0xff] }
  0x42   : > { %v2855_v55 = vpack.c.bf16 %v216_v51, %v212_v50  ;;  %v520_v60 = vld [vmem:[#allocation5 + $0x3b8] sm:$0xff]  ;;  %v713_v0 = vpack.c.bf16 %v517_v62, %v513_v61  ;;  %v518_v2 = vld [vmem:[#allocation5 + $0x3a8] sm:$0xff]  ;;  %v219_v8 = vld [vmem:[%s2831_s3 + $0x50] sm:$0xff] }
  0x43   : > { %788 = vmatpush.bf16.xpose.msra.mxu0 %v673_v44  ;;  %877 = vmatpush.bf16.xpose.msra.mxu1 %v674_v45  ;;  %v213_v44 = vld [vmem:[%s2831_s3 + $0x20] sm:$0xff]  ;;  %v210_v45 = vld [vmem:[%s2831_s3 + $0x8] sm:$0xff]  ;;  %v714_v3 = vpack.c.bf16 %v518_v2, %v514_v1  ;;  %v223_v9 = vld [vmem:[%s2831_s3 + $0x70] sm:$0xff] }
  0x44   : > { %966 = vmatpush.bf16.xpose.msra.mxu2 %v675_v46  ;;  %v718_v46 = vpack.c.bf16 %v526_v38, %v522_v37  ;;  %v2849_v52 = vpack.c.bf16 %v213_v44, %v209_v43  ;;  %v220_v10 = vld [vmem:[%s2831_s3 + $0x58] sm:$0xff]  ;;  %v2873_v14 = vpack.c.bf16 %v223_v9, %v219_v8  ;;  %v227_v20 = vld [vmem:[%s2831_s3 + $0x90] sm:$0xff]  ;;  %v505_v33 = vld [vmem:[#allocation5 + $0x340] sm:$0xff] }
  0x45   : > { %1055 = vmatpush.bf16.xpose.msra.mxu3 %v676_v47  ;;  %v214_v47 = vld [vmem:[%s2831_s3 + $0x28] sm:$0xff]  ;;  %v224_v11 = vld [vmem:[%s2831_s3 + $0x78] sm:$0xff]  ;;  %v231_v21 = vld [vmem:[%s2831_s3 + $0xb0] sm:$0xff] }
  0x46   : > { %v2851_v53 = vpack.c.bf16 %v214_v47, %v210_v45  ;;  %v2875_v15 = vpack.c.bf16 %v224_v11, %v220_v10  ;;  %v228_v22 = vld [vmem:[%s2831_s3 + $0x98] sm:$0xff]  ;;  %v2893_v26 = vpack.c.bf16 %v231_v21, %v227_v20  ;;  %v507_v28 = vld [vmem:[#allocation5 + $0x350] sm:$0xff]  ;;  %v509_v34 = vld [vmem:[#allocation5 + $0x360] sm:$0xff] }
  0x47   : > { %v232_v23 = vld [vmem:[%s2831_s3 + $0xb8] sm:$0xff]  ;;  %v511_v29 = vld [vmem:[#allocation5 + $0x370] sm:$0xff]  ;;  %v506_v37 = vld [vmem:[#allocation5 + $0x348] sm:$0xff] }
  0x48   : > { %v2895_v27 = vpack.c.bf16 %v232_v23, %v228_v22  ;;  %v508_v30 = vld [vmem:[#allocation5 + $0x358] sm:$0xff]  ;;  %v510_v38 = vld [vmem:[#allocation5 + $0x368] sm:$0xff]  ;;  %v235_v44 = vld [vmem:[%s2831_s3 + $0xd0] sm:$0xff] }
  0x49   : > { %v512_v32 = vld [vmem:[#allocation5 + $0x378] sm:$0xff]  ;;  %v238_v43 = vld [vmem:[%s2831_s3 + $0xe8] sm:$0xff]  ;;  %v239_v45 = vld [vmem:[%s2831_s3 + $0xf0] sm:$0xff] }
  0x4a   : > { %v240_v47 = vld [vmem:[%s2831_s3 + $0xf8] sm:$0xff]  ;;  %v2913_v50 = vpack.c.bf16 %v239_v45, %v235_v44  ;;  %v247_v61 = vld [vmem:[%s2831_s3 + $0x130] sm:$0xff]  ;;  %v497_v9 = vld [vmem:[#allocation5 + $0x300] sm:$0xff] }
  0x4b   : > { %789 = vmatpush.bf16.xpose.msra.mxu0 %v669_v56  ;;  %878 = vmatpush.bf16.xpose.msra.mxu1 %v670_v57  ;;  %v515_v56 = vld [vmem:[#allocation5 + $0x390] sm:$0xff]  ;;  %v244_v62 = vld [vmem:[%s2831_s3 + $0x118] sm:$0xff]  ;;  %v501_v10 = vld [vmem:[#allocation5 + $0x320] sm:$0xff] }
  0x4c   : > { %967 = vmatpush.bf16.xpose.msra.mxu2 %v671_v58  ;;  %v519_v57 = vld [vmem:[#allocation5 + $0x3b0] sm:$0xff]  ;;  %v516_v58 = vld [vmem:[#allocation5 + $0x398] sm:$0xff]  ;;  %v249_v20 = vld [vmem:[%s2831_s3 + $0x140] sm:$0xff] }
  0x4d   : > { %1056 = vmatpush.bf16.xpose.msra.mxu3 %v672_v59  ;;  %v715_v59 = vpack.c.bf16 %v519_v57, %v515_v56  ;;  %v716_v63 = vpack.c.bf16 %v520_v60, %v516_v58  ;;  %v241_v56 = vld [vmem:[%s2831_s3 + $0x100] sm:$0xff]  ;;  %v242_v58 = vld [vmem:[%s2831_s3 + $0x108] sm:$0xff]  ;;  %v243_v60 = vld [vmem:[%s2831_s3 + $0x110] sm:$0xff] }
  0x4e   : > { %v245_v57 = vld [vmem:[%s2831_s3 + $0x120] sm:$0xff]  ;;  %v2933_v2 = vpack.c.bf16 %v247_v61, %v243_v60  ;;  %v504_v8 = vld [vmem:[#allocation5 + $0x338] sm:$0xff]  ;;  %v250_v22 = vld [vmem:[%s2831_s3 + $0x148] sm:$0xff] }
  0x4f   : > { %v253_v21 = vld [vmem:[%s2831_s3 + $0x160] sm:$0xff]  ;;  %v254_v23 = vld [vmem:[%s2831_s3 + $0x168] sm:$0xff]  ;;  %v496_v60 = vld [vmem:[#allocation5 + $0x2f8] sm:$0xff] }
  0x53   : > { %790 = vmatpush.bf16.xpose.msra.mxu0 %v665_v4  ;;  %879 = vmatpush.bf16.xpose.msra.mxu1 %v666_v5  ;;  %v217_v4 = vld [vmem:[%s2831_s3 + $0x40] sm:$0xff] }
  0x54   : > { %968 = vmatpush.bf16.xpose.msra.mxu2 %v667_v6  ;;  %v221_v5 = vld [vmem:[%s2831_s3 + $0x60] sm:$0xff]  ;;  %v218_v6 = vld [vmem:[%s2831_s3 + $0x48] sm:$0xff] }
  0x55   : > { %1057 = vmatpush.bf16.xpose.msra.mxu3 %v668_v7  ;;  %v222_v7 = vld [vmem:[%s2831_s3 + $0x68] sm:$0xff]  ;;  %v2869_v12 = vpack.c.bf16 %v221_v5, %v217_v4  ;;  %v499_v4 = vld [vmem:[#allocation5 + $0x310] sm:$0xff] }
  0x56   : > { %v2871_v13 = vpack.c.bf16 %v222_v7, %v218_v6  ;;  %v503_v5 = vld [vmem:[#allocation5 + $0x330] sm:$0xff]  ;;  %v500_v6 = vld [vmem:[#allocation5 + $0x318] sm:$0xff] }
  0x57   : > { %v707_v7 = vpack.c.bf16 %v503_v5, %v499_v4  ;;  %v708_v11 = vpack.c.bf16 %v504_v8, %v500_v6  ;;  %v266_v4 = vld [vmem:[%s2831_s3 + $0x1c8] sm:$0xff]  ;;  %v489_v6 = vld [vmem:[#allocation5 + $0x2c0] sm:$0xff] }
  0x58   : > { %v270_v5 = vld [vmem:[%s2831_s3 + $0x1e8] sm:$0xff] }
  0x59   : > { %v490_v8 = vld [vmem:[#allocation5 + $0x2c8] sm:$0xff] }
  0x5b   : > { %791 = vmatpush.bf16.xpose.msra.mxu0 %v661_v16  ;;  %880 = vmatpush.bf16.xpose.msra.mxu1 %v662_v17  ;;  %v225_v16 = vld [vmem:[%s2831_s3 + $0x80] sm:$0xff] }
  0x5c   : > { %969 = vmatpush.bf16.xpose.msra.mxu2 %v663_v18  ;;  %v229_v17 = vld [vmem:[%s2831_s3 + $0xa0] sm:$0xff]  ;;  %v226_v18 = vld [vmem:[%s2831_s3 + $0x88] sm:$0xff] }
  0x5d   : > { %1058 = vmatpush.bf16.xpose.msra.mxu3 %v664_v19  ;;  %v230_v19 = vld [vmem:[%s2831_s3 + $0xa8] sm:$0xff]  ;;  %v2889_v24 = vpack.c.bf16 %v229_v17, %v225_v16  ;;  %v705_v16 = vpack.c.bf16 %v501_v10, %v497_v9  ;;  %v267_v9 = vld [vmem:[%s2831_s3 + $0x1d0] sm:$0xff] }
  0x5e   : > { %v2891_v25 = vpack.c.bf16 %v230_v19, %v226_v18  ;;  %v498_v17 = vld [vmem:[#allocation5 + $0x308] sm:$0xff]  ;;  %v271_v10 = vld [vmem:[%s2831_s3 + $0x1f0] sm:$0xff] }
  0x5f   : > { %v502_v18 = vld [vmem:[#allocation5 + $0x328] sm:$0xff] }
  0x60   : > { %v706_v19 = vpack.c.bf16 %v502_v18, %v498_v17  ;;  %v268_v17 = vld [vmem:[%s2831_s3 + $0x1d8] sm:$0xff] }
  0x61   : > { %v272_v18 = vld [vmem:[%s2831_s3 + $0x1f8] sm:$0xff] }
  0x63   : > { %792 = vmatpush.bf16.xpose.msra.mxu0 %v657_v31  ;;  %881 = vmatpush.bf16.xpose.msra.mxu1 %v658_v35  ;;  %v711_v31 = vpack.c.bf16 %v511_v29, %v507_v28  ;;  %v712_v35 = vpack.c.bf16 %v512_v32, %v508_v30  ;;  %v251_v28 = vld [vmem:[%s2831_s3 + $0x150] sm:$0xff]  ;;  %v252_v30 = vld [vmem:[%s2831_s3 + $0x158] sm:$0xff]  ;;  %v2949_v32 = vpack.c.bf16 %v253_v21, %v249_v20 }
  0x64   : > { %970 = vmatpush.bf16.xpose.msra.mxu2 %v659_v36  ;;  %v709_v36 = vpack.c.bf16 %v509_v34, %v505_v33  ;;  %v255_v29 = vld [vmem:[%s2831_s3 + $0x170] sm:$0xff]  ;;  %v2951_v33 = vpack.c.bf16 %v254_v23, %v250_v22  ;;  %v2991_v21 = vpack.c.bf16 %v270_v5, %v266_v4  ;;  %v2993_v22 = vpack.c.bf16 %v271_v10, %v267_v9 }
  0x65   : > { %1059 = vmatpush.bf16.xpose.msra.mxu3 %v660_v39  ;;  %v710_v39 = vpack.c.bf16 %v510_v38, %v506_v37  ;;  %v2953_v34 = vpack.c.bf16 %v255_v29, %v251_v28  ;;  %v261_v37 = vld [vmem:[%s2831_s3 + $0x1a0] sm:$0xff]  ;;  %v258_v38 = vld [vmem:[%s2831_s3 + $0x188] sm:$0xff]  ;;  %v2995_v23 = vpack.c.bf16 %v272_v18, %v268_v17 }
  0x66   : > { %v273_v28 = vld [vmem:[%s2831_s3 + $0x200] sm:$0xff]  ;;  %v282_v17 = vld [vmem:[%s2831_s3 + $0x248] sm:$0xff] }
  0x67   : > { %v277_v29 = vld [vmem:[%s2831_s3 + $0x220] sm:$0xff]  ;;  %v286_v18 = vld [vmem:[%s2831_s3 + $0x268] sm:$0xff] }
  0x6a   : > { %793 = vmatmul.bf16.vlgmr.msra.gmra.mxu0 %v2849_v52  ;;  %882 = vmatmul.bf16.vlgmr.msra.gmra.mxu1 %v2851_v53 }
  0x6b   : > { %1141 = vmatpush.bf16.xpose.msrb.mxu0 %v717_v42  ;;  %1230 = vmatpush.bf16.xpose.msrb.mxu1 %v718_v46  ;;  %v234_v42 = vld [vmem:[%s2831_s3 + $0xc8] sm:$0xff]  ;;  %v236_v46 = vld [vmem:[%s2831_s3 + $0xd8] sm:$0xff] }
  0x6c   : > { %1319 = vmatpush.bf16.xpose.msrb.mxu2 %v719_v40  ;;  %1060 = vmatmul.bf16.vlgmr.msra.gmra.mxu3 %v2855_v55  ;;  %v233_v40 = vld [vmem:[%s2831_s3 + $0xc0] sm:$0xff]  ;;  %v2911_v49 = vpack.c.bf16 %v238_v43, %v234_v42  ;;  %v2915_v51 = vpack.c.bf16 %v240_v47, %v236_v46  ;;  %v260_v42 = vld [vmem:[%s2831_s3 + $0x198] sm:$0xff] }
  0x6d   : > { %1408 = vmatpush.bf16.xpose.msrb.mxu3 %v720_v41  ;;  %971 = vmatmul.bf16.vlgmr.msra.gmra.mxu2 %v2853_v54  ;;  %v237_v41 = vld [vmem:[%s2831_s3 + $0xe0] sm:$0xff]  ;;  %v264_v43 = vld [vmem:[%s2831_s3 + $0x1b8] sm:$0xff] }
  0x6e   : > { %v2909_v48 = vpack.c.bf16 %v237_v41, %v233_v40  ;;  %v259_v40 = vld [vmem:[%s2831_s3 + $0x190] sm:$0xff]  ;;  %v2975_v47 = vpack.c.bf16 %v264_v43, %v260_v42 }
  0x6f   : > { %v263_v41 = vld [vmem:[%s2831_s3 + $0x1b0] sm:$0xff] }
  0x70   : > { %v2973_v46 = vpack.c.bf16 %v263_v41, %v259_v40  ;;  %v3009_v40 = vpack.c.bf16 %v277_v29, %v273_v28  ;;  %v485_v28 = vld [vmem:[#allocation5 + $0x2a0] sm:$0xff]  ;;  %v482_v29 = vld [vmem:[#allocation5 + $0x288] sm:$0xff] }
  0x73   : > { %1142 = vmatpush.bf16.xpose.msrb.mxu0 %v713_v0  ;;  %1231 = vmatpush.bf16.xpose.msrb.mxu1 %v714_v3  ;;  %v2929_v0 = vpack.c.bf16 %v245_v57, %v241_v56  ;;  %v491_v56 = vld [vmem:[#allocation5 + $0x2d0] sm:$0xff] }
  0x74   : > { %1320 = vmatpush.bf16.xpose.msrb.mxu2 %v715_v59  ;;  %v246_v59 = vld [vmem:[%s2831_s3 + $0x128] sm:$0xff]  ;;  %v495_v57 = vld [vmem:[#allocation5 + $0x2f0] sm:$0xff] }
  0x75   : > { %1409 = vmatpush.bf16.xpose.msrb.mxu3 %v716_v63  ;;  %v248_v63 = vld [vmem:[%s2831_s3 + $0x138] sm:$0xff]  ;;  %v2931_v1 = vpack.c.bf16 %v246_v59, %v242_v58  ;;  %v703_v59 = vpack.c.bf16 %v495_v57, %v491_v56 }
  0x76   : > { %v2935_v3 = vpack.c.bf16 %v248_v63, %v244_v62  ;;  %v492_v58 = vld [vmem:[#allocation5 + $0x2d8] sm:$0xff]  ;;  %v265_v62 = vld [vmem:[%s2831_s3 + $0x1c0] sm:$0xff] }
  0x77   : > { %v704_v61 = vpack.c.bf16 %v496_v60, %v492_v58  ;;  %v269_v63 = vld [vmem:[%s2831_s3 + $0x1e0] sm:$0xff]  ;;  %v487_v60 = vld [vmem:[#allocation5 + $0x2b0] sm:$0xff] }
  0x78   : > { %v2989_v20 = vpack.c.bf16 %v269_v63, %v265_v62  ;;  %v488_v63 = vld [vmem:[#allocation5 + $0x2b8] sm:$0xff] }
  0x7a   : > { %798 = vmatmul.bf16.gmra.mxu0 %v2869_v12  ;;  %887 = vmatmul.bf16.gmra.mxu1 %v2871_v13 }
  0x7b   : > { %1143 = vmatpush.bf16.xpose.msrb.mxu0 %v709_v36  ;;  %1232 = vmatpush.bf16.xpose.msrb.mxu1 %v710_v39  ;;  %v257_v36 = vld [vmem:[%s2831_s3 + $0x180] sm:$0xff]  ;;  %v262_v39 = vld [vmem:[%s2831_s3 + $0x1a8] sm:$0xff] }
  0x7c   : > { %1065 = vmatmul.bf16.gmra.mxu3 %v2875_v15  ;;  %1321 = vmatpush.bf16.xpose.msrb.mxu2 %v711_v31  ;;  %v256_v31 = vld [vmem:[%s2831_s3 + $0x178] sm:$0xff]  ;;  %v2969_v44 = vpack.c.bf16 %v261_v37, %v257_v36  ;;  %v2971_v45 = vpack.c.bf16 %v262_v39, %v258_v38  ;;  %v275_v36 = vld [vmem:[%s2831_s3 + $0x210] sm:$0xff] }
  0x7d   : > { %976 = vmatmul.bf16.gmra.mxu2 %v2873_v14  ;;  %1410 = vmatpush.bf16.xpose.msrb.mxu3 %v712_v35  ;;  %v2955_v35 = vpack.c.bf16 %v256_v31, %v252_v30  ;;  %v274_v30 = vld [vmem:[%s2831_s3 + $0x208] sm:$0xff]  ;;  %v279_v37 = vld [vmem:[%s2831_s3 + $0x230] sm:$0xff]  ;;  %v276_v38 = vld [vmem:[%s2831_s3 + $0x218] sm:$0xff] }
  0x7e   : > { %v278_v31 = vld [vmem:[%s2831_s3 + $0x228] sm:$0xff]  ;;  %v280_v39 = vld [vmem:[%s2831_s3 + $0x238] sm:$0xff]  ;;  %v3013_v43 = vpack.c.bf16 %v279_v37, %v275_v36 }
  0x7f   : > { %v3011_v42 = vpack.c.bf16 %v278_v31, %v274_v30  ;;  %v3015_v57 = vpack.c.bf16 %v280_v39, %v276_v38  ;;  %v283_v30 = vld [vmem:[%s2831_s3 + $0x250] sm:$0xff]  ;;  %v486_v37 = vld [vmem:[#allocation5 + $0x2a8] sm:$0xff]  ;;  %v284_v39 = vld [vmem:[%s2831_s3 + $0x258] sm:$0xff] }
  0x80   : > { %v287_v31 = vld [vmem:[%s2831_s3 + $0x270] sm:$0xff] }
  0x83   : > { %1144 = vmatpush.bf16.xpose.msrb.mxu0 %v705_v16  ;;  %1233 = vmatpush.bf16.xpose.msrb.mxu1 %v706_v19  ;;  %v494_v16 = vld [vmem:[#allocation5 + $0x2e8] sm:$0xff] }
  0x84   : > { %1322 = vmatpush.bf16.xpose.msrb.mxu2 %v707_v7  ;;  %v493_v7 = vld [vmem:[#allocation5 + $0x2e0] sm:$0xff]  ;;  %v702_v19 = vpack.c.bf16 %v494_v16, %v490_v8 }
  0x85   : > { %1411 = vmatpush.bf16.xpose.msrb.mxu3 %v708_v11  ;;  %v701_v11 = vpack.c.bf16 %v493_v7, %v489_v6  ;;  %v285_v16 = vld [vmem:[%s2831_s3 + $0x260] sm:$0xff] }
  0x8a   : > { %803 = vmatmul.bf16.gmra.mxu0 %v2889_v24  ;;  %892 = vmatmul.bf16.gmra.mxu1 %v2891_v25 }
  0x8b   : > { %1145 = vmatpush.bf16.xpose.msrb.mxu0 %v701_v11  ;;  %1234 = vmatpush.bf16.xpose.msrb.mxu1 %v702_v19  ;;  %v281_v11 = vld [vmem:[%s2831_s3 + $0x240] sm:$0xff] }
  0x8c   : > { %1070 = vmatmul.bf16.gmra.mxu3 %v2895_v27  ;;  %1323 = vmatpush.bf16.xpose.msrb.mxu2 %v703_v59  ;;  %v483_v59 = vld [vmem:[#allocation5 + $0x290] sm:$0xff]  ;;  %v481_v19 = vld [vmem:[#allocation5 + $0x280] sm:$0xff] }
  0x8d   : > { %981 = vmatmul.bf16.gmra.mxu2 %v2893_v26  ;;  %1412 = vmatpush.bf16.xpose.msrb.mxu3 %v704_v61  ;;  %v484_v61 = vld [vmem:[#allocation5 + $0x298] sm:$0xff]  ;;  %v699_v62 = vpack.c.bf16 %v487_v60, %v483_v59  ;;  %v697_v36 = vpack.c.bf16 %v485_v28, %v481_v19  ;;  %v3034_v59 = vpack.c.bf16 %v285_v16, %v281_v11  ;;  %v289_v19 = vld [vmem:[%s2831_s3 + $0x280] sm:$0xff] }
  0x8e   : > { %v700_v5 = vpack.c.bf16 %v488_v63, %v484_v61  ;;  %v3036_v63 = vpack.c.bf16 %v286_v18, %v282_v17  ;;  %v293_v28 = vld [vmem:[%s2831_s3 + $0x2a0] sm:$0xff] }
  0x93   : > { %1146 = vmatpush.bf16.xpose.msrb.mxu0 %v697_v36  ;;  %v295_v36 = vld [vmem:[%s2831_s3 + $0x2b0] sm:$0xff] }
  0x94   : > { %1324 = vmatpush.bf16.xpose.msrb.mxu2 %v699_v62 }
  0x95   : > { %1413 = vmatpush.bf16.xpose.msrb.mxu3 %v700_v5 }
  0x9a   : > { %808 = vmatmul.bf16.gmra.mxu0 %v2909_v48  ;;  %897 = vmatmul.bf16.gmra.mxu1 %v2911_v49 }
  0x9c   : > { %1075 = vmatmul.bf16.gmra.mxu3 %v2915_v51 }
  0x9d   : > { %986 = vmatmul.bf16.gmra.mxu2 %v2913_v50 }
  0xaa   : > { %813 = vmatmul.bf16.gmra.mxu0 %v2929_v0  ;;  %902 = vmatmul.bf16.gmra.mxu1 %v2931_v1 }
  0xac   : > { %1080 = vmatmul.bf16.gmra.mxu3 %v2935_v3 }
  0xad   : > { %991 = vmatmul.bf16.gmra.mxu2 %v2933_v2 }
  0xba   : > { %818 = vmatmul.bf16.gmra.mxu0 %v2949_v32  ;;  %907 = vmatmul.bf16.gmra.mxu1 %v2951_v33 }
  0xbc   : > { %1085 = vmatmul.bf16.gmra.mxu3 %v2955_v35 }
  0xbd   : > { %996 = vmatmul.bf16.gmra.mxu2 %v2953_v34 }
  0xca   : > { %823 = vmatmul.bf16.gmra.mxu0 %v2969_v44  ;;  %912 = vmatmul.bf16.gmra.mxu1 %v2971_v45 }
  0xcc   : > { %1090 = vmatmul.bf16.gmra.mxu3 %v2975_v47 }
  0xcd   : > { %1001 = vmatmul.bf16.gmra.mxu2 %v2973_v46 }
  0xda   : > { %828 = vmatmul.bf16.gmra.mxu0 %v2989_v20  ;;  %917 = vmatmul.bf16.gmra.mxu1 %v2991_v21 }
  0xdc   : > { %1095 = vmatmul.bf16.gmra.mxu3 %v2995_v23 }
  0xdd   : > { %1006 = vmatmul.bf16.gmra.mxu2 %v2993_v22 }
  0xe7   : > { %v794_v41 = vpop.f32.mrf.mxu0  ;;  %v883_v56 = vpop.f32.mrf.mxu1 }
  0xe8   : > { %v884_v58 = vadd.f32 %v883_v56, %v794_v41  ;;  %v288_v41 = vld [vmem:[%s2831_s3 + $0x278] sm:$0xff]  ;;  %v698_v56 = vpack.c.bf16 %v486_v37, %v482_v29  ;;  %v290_v29 = vld [vmem:[%s2831_s3 + $0x288] sm:$0xff] }
  0xea   : > { %833 = vmatmul.bf16.gmra.mxu0 %v3009_v40  ;;  %922 = vmatmul.bf16.gmra.mxu1 %v3011_v42 }
  0xeb   : > { %1235 = vmatpush.bf16.xpose.msrb.mxu1 %v698_v56  ;;  %v3056_v56 = vpack.c.bf16 %v293_v28, %v289_v19  ;;  %v480_v19 = vld [vmem:[#allocation5 + $0x278] sm:$0xff] }
  0xec   : > { %1100 = vmatmul.bf16.gmra.mxu3 %v3015_v57 }
  0xed   : > { %1011 = vmatmul.bf16.gmra.mxu2 %v3013_v43  ;;  %3574 = vst [vmem:[#allocation11_spill] sm:$0xff] %v3056_v56 }
  0xef   : > { %v1061_v7 = vpop.f32.mrf.mxu3  ;;  %v796_v8 = vpop.f32.mrf.mxu0 }
  0xf0   : > { %v972_v4 = vpop.f32.mrf.mxu2  ;;  %v885_v9 = vpop.f32.mrf.mxu1 }
  0xf1   : > { %v973_v6 = vadd.f32 %v972_v4, %v884_v58  ;;  %v886_v38 = vadd.f32 %v885_v9, %v796_v8  ;;  %v3038_v4 = vpack.c.bf16 %v287_v31, %v283_v30  ;;  %v294_v30 = vld [vmem:[%s2831_s3 + $0x2a8] sm:$0xff]  ;;  %v291_v31 = vld [vmem:[%s2831_s3 + $0x290] sm:$0xff] }
  0xf3   : > { %v1062_v10 = vadd.f32 %v1061_v7, %v973_v6  ;;  %v3040_v6 = vpack.c.bf16 %v288_v41, %v284_v39  ;;  %v296_v39 = vld [vmem:[%s2831_s3 + $0x2b8] sm:$0xff] }
  0xf5   : > { %2209 = vst [vmem:[%s3027_s17] sm:$0xff] %v1062_v10 }
  0xf7   : > { %v1063_v61 = vpop.f32.mrf.mxu3  ;;  %v799_v62 = vpop.f32.mrf.mxu0 }
  0xf8   : > { %v974_v58 = vpop.f32.mrf.mxu2  ;;  %v888_v5 = vpop.f32.mrf.mxu1 }
  0xf9   : > { %v975_v60 = vadd.f32 %v974_v58, %v886_v38  ;;  %v889_v8 = vadd.f32 %v888_v5, %v799_v62  ;;  %v292_v38 = vld [vmem:[%s2831_s3 + $0x298] sm:$0xff]  ;;  %v3058_v62 = vpack.c.bf16 %v294_v30, %v290_v29  ;;  %v3060_v5 = vpack.c.bf16 %v295_v36, %v291_v31 }
  0xfa   : > { %838 = vmatmul.bf16.gmra.mxu0 %v3034_v59  ;;  %927 = vmatmul.bf16.gmra.mxu1 %v3036_v63 }
  0xfb   : > { %v1064_v7 = vadd.f32 %v1063_v61, %v975_v60  ;;  %3575 = vst [vmem:[#allocation12_spill] sm:$0xff] %v3058_v62 }
  0xfc   : > { %1105 = vmatmul.bf16.gmra.mxu3 %v3040_v6  ;;  %3576 = vst [vmem:[#allocation13_spill] sm:$0xff] %v3060_v5 }
  0xfd   : > { %2213 = vst [vmem:[%s3027_s17 + $0x20] sm:$0xff] %v1064_v7  ;;  %1016 = vmatmul.bf16.gmra.mxu2 %v3038_v4 }
  0xff   : > { %v1066_v11 = vpop.f32.mrf.mxu3  ;;  %v801_v16 = vpop.f32.mrf.mxu0 }
 0x100   : > { %v977_v9 = vpop.f32.mrf.mxu2  ;;  %v890_v17 = vpop.f32.mrf.mxu1 }
 0x101   : > { %v978_v10 = vadd.f32 %v977_v9, %v889_v8  ;;  %v891_v37 = vadd.f32 %v890_v17, %v801_v16  ;;  %v3062_v8 = vpack.c.bf16 %v296_v39, %v292_v38  ;;  %v479_v16 = vld [vmem:[#allocation5 + $0x270] sm:$0xff]  ;;  %v476_v17 = vld [vmem:[#allocation5 + $0x258] sm:$0xff]  ;;  %v297_v39 = vld [vmem:[%s2831_s3 + $0x2c0] sm:$0xff] }
 0x102   : > { %v696_v29 = vpack.c.bf16 %v480_v19, %v476_v17  ;;  %v478_v17 = vld [vmem:[#allocation5 + $0x268] sm:$0xff] }
 0x103   : > { %v1067_v18 = vadd.f32 %v1066_v11, %v978_v10  ;;  %3577 = vst [vmem:[#allocation14_spill] sm:$0xff] %v3062_v8  ;;  %v475_v11 = vld [vmem:[#allocation5 + $0x250] sm:$0xff] }
 0x104   : > { %1414 = vmatpush.bf16.xpose.msrb.mxu3 %v696_v29 }
 0x105   : > { %2217 = vst [vmem:[%s3027_s17 + $0x40] sm:$0xff] %v1067_v18  ;;  %v695_v18 = vpack.c.bf16 %v479_v16, %v475_v11  ;;  %v299_v11 = vld [vmem:[%s2831_s3 + $0x2d0] sm:$0xff] }
 0x106   : > { %v303_v16 = vld [vmem:[%s2831_s3 + $0x2f0] sm:$0xff] }
 0x107   : > { %v1068_v60 = vpop.f32.mrf.mxu3  ;;  %v804_v61 = vpop.f32.mrf.mxu0  ;;  %1325 = vmatpush.bf16.xpose.msrb.mxu2 %v695_v18  ;;  %v304_v18 = vld [vmem:[%s2831_s3 + $0x2f8] sm:$0xff] }
 0x108   : > { %v979_v41 = vpop.f32.mrf.mxu2  ;;  %v893_v7 = vpop.f32.mrf.mxu1 }
 0x109   : > { %v980_v58 = vadd.f32 %v979_v41, %v891_v37  ;;  %v894_v10 = vadd.f32 %v893_v7, %v804_v61  ;;  %v301_v41 = vld [vmem:[%s2831_s3 + $0x2e0] sm:$0xff] }
 0x10a   : > { %843 = vmatmul.bf16.gmra.mxu0 %v3056_v56  ;;  %932 = vmatmul.bf16.gmra.mxu1 %v3058_v62  ;;  %v473_v61 = vld [vmem:[#allocation5 + $0x240] sm:$0xff]  ;;  %v3082_v56 = vpack.c.bf16 %v303_v16, %v299_v11 }
 0x10b   : > { %v1069_v9 = vadd.f32 %v1068_v60, %v980_v58  ;;  %v298_v58 = vld [vmem:[%s2831_s3 + $0x2c8] sm:$0xff]  ;;  %v477_v7 = vld [vmem:[#allocation5 + $0x260] sm:$0xff] }
 0x10c   : > { %1110 = vmatmul.bf16.gmra.mxu3 %v3062_v8  ;;  %v302_v60 = vld [vmem:[%s2831_s3 + $0x2e8] sm:$0xff]  ;;  %3580 = vst [vmem:[#allocation17_spill] sm:$0xff] %v3082_v56  ;;  %v305_v11 = vld [vmem:[%s2831_s3 + $0x300] sm:$0xff] }
 0x10d   : > { %2221 = vst [vmem:[%s3027_s17 + $0x60] sm:$0xff] %v1069_v9  ;;  %1021 = vmatmul.bf16.gmra.mxu2 %v3060_v5  ;;  %v474_v9 = vld [vmem:[#allocation5 + $0x248] sm:$0xff]  ;;  %v3078_v5 = vpack.c.bf16 %v301_v41, %v297_v39  ;;  %v309_v16 = vld [vmem:[%s2831_s3 + $0x320] sm:$0xff] }
 0x10e   : > { %v694_v8 = vpack.c.bf16 %v478_v17, %v474_v9  ;;  %v307_v17 = vld [vmem:[%s2831_s3 + $0x310] sm:$0xff] }
 0x10f   : > { %v1071_v31 = vpop.f32.mrf.mxu3  ;;  %v806_v36 = vpop.f32.mrf.mxu0  ;;  %3578 = vst [vmem:[#allocation15_spill] sm:$0xff] %v3078_v5 }
 0x110   : > { %v982_v28 = vpop.f32.mrf.mxu2  ;;  %v895_v37 = vpop.f32.mrf.mxu1  ;;  %1236 = vmatpush.bf16.xpose.msrb.mxu1 %v694_v8 }
 0x111   : > { %v983_v30 = vadd.f32 %v982_v28, %v894_v10  ;;  %v693_v10 = vpack.c.bf16 %v477_v7, %v473_v61  ;;  %v896_v19 = vadd.f32 %v895_v37, %v806_v36  ;;  %v300_v28 = vld [vmem:[%s2831_s3 + $0x2d8] sm:$0xff] }
 0x112   : > { %v3084_v36 = vpack.c.bf16 %v304_v18, %v300_v28  ;;  %v308_v18 = vld [vmem:[%s2831_s3 + $0x318] sm:$0xff] }
 0x113   : > { %v1072_v38 = vadd.f32 %v1071_v31, %v983_v30  ;;  %1147 = vmatpush.bf16.xpose.msrb.mxu0 %v693_v10  ;;  %v306_v10 = vld [vmem:[%s2831_s3 + $0x308] sm:$0xff] }
 0x114   : > { %3581 = vst [vmem:[#allocation18_spill] sm:$0xff] %v3084_v36 }
 0x115   : > { %2225 = vst [vmem:[%s3027_s17 + $0x80] sm:$0xff] %v1072_v38  ;;  %v3080_v38 = vpack.c.bf16 %v302_v60, %v298_v58 }
 0x117   : > { %v1073_v31 = vpop.f32.mrf.mxu3  ;;  %v809_v62 = vpop.f32.mrf.mxu0  ;;  %3579 = vst [vmem:[#allocation16_spill] sm:$0xff] %v3080_v38 }
 0x118   : > { %v984_v29 = vpop.f32.mrf.mxu2  ;;  %v898_v61 = vpop.f32.mrf.mxu1 }
 0x119   : > { %v985_v30 = vadd.f32 %v984_v29, %v896_v19  ;;  %v899_v39 = vadd.f32 %v898_v61, %v809_v62  ;;  %v310_v62 = vld [vmem:[%s2831_s3 + $0x328] sm:$0xff]  ;;  %v311_v19 = vld [vmem:[%s2831_s3 + $0x330] sm:$0xff]  ;;  %v312_v29 = vld [vmem:[%s2831_s3 + $0x338] sm:$0xff] }
 0x11a   : > { %848 = vmatmul.bf16.gmra.mxu0 %v3078_v5  ;;  %937 = vmatmul.bf16.gmra.mxu1 %v3080_v38 }
 0x11b   : > { %v1074_v37 = vadd.f32 %v1073_v31, %v985_v30  ;;  %v3100_v31 = vpack.c.bf16 %v309_v16, %v305_v11  ;;  %v471_v11 = vld [vmem:[#allocation5 + $0x230] sm:$0xff]  ;;  %v468_v16 = vld [vmem:[#allocation5 + $0x218] sm:$0xff] }
 0x11c   : > { %1115 = vmatmul.bf16.gmra.mxu3 %v3084_v36 }
 0x11d   : > { %2229 = vst [vmem:[%s3027_s17 + $0xa0] sm:$0xff] %v1074_v37  ;;  %1026 = vmatmul.bf16.gmra.mxu2 %v3082_v56 }
 0x11e   : > { %3582 = vst [vmem:[#allocation19_spill] sm:$0xff] %v3100_v31 }
 0x11f   : > { %v1076_v58 = vpop.f32.mrf.mxu3  ;;  %v811_v60 = vpop.f32.mrf.mxu0 }
 0x120   : > { %v987_v8 = vpop.f32.mrf.mxu2  ;;  %v900_v7 = vpop.f32.mrf.mxu1 }
 0x121   : > { %v988_v41 = vadd.f32 %v987_v8, %v899_v39  ;;  %v901_v28 = vadd.f32 %v900_v7, %v811_v60  ;;  %v3102_v8 = vpack.c.bf16 %v310_v62, %v306_v10  ;;  %v467_v7 = vld [vmem:[#allocation5 + $0x210] sm:$0xff]  ;;  %v472_v62 = vld [vmem:[#allocation5 + $0x238] sm:$0xff] }
 0x122   : > { %v691_v10 = vpack.c.bf16 %v471_v11, %v467_v7  ;;  %v465_v7 = vld [vmem:[#allocation5 + $0x200] sm:$0xff] }
 0x123   : > { %v1077_v9 = vadd.f32 %v1076_v58, %v988_v41  ;;  %3583 = vst [vmem:[#allocation20_spill] sm:$0xff] %v3102_v8  ;;  %v3104_v41 = vpack.c.bf16 %v311_v19, %v307_v17  ;;  %v692_v19 = vpack.c.bf16 %v472_v62, %v468_v16  ;;  %v469_v11 = vld [vmem:[#allocation5 + $0x220] sm:$0xff]  ;;  %v315_v16 = vld [vmem:[%s2831_s3 + $0x350] sm:$0xff] }
 0x124   : > { %1326 = vmatpush.bf16.xpose.msrb.mxu2 %v691_v10  ;;  %v319_v62 = vld [vmem:[%s2831_s3 + $0x370] sm:$0xff]  ;;  %v320_v10 = vld [vmem:[%s2831_s3 + $0x378] sm:$0xff] }
 0x125   : > { %2233 = vst [vmem:[%s3027_s17 + $0xc0] sm:$0xff] %v1077_v9  ;;  %v3106_v9 = vpack.c.bf16 %v312_v29, %v308_v18  ;;  %1415 = vmatpush.bf16.xpose.msrb.mxu3 %v692_v19  ;;  %v3126_v5 = vpack.c.bf16 %v319_v62, %v315_v16  ;;  %v322_v16 = vld [vmem:[%s2831_s3 + $0x388] sm:$0xff]  ;;  %v323_v62 = vld [vmem:[%s2831_s3 + $0x390] sm:$0xff] }
 0x126   : > { %3584 = vst [vmem:[#allocation21_spill] sm:$0xff] %v3104_v41 }
 0x127   : > { %v1078_v37 = vpop.f32.mrf.mxu3  ;;  %v814_v39 = vpop.f32.mrf.mxu0  ;;  %3585 = vst [vmem:[#allocation22_spill] sm:$0xff] %v3106_v9 }
 0x128   : > { %v989_v30 = vpop.f32.mrf.mxu2  ;;  %v903_v58 = vpop.f32.mrf.mxu1  ;;  %3588 = vst [vmem:[#allocation25_spill] sm:$0xff] %v3126_v5 }
 0x129   : > { %v990_v61 = vadd.f32 %v989_v30, %v901_v28  ;;  %v904_v60 = vadd.f32 %v903_v58, %v814_v39  ;;  %v314_v39 = vld [vmem:[%s2831_s3 + $0x348] sm:$0xff] }
 0x12a   : > { %853 = vmatmul.bf16.gmra.mxu0 %v3100_v31  ;;  %942 = vmatmul.bf16.gmra.mxu1 %v3102_v8  ;;  %v318_v58 = vld [vmem:[%s2831_s3 + $0x368] sm:$0xff]  ;;  %v316_v8 = vld [vmem:[%s2831_s3 + $0x358] sm:$0xff] }
 0x12b   : > { %v1079_v36 = vadd.f32 %v1078_v37, %v990_v61  ;;  %v313_v61 = vld [vmem:[%s2831_s3 + $0x340] sm:$0xff] }
 0x12c   : > { %1120 = vmatmul.bf16.gmra.mxu3 %v3106_v9  ;;  %v317_v37 = vld [vmem:[%s2831_s3 + $0x360] sm:$0xff]  ;;  %v466_v9 = vld [vmem:[#allocation5 + $0x208] sm:$0xff] }
 0x12d   : > { %2237 = vst [vmem:[%s3027_s17 + $0xe0] sm:$0xff] %v1079_v36  ;;  %1031 = vmatmul.bf16.gmra.mxu2 %v3104_v41  ;;  %v3122_v56 = vpack.c.bf16 %v317_v37, %v313_v61 }
 0x12f   : > { %v1081_v28 = vpop.f32.mrf.mxu3  ;;  %v816_v18 = vpop.f32.mrf.mxu0  ;;  %3586 = vst [vmem:[#allocation23_spill] sm:$0xff] %v3122_v56 }
 0x130   : > { %v992_v17 = vpop.f32.mrf.mxu2  ;;  %v905_v29 = vpop.f32.mrf.mxu1 }
 0x131   : > { %v993_v36 = vadd.f32 %v992_v17, %v904_v60  ;;  %v689_v60 = vpack.c.bf16 %v469_v11, %v465_v7  ;;  %v470_v17 = vld [vmem:[#allocation5 + $0x228] sm:$0xff]  ;;  %v906_v41 = vadd.f32 %v905_v29, %v816_v18  ;;  %v3128_v18 = vpack.c.bf16 %v320_v10, %v316_v8  ;;  %v325_v11 = vld [vmem:[%s2831_s3 + $0x3a0] sm:$0xff]  ;;  %v324_v10 = vld [vmem:[%s2831_s3 + $0x398] sm:$0xff] }
 0x132   : > { %v690_v31 = vpack.c.bf16 %v470_v17, %v466_v9 }
 0x133   : > { %v1082_v30 = vadd.f32 %v1081_v28, %v993_v36  ;;  %1148 = vmatpush.bf16.xpose.msrb.mxu0 %v689_v60  ;;  %3589 = vst [vmem:[#allocation26_spill] sm:$0xff] %v3128_v18  ;;  %v327_v60 = vld [vmem:[%s2831_s3 + $0x3b0] sm:$0xff] }
 0x134   : > { %1237 = vmatpush.bf16.xpose.msrb.mxu1 %v690_v31 }
 0x135   : > { %2241 = vst [vmem:[%s3027_s17 + $0x100] sm:$0xff] %v1082_v30  ;;  %v3124_v30 = vpack.c.bf16 %v318_v58, %v314_v39  ;;  %v321_v58 = vld [vmem:[%s2831_s3 + $0x380] sm:$0xff] }
 0x137   : > { %v1083_v28 = vpop.f32.mrf.mxu3  ;;  %v819_v38 = vpop.f32.mrf.mxu0  ;;  %3587 = vst [vmem:[#allocation24_spill] sm:$0xff] %v3124_v30 }
 0x138   : > { %v994_v19 = vpop.f32.mrf.mxu2  ;;  %v908_v7 = vpop.f32.mrf.mxu1 }
 0x139   : > { %v995_v36 = vadd.f32 %v994_v19, %v906_v41  ;;  %v909_v41 = vadd.f32 %v908_v7, %v819_v38  ;;  %v326_v38 = vld [vmem:[%s2831_s3 + $0x3a8] sm:$0xff]  ;;  %v328_v19 = vld [vmem:[%s2831_s3 + $0x3b8] sm:$0xff] }
 0x13a   : > { %858 = vmatmul.bf16.gmra.mxu0 %v3122_v56  ;;  %947 = vmatmul.bf16.gmra.mxu1 %v3124_v30 }
 0x13b   : > { %v1084_v29 = vadd.f32 %v1083_v28, %v995_v36  ;;  %v3144_v28 = vpack.c.bf16 %v325_v11, %v321_v58  ;;  %v591_v58 = vld [vmem:[#allocation5 + $0x5f0] sm:$0xff]  ;;  %v588_v11 = vld [vmem:[#allocation5 + $0x5d8] sm:$0xff] }
 0x13c   : > { %1125 = vmatmul.bf16.gmra.mxu3 %v3128_v18 }
 0x13d   : > { %2245 = vst [vmem:[%s3027_s17 + $0x120] sm:$0xff] %v1084_v29  ;;  %1036 = vmatmul.bf16.gmra.mxu2 %v3126_v5 }
 0x13e   : > { %3590 = vst [vmem:[#allocation27_spill] sm:$0xff] %v3144_v28 }
 0x13f   : > { %v1086_v9 = vpop.f32.mrf.mxu3  ;;  %v821_v61 = vpop.f32.mrf.mxu0 }
 0x140   : > { %v997_v31 = vpop.f32.mrf.mxu2  ;;  %v910_v37 = vpop.f32.mrf.mxu1 }
 0x141   : > { %v998_v8 = vadd.f32 %v997_v31, %v909_v41  ;;  %v911_v17 = vadd.f32 %v910_v37, %v821_v61  ;;  %v3146_v31 = vpack.c.bf16 %v326_v38, %v322_v16  ;;  %v587_v37 = vld [vmem:[#allocation5 + $0x5d0] sm:$0xff]  ;;  %v592_v38 = vld [vmem:[#allocation5 + $0x5f8] sm:$0xff] }
 0x142   : > { %v751_v16 = vpack.c.bf16 %v591_v58, %v587_v37  ;;  %v585_v37 = vld [vmem:[#allocation5 + $0x5c0] sm:$0xff] }
 0x143   : > { %v1087_v39 = vadd.f32 %v1086_v9, %v998_v8  ;;  %3591 = vst [vmem:[#allocation28_spill] sm:$0xff] %v3146_v31  ;;  %v3148_v8 = vpack.c.bf16 %v327_v60, %v323_v62  ;;  %v752_v60 = vpack.c.bf16 %v592_v38, %v588_v11  ;;  %v589_v58 = vld [vmem:[#allocation5 + $0x5e0] sm:$0xff]  ;;  %v331_v11 = vld [vmem:[%s2831_s3 + $0x3d0] sm:$0xff] }
 0x144   : > { %1675 = vmatpush.bf16.xpose.msra.mxu2 %v751_v16  ;;  %v335_v38 = vld [vmem:[%s2831_s3 + $0x3f0] sm:$0xff]  ;;  %v336_v16 = vld [vmem:[%s2831_s3 + $0x3f8] sm:$0xff] }
 0x145   : > { %2249 = vst [vmem:[%s3027_s17 + $0x140] sm:$0xff] %v1087_v39  ;;  %v3150_v39 = vpack.c.bf16 %v328_v19, %v324_v10  ;;  %1764 = vmatpush.bf16.xpose.msra.mxu3 %v752_v60  ;;  %v3170_v56 = vpack.c.bf16 %v335_v38, %v331_v11 }
 0x146   : > { %3592 = vst [vmem:[#allocation29_spill] sm:$0xff] %v3148_v8 }
 0x147   : > { %v1088_v29 = vpop.f32.mrf.mxu3  ;;  %v824_v41 = vpop.f32.mrf.mxu0  ;;  %3593 = vst [vmem:[#allocation30_spill] sm:$0xff] %v3150_v39 }
 0x148   : > { %v999_v36 = vpop.f32.mrf.mxu2  ;;  %v913_v9 = vpop.f32.mrf.mxu1 }
 0x149   : > { %v1000_v7 = vadd.f32 %v999_v36, %v911_v17  ;;  %v914_v61 = vadd.f32 %v913_v9, %v824_v41  ;;  %v330_v41 = vld [vmem:[%s2831_s3 + $0x3c8] sm:$0xff] }
 0x14a   : > { %863 = vmatmul.bf16.gmra.mxu0 %v3144_v28  ;;  %952 = vmatmul.bf16.gmra.mxu1 %v3146_v31  ;;  %v334_v9 = vld [vmem:[%s2831_s3 + $0x3e8] sm:$0xff]  ;;  %v332_v31 = vld [vmem:[%s2831_s3 + $0x3d8] sm:$0xff] }
 0x14b   : > { %v1089_v18 = vadd.f32 %v1088_v29, %v1000_v7  ;;  %v329_v7 = vld [vmem:[%s2831_s3 + $0x3c0] sm:$0xff] }
 0x14c   : > { %1130 = vmatmul.bf16.gmra.mxu3 %v3150_v39  ;;  %v333_v29 = vld [vmem:[%s2831_s3 + $0x3e0] sm:$0xff]  ;;  %v586_v39 = vld [vmem:[#allocation5 + $0x5c8] sm:$0xff] }
 0x14d   : > { %2253 = vst [vmem:[%s3027_s17 + $0x160] sm:$0xff] %v1089_v18  ;;  %1041 = vmatmul.bf16.gmra.mxu2 %v3148_v8  ;;  %v3166_v5 = vpack.c.bf16 %v333_v29, %v329_v7 }
 0x14f   : > { %v1091_v17 = vpop.f32.mrf.mxu3  ;;  %v826_v10 = vpop.f32.mrf.mxu0 }
 0x150   : > { %v1002_v62 = vpop.f32.mrf.mxu2  ;;  %v915_v19 = vpop.f32.mrf.mxu1 }
 0x151   : > { %v1003_v18 = vadd.f32 %v1002_v62, %v914_v61  ;;  %v749_v61 = vpack.c.bf16 %v589_v58, %v585_v37  ;;  %v590_v62 = vld [vmem:[#allocation5 + $0x5e8] sm:$0xff]  ;;  %v916_v8 = vadd.f32 %v915_v19, %v826_v10  ;;  %v3172_v58 = vpack.c.bf16 %v336_v16, %v332_v31 }
 0x152   : > { %v750_v28 = vpack.c.bf16 %v590_v62, %v586_v39 }
 0x153   : > { %v1092_v36 = vadd.f32 %v1091_v17, %v1003_v18  ;;  %1497 = vmatpush.bf16.xpose.msra.mxu0 %v749_v61 }
 0x154   : > { %1586 = vmatpush.bf16.xpose.msra.mxu1 %v750_v28 }
 0x155   : > { %2257 = vst [vmem:[%s3027_s17 + $0x180] sm:$0xff] %v1092_v36  ;;  %v3168_v36 = vpack.c.bf16 %v334_v9, %v330_v41 }
 0x157   : > { %v1093_v17 = vpop.f32.mrf.mxu3  ;;  %v829_v30 = vpop.f32.mrf.mxu0 }
 0x158   : > { %v1004_v60 = vpop.f32.mrf.mxu2  ;;  %v918_v37 = vpop.f32.mrf.mxu1 }
 0x159   : > { %v1005_v18 = vadd.f32 %v1004_v60, %v916_v8  ;;  %v919_v39 = vadd.f32 %v918_v37, %v829_v30  ;;  %v579_v60 = vld [vmem:[#allocation5 + $0x590] sm:$0xff] }
 0x15a   : > { %868 = vmatmul.bf16.gmra.mxu0 %v3166_v5  ;;  %957 = vmatmul.bf16.gmra.mxu1 %v3168_v36 }
 0x15b   : > { %v1094_v10 = vadd.f32 %v1093_v17, %v1005_v18  ;;  %v583_v18 = vld [vmem:[#allocation5 + $0x5b0] sm:$0xff]  ;;  %v580_v17 = vld [vmem:[#allocation5 + $0x598] sm:$0xff] }
 0x15c   : > { %1135 = vmatmul.bf16.gmra.mxu3 %v3172_v58  ;;  %v747_v37 = vpack.c.bf16 %v583_v18, %v579_v60 }
 0x15d   : > { %2261 = vst [vmem:[%s3027_s17 + $0x1a0] sm:$0xff] %v1094_v10  ;;  %1046 = vmatmul.bf16.gmra.mxu2 %v3170_v56  ;;  %v584_v10 = vld [vmem:[#allocation5 + $0x5b8] sm:$0xff] }
 0x15e   : > { %1676 = vmatpush.bf16.xpose.msra.mxu2 %v747_v37 }
 0x15f   : > { %v1096_v7 = vpop.f32.mrf.mxu3  ;;  %v831_v28 = vpop.f32.mrf.mxu0 }
 0x160   : > { %v1007_v8 = vpop.f32.mrf.mxu2  ;;  %v920_v29 = vpop.f32.mrf.mxu1 }
 0x161   : > { %v1008_v19 = vadd.f32 %v1007_v8, %v919_v39  ;;  %v921_v31 = vadd.f32 %v920_v29, %v831_v28  ;;  %v748_v8 = vpack.c.bf16 %v584_v10, %v580_v17 }
 0x163   : > { %v1097_v41 = vadd.f32 %v1096_v7, %v1008_v19  ;;  %1765 = vmatpush.bf16.xpose.msra.mxu3 %v748_v8 }
 0x165   : > { %2265 = vst [vmem:[%s3027_s17 + $0x1c0] sm:$0xff] %v1097_v41 }
 0x167   : > { %v1098_v38 = vpop.f32.mrf.mxu3  ;;  %v834_v61 = vpop.f32.mrf.mxu0 }
 0x168   : > { %v1009_v9 = vpop.f32.mrf.mxu2  ;;  %v923_v30 = vpop.f32.mrf.mxu1 }
 0x169   : > { %v1010_v11 = vadd.f32 %v1009_v9, %v921_v31  ;;  %v924_v16 = vadd.f32 %v923_v30, %v834_v61  ;;  %v577_v31 = vld [vmem:[#allocation5 + $0x580] sm:$0xff]  ;;  %v582_v61 = vld [vmem:[#allocation5 + $0x5a8] sm:$0xff] }
 0x16a   : > { %1149 = vmatmul.bf16.vlgmr.msrb.gmra.mxu0 %v2849_v52  ;;  %1238 = vmatmul.bf16.vlgmr.msrb.gmra.mxu1 %v2851_v53  ;;  %v581_v9 = vld [vmem:[#allocation5 + $0x5a0] sm:$0xff] }
 0x16b   : > { %v1099_v62 = vadd.f32 %v1098_v38, %v1010_v11  ;;  %v578_v11 = vld [vmem:[#allocation5 + $0x588] sm:$0xff]  ;;  %v745_v38 = vpack.c.bf16 %v581_v9, %v577_v31 }
 0x16c   : > { %1416 = vmatmul.bf16.vlgmr.msrb.gmra.mxu3 %v2855_v55 }
 0x16d   : > { %2269 = vst [vmem:[%s3027_s17 + $0x1e0] sm:$0xff] %v1099_v62  ;;  %1327 = vmatmul.bf16.vlgmr.msrb.gmra.mxu2 %v2853_v54  ;;  %v746_v62 = vpack.c.bf16 %v582_v61, %v578_v11  ;;  %1498 = vmatpush.bf16.xpose.msra.mxu0 %v745_v38 }
 0x16f   : > { %v1101_v7 = vpop.f32.mrf.mxu3  ;;  %v836_v28 = vpop.f32.mrf.mxu0  ;;  %1587 = vmatpush.bf16.xpose.msra.mxu1 %v746_v62 }
 0x170   : > { %v1012_v39 = vpop.f32.mrf.mxu2  ;;  %v925_v29 = vpop.f32.mrf.mxu1 }
 0x171   : > { %v1013_v19 = vadd.f32 %v1012_v39, %v924_v16  ;;  %v926_v30 = vadd.f32 %v925_v29, %v836_v28 }
 0x173   : > { %v1102_v41 = vadd.f32 %v1101_v7, %v1013_v19 }
 0x175   : > { %2273 = vst [vmem:[%s3027_s17 + $0x200] sm:$0xff] %v1102_v41 }
 0x177   : > { %v1103_v17 = vpop.f32.mrf.mxu3  ;;  %v839_v16 = vpop.f32.mrf.mxu0 }
 0x178   : > { %v1014_v60 = vpop.f32.mrf.mxu2  ;;  %v928_v37 = vpop.f32.mrf.mxu1 }
 0x179   : > { %v1015_v18 = vadd.f32 %v1014_v60, %v926_v30  ;;  %v929_v39 = vadd.f32 %v928_v37, %v839_v16  ;;  %v572_v16 = vld [vmem:[#allocation5 + $0x558] sm:$0xff] }
 0x17a   : > { %1154 = vmatmul.bf16.gmra.mxu0 %v2869_v12  ;;  %1243 = vmatmul.bf16.gmra.mxu1 %v2871_v13 }
 0x17b   : > { %v1104_v10 = vadd.f32 %v1103_v17, %v1015_v18  ;;  %v571_v18 = vld [vmem:[#allocation5 + $0x550] sm:$0xff] }
 0x17c   : > { %1421 = vmatmul.bf16.gmra.mxu3 %v2875_v15  ;;  %v575_v17 = vld [vmem:[#allocation5 + $0x570] sm:$0xff] }
 0x17d   : > { %2277 = vst [vmem:[%s3027_s17 + $0x220] sm:$0xff] %v1104_v10  ;;  %1332 = vmatmul.bf16.gmra.mxu2 %v2873_v14  ;;  %v743_v37 = vpack.c.bf16 %v575_v17, %v571_v18  ;;  %v576_v10 = vld [vmem:[#allocation5 + $0x578] sm:$0xff] }
 0x17f   : > { %v1106_v7 = vpop.f32.mrf.mxu3  ;;  %v841_v28 = vpop.f32.mrf.mxu0  ;;  %1677 = vmatpush.bf16.xpose.msra.mxu2 %v743_v37 }
 0x180   : > { %v1017_v8 = vpop.f32.mrf.mxu2  ;;  %v930_v29 = vpop.f32.mrf.mxu1 }
 0x181   : > { %v1018_v19 = vadd.f32 %v1017_v8, %v929_v39  ;;  %v931_v31 = vadd.f32 %v930_v29, %v841_v28  ;;  %v744_v8 = vpack.c.bf16 %v576_v10, %v572_v16 }
 0x183   : > { %v1107_v41 = vadd.f32 %v1106_v7, %v1018_v19  ;;  %1766 = vmatpush.bf16.xpose.msra.mxu3 %v744_v8 }
 0x185   : > { %2281 = vst [vmem:[%s3027_s17 + $0x240] sm:$0xff] %v1107_v41 }
 0x187   : > { %v1108_v38 = vpop.f32.mrf.mxu3  ;;  %v844_v61 = vpop.f32.mrf.mxu0 }
 0x188   : > { %v1019_v9 = vpop.f32.mrf.mxu2  ;;  %v933_v30 = vpop.f32.mrf.mxu1 }
 0x189   : > { %v1020_v11 = vadd.f32 %v1019_v9, %v931_v31  ;;  %v934_v60 = vadd.f32 %v933_v30, %v844_v61  ;;  %v569_v31 = vld [vmem:[#allocation5 + $0x540] sm:$0xff]  ;;  %v574_v61 = vld [vmem:[#allocation5 + $0x568] sm:$0xff] }
 0x18a   : > { %1159 = vmatmul.bf16.gmra.mxu0 %v2889_v24  ;;  %1248 = vmatmul.bf16.gmra.mxu1 %v2891_v25  ;;  %v573_v9 = vld [vmem:[#allocation5 + $0x560] sm:$0xff] }
 0x18b   : > { %v1109_v62 = vadd.f32 %v1108_v38, %v1020_v11  ;;  %v570_v11 = vld [vmem:[#allocation5 + $0x548] sm:$0xff]  ;;  %v741_v38 = vpack.c.bf16 %v573_v9, %v569_v31 }
 0x18c   : > { %1426 = vmatmul.bf16.gmra.mxu3 %v2895_v27 }
 0x18d   : > { %2285 = vst [vmem:[%s3027_s17 + $0x260] sm:$0xff] %v1109_v62  ;;  %1337 = vmatmul.bf16.gmra.mxu2 %v2893_v26  ;;  %v742_v62 = vpack.c.bf16 %v574_v61, %v570_v11  ;;  %1499 = vmatpush.bf16.xpose.msra.mxu0 %v741_v38 }
 0x18f   : > { %v1111_v7 = vpop.f32.mrf.mxu3  ;;  %v846_v28 = vpop.f32.mrf.mxu0  ;;  %1588 = vmatpush.bf16.xpose.msra.mxu1 %v742_v62 }
 0x190   : > { %v1022_v39 = vpop.f32.mrf.mxu2  ;;  %v935_v29 = vpop.f32.mrf.mxu1 }
 0x191   : > { %v1023_v19 = vadd.f32 %v1022_v39, %v934_v60  ;;  %v936_v30 = vadd.f32 %v935_v29, %v846_v28 }
 0x193   : > { %v1112_v41 = vadd.f32 %v1111_v7, %v1023_v19 }
 0x195   : > { %2289 = vst [vmem:[%s3027_s17 + $0x280] sm:$0xff] %v1112_v41 }
 0x197   : > { %v1113_v16 = vpop.f32.mrf.mxu3  ;;  %v849_v60 = vpop.f32.mrf.mxu0 }
 0x198   : > { %v1024_v18 = vpop.f32.mrf.mxu2  ;;  %v938_v37 = vpop.f32.mrf.mxu1 }
 0x199   : > { %v1025_v17 = vadd.f32 %v1024_v18, %v936_v30  ;;  %v939_v39 = vadd.f32 %v938_v37, %v849_v60  ;;  %v564_v60 = vld [vmem:[#allocation5 + $0x518] sm:$0xff] }
 0x19a   : > { %1164 = vmatmul.bf16.gmra.mxu0 %v2909_v48  ;;  %1253 = vmatmul.bf16.gmra.mxu1 %v2911_v49 }
 0x19b   : > { %v1114_v10 = vadd.f32 %v1113_v16, %v1025_v17  ;;  %v563_v17 = vld [vmem:[#allocation5 + $0x510] sm:$0xff] }
 0x19c   : > { %1431 = vmatmul.bf16.gmra.mxu3 %v2915_v51  ;;  %v567_v16 = vld [vmem:[#allocation5 + $0x530] sm:$0xff] }
 0x19d   : > { %2293 = vst [vmem:[%s3027_s17 + $0x2a0] sm:$0xff] %v1114_v10  ;;  %1342 = vmatmul.bf16.gmra.mxu2 %v2913_v50  ;;  %v739_v37 = vpack.c.bf16 %v567_v16, %v563_v17  ;;  %v568_v10 = vld [vmem:[#allocation5 + $0x538] sm:$0xff] }
 0x19f   : > { %v1116_v7 = vpop.f32.mrf.mxu3  ;;  %v851_v28 = vpop.f32.mrf.mxu0  ;;  %1678 = vmatpush.bf16.xpose.msra.mxu2 %v739_v37 }
 0x1a0   : > { %v1027_v8 = vpop.f32.mrf.mxu2  ;;  %v940_v29 = vpop.f32.mrf.mxu1 }
 0x1a1   : > { %v1028_v19 = vadd.f32 %v1027_v8, %v939_v39  ;;  %v941_v31 = vadd.f32 %v940_v29, %v851_v28  ;;  %v740_v8 = vpack.c.bf16 %v568_v10, %v564_v60 }
 0x1a3   : > { %v1117_v41 = vadd.f32 %v1116_v7, %v1028_v19  ;;  %1767 = vmatpush.bf16.xpose.msra.mxu3 %v740_v8 }
 0x1a5   : > { %2297 = vst [vmem:[%s3027_s17 + $0x2c0] sm:$0xff] %v1117_v41 }
 0x1a7   : > { %v1118_v38 = vpop.f32.mrf.mxu3  ;;  %v854_v61 = vpop.f32.mrf.mxu0 }
 0x1a8   : > { %v1029_v9 = vpop.f32.mrf.mxu2  ;;  %v943_v30 = vpop.f32.mrf.mxu1 }
 0x1a9   : > { %v1030_v11 = vadd.f32 %v1029_v9, %v941_v31  ;;  %v944_v18 = vadd.f32 %v943_v30, %v854_v61  ;;  %v561_v31 = vld [vmem:[#allocation5 + $0x500] sm:$0xff]  ;;  %v566_v61 = vld [vmem:[#allocation5 + $0x528] sm:$0xff] }
 0x1aa   : > { %1169 = vmatmul.bf16.gmra.mxu0 %v2929_v0  ;;  %1258 = vmatmul.bf16.gmra.mxu1 %v2931_v1  ;;  %v565_v9 = vld [vmem:[#allocation5 + $0x520] sm:$0xff] }
 0x1ab   : > { %v1119_v62 = vadd.f32 %v1118_v38, %v1030_v11  ;;  %v562_v11 = vld [vmem:[#allocation5 + $0x508] sm:$0xff]  ;;  %v737_v38 = vpack.c.bf16 %v565_v9, %v561_v31 }
 0x1ac   : > { %1436 = vmatmul.bf16.gmra.mxu3 %v2935_v3 }
 0x1ad   : > { %2301 = vst [vmem:[%s3027_s17 + $0x2e0] sm:$0xff] %v1119_v62  ;;  %1347 = vmatmul.bf16.gmra.mxu2 %v2933_v2  ;;  %v738_v62 = vpack.c.bf16 %v566_v61, %v562_v11  ;;  %1500 = vmatpush.bf16.xpose.msra.mxu0 %v737_v38 }
 0x1af   : > { %v1121_v7 = vpop.f32.mrf.mxu3  ;;  %v856_v28 = vpop.f32.mrf.mxu0  ;;  %1589 = vmatpush.bf16.xpose.msra.mxu1 %v738_v62 }
 0x1b0   : > { %v1032_v39 = vpop.f32.mrf.mxu2  ;;  %v945_v29 = vpop.f32.mrf.mxu1 }
 0x1b1   : > { %v1033_v19 = vadd.f32 %v1032_v39, %v944_v18  ;;  %v946_v30 = vadd.f32 %v945_v29, %v856_v28 }
 0x1b3   : > { %v1122_v41 = vadd.f32 %v1121_v7, %v1033_v19 }
 0x1b5   : > { %2305 = vst [vmem:[%s3027_s17 + $0x300] sm:$0xff] %v1122_v41 }
 0x1b7   : > { %v1123_v60 = vpop.f32.mrf.mxu3  ;;  %v859_v18 = vpop.f32.mrf.mxu0 }
 0x1b8   : > { %v1034_v17 = vpop.f32.mrf.mxu2  ;;  %v948_v37 = vpop.f32.mrf.mxu1 }
 0x1b9   : > { %v1035_v16 = vadd.f32 %v1034_v17, %v946_v30  ;;  %v949_v39 = vadd.f32 %v948_v37, %v859_v18  ;;  %v556_v18 = vld [vmem:[#allocation5 + $0x4d8] sm:$0xff] }
 0x1ba   : > { %1174 = vmatmul.bf16.gmra.mxu0 %v2949_v32  ;;  %1263 = vmatmul.bf16.gmra.mxu1 %v2951_v33 }
 0x1bb   : > { %v1124_v10 = vadd.f32 %v1123_v60, %v1035_v16  ;;  %v555_v16 = vld [vmem:[#allocation5 + $0x4d0] sm:$0xff] }
 0x1bc   : > { %1441 = vmatmul.bf16.gmra.mxu3 %v2955_v35  ;;  %v559_v60 = vld [vmem:[#allocation5 + $0x4f0] sm:$0xff] }
 0x1bd   : > { %2309 = vst [vmem:[%s3027_s17 + $0x320] sm:$0xff] %v1124_v10  ;;  %1352 = vmatmul.bf16.gmra.mxu2 %v2953_v34  ;;  %v735_v37 = vpack.c.bf16 %v559_v60, %v555_v16  ;;  %v560_v10 = vld [vmem:[#allocation5 + $0x4f8] sm:$0xff] }
 0x1bf   : > { %v1126_v7 = vpop.f32.mrf.mxu3  ;;  %v861_v28 = vpop.f32.mrf.mxu0  ;;  %1679 = vmatpush.bf16.xpose.msra.mxu2 %v735_v37 }
 0x1c0   : > { %v1037_v8 = vpop.f32.mrf.mxu2  ;;  %v950_v29 = vpop.f32.mrf.mxu1 }
 0x1c1   : > { %v1038_v19 = vadd.f32 %v1037_v8, %v949_v39  ;;  %v951_v31 = vadd.f32 %v950_v29, %v861_v28  ;;  %v736_v8 = vpack.c.bf16 %v560_v10, %v556_v18 }
 0x1c3   : > { %v1127_v41 = vadd.f32 %v1126_v7, %v1038_v19  ;;  %1768 = vmatpush.bf16.xpose.msra.mxu3 %v736_v8 }
 0x1c5   : > { %2313 = vst [vmem:[%s3027_s17 + $0x340] sm:$0xff] %v1127_v41 }
 0x1c7   : > { %v1128_v38 = vpop.f32.mrf.mxu3  ;;  %v864_v61 = vpop.f32.mrf.mxu0 }
 0x1c8   : > { %v1039_v9 = vpop.f32.mrf.mxu2  ;;  %v953_v30 = vpop.f32.mrf.mxu1 }
 0x1c9   : > { %v1040_v11 = vadd.f32 %v1039_v9, %v951_v31  ;;  %v954_v17 = vadd.f32 %v953_v30, %v864_v61  ;;  %v553_v31 = vld [vmem:[#allocation5 + $0x4c0] sm:$0xff]  ;;  %v558_v61 = vld [vmem:[#allocation5 + $0x4e8] sm:$0xff] }
 0x1ca   : > { %1179 = vmatmul.bf16.gmra.mxu0 %v2969_v44  ;;  %1268 = vmatmul.bf16.gmra.mxu1 %v2971_v45  ;;  %v557_v9 = vld [vmem:[#allocation5 + $0x4e0] sm:$0xff] }
 0x1cb   : > { %v1129_v62 = vadd.f32 %v1128_v38, %v1040_v11  ;;  %v554_v11 = vld [vmem:[#allocation5 + $0x4c8] sm:$0xff]  ;;  %v733_v38 = vpack.c.bf16 %v557_v9, %v553_v31 }
 0x1cc   : > { %1446 = vmatmul.bf16.gmra.mxu3 %v2975_v47 }
 0x1cd   : > { %2317 = vst [vmem:[%s3027_s17 + $0x360] sm:$0xff] %v1129_v62  ;;  %1357 = vmatmul.bf16.gmra.mxu2 %v2973_v46  ;;  %v734_v62 = vpack.c.bf16 %v558_v61, %v554_v11  ;;  %1501 = vmatpush.bf16.xpose.msra.mxu0 %v733_v38 }
 0x1cf   : > { %v1131_v7 = vpop.f32.mrf.mxu3  ;;  %v866_v28 = vpop.f32.mrf.mxu0  ;;  %1590 = vmatpush.bf16.xpose.msra.mxu1 %v734_v62 }
 0x1d0   : > { %v1042_v39 = vpop.f32.mrf.mxu2  ;;  %v955_v29 = vpop.f32.mrf.mxu1 }
 0x1d1   : > { %v1043_v19 = vadd.f32 %v1042_v39, %v954_v17  ;;  %v956_v30 = vadd.f32 %v955_v29, %v866_v28 }
 0x1d3   : > { %v1132_v41 = vadd.f32 %v1131_v7, %v1043_v19 }
 0x1d5   : > { %2321 = vst [vmem:[%s3027_s17 + $0x380] sm:$0xff] %v1132_v41 }
 0x1d7   : > { %v1133_v18 = vpop.f32.mrf.mxu3  ;;  %v869_v17 = vpop.f32.mrf.mxu0 }
 0x1d8   : > { %v1044_v16 = vpop.f32.mrf.mxu2  ;;  %v958_v37 = vpop.f32.mrf.mxu1 }
 0x1d9   : > { %v1045_v60 = vadd.f32 %v1044_v16, %v956_v30  ;;  %v959_v39 = vadd.f32 %v958_v37, %v869_v17  ;;  %v548_v17 = vld [vmem:[#allocation5 + $0x498] sm:$0xff] }
 0x1da   : > { %1184 = vmatmul.bf16.gmra.mxu0 %v2989_v20  ;;  %1273 = vmatmul.bf16.gmra.mxu1 %v2991_v21 }
 0x1db   : > { %v1134_v10 = vadd.f32 %v1133_v18, %v1045_v60  ;;  %v547_v60 = vld [vmem:[#allocation5 + $0x490] sm:$0xff] }
 0x1dc   : > { %1451 = vmatmul.bf16.gmra.mxu3 %v2995_v23  ;;  %v551_v18 = vld [vmem:[#allocation5 + $0x4b0] sm:$0xff] }
 0x1dd   : > { %2325 = vst [vmem:[%s3027_s17 + $0x3a0] sm:$0xff] %v1134_v10  ;;  %1362 = vmatmul.bf16.gmra.mxu2 %v2993_v22  ;;  %v731_v37 = vpack.c.bf16 %v551_v18, %v547_v60  ;;  %v552_v10 = vld [vmem:[#allocation5 + $0x4b8] sm:$0xff] }
 0x1df   : > { %v1136_v7 = vpop.f32.mrf.mxu3  ;;  %v871_v28 = vpop.f32.mrf.mxu0  ;;  %1680 = vmatpush.bf16.xpose.msra.mxu2 %v731_v37 }
 0x1e0   : > { %v1047_v8 = vpop.f32.mrf.mxu2  ;;  %v960_v29 = vpop.f32.mrf.mxu1 }
 0x1e1   : > { %v1048_v19 = vadd.f32 %v1047_v8, %v959_v39  ;;  %v961_v31 = vadd.f32 %v960_v29, %v871_v28  ;;  %v732_v8 = vpack.c.bf16 %v552_v10, %v548_v17 }
 0x1e3   : > { %v1137_v41 = vadd.f32 %v1136_v7, %v1048_v19  ;;  %1769 = vmatpush.bf16.xpose.msra.mxu3 %v732_v8 }
 0x1e5   : > { %2329 = vst [vmem:[%s3027_s17 + $0x3c0] sm:$0xff] %v1137_v41 }
 0x1e7   : > { %v1138_v38 = vpop.f32.mrf.mxu3  ;;  %v1150_v61 = vpop.f32.mrf.mxu0 }
 0x1e8   : > { %v1049_v9 = vpop.f32.mrf.mxu2  ;;  %v1239_v30 = vpop.f32.mrf.mxu1 }
 0x1e9   : > { %v1050_v11 = vadd.f32 %v1049_v9, %v961_v31  ;;  %v1240_v16 = vadd.f32 %v1239_v30, %v1150_v61  ;;  %v545_v31 = vld [vmem:[#allocation5 + $0x480] sm:$0xff]  ;;  %v550_v61 = vld [vmem:[#allocation5 + $0x4a8] sm:$0xff] }
 0x1ea   : > { %1189 = vmatmul.bf16.gmra.mxu0 %v3009_v40  ;;  %1278 = vmatmul.bf16.gmra.mxu1 %v3011_v42  ;;  %v549_v9 = vld [vmem:[#allocation5 + $0x4a0] sm:$0xff] }
 0x1eb   : > { %v1139_v62 = vadd.f32 %v1138_v38, %v1050_v11  ;;  %v546_v11 = vld [vmem:[#allocation5 + $0x488] sm:$0xff]  ;;  %v729_v38 = vpack.c.bf16 %v549_v9, %v545_v31 }
 0x1ec   : > { %1456 = vmatmul.bf16.gmra.mxu3 %v3015_v57 }
 0x1ed   : > { %2333 = vst [vmem:[%s3027_s17 + $0x3e0] sm:$0xff] %v1139_v62  ;;  %1367 = vmatmul.bf16.gmra.mxu2 %v3013_v43  ;;  %v730_v62 = vpack.c.bf16 %v550_v61, %v546_v11  ;;  %1502 = vmatpush.bf16.xpose.msra.mxu0 %v729_v38 }
 0x1ef   : > { %v1417_v7 = vpop.f32.mrf.mxu3  ;;  %v1152_v28 = vpop.f32.mrf.mxu0  ;;  %1591 = vmatpush.bf16.xpose.msra.mxu1 %v730_v62 }
 0x1f0   : > { %v1328_v39 = vpop.f32.mrf.mxu2  ;;  %v1241_v29 = vpop.f32.mrf.mxu1 }
 0x1f1   : > { %v1329_v19 = vadd.f32 %v1328_v39, %v1240_v16  ;;  %v1242_v30 = vadd.f32 %v1241_v29, %v1152_v28 }
 0x1f3   : > { %v1418_v41 = vadd.f32 %v1417_v7, %v1329_v19 }
 0x1f5   : > { %2210 = vst [vmem:[%s3027_s17 + $0x8] sm:$0xff] %v1418_v41 }
 0x1f7   : > { %v1419_v17 = vpop.f32.mrf.mxu3  ;;  %v1155_v16 = vpop.f32.mrf.mxu0 }
 0x1f8   : > { %v1330_v60 = vpop.f32.mrf.mxu2  ;;  %v1244_v37 = vpop.f32.mrf.mxu1 }
 0x1f9   : > { %v1331_v18 = vadd.f32 %v1330_v60, %v1242_v30  ;;  %v1245_v39 = vadd.f32 %v1244_v37, %v1155_v16  ;;  %v3594_v60 = vld [vmem:[#allocation11_spill] sm:$0xff]  ;;  %v3596_v16 = vld [vmem:[#allocation13_spill] sm:$0xff]  ;;  %v3597_v37 = vld [vmem:[#allocation14_spill] sm:$0xff] }
 0x1fa   : > { %1194 = vmatmul.bf16.gmra.mxu0 %v3034_v59  ;;  %1283 = vmatmul.bf16.gmra.mxu1 %v3036_v63 }
 0x1fb   : > { %v1420_v10 = vadd.f32 %v1419_v17, %v1331_v18  ;;  %v3595_v17 = vld [vmem:[#allocation12_spill] sm:$0xff] }
 0x1fc   : > { %1461 = vmatmul.bf16.gmra.mxu3 %v3040_v6 }
 0x1fd   : > { %2214 = vst [vmem:[%s3027_s17 + $0x28] sm:$0xff] %v1420_v10  ;;  %1372 = vmatmul.bf16.gmra.mxu2 %v3038_v4  ;;  %v539_v10 = vld [vmem:[#allocation5 + $0x450] sm:$0xff] }
 0x1ff   : > { %v1422_v7 = vpop.f32.mrf.mxu3  ;;  %v1157_v28 = vpop.f32.mrf.mxu0 }
 0x200   : > { %v1333_v8 = vpop.f32.mrf.mxu2  ;;  %v1246_v29 = vpop.f32.mrf.mxu1 }
 0x201   : > { %v1334_v19 = vadd.f32 %v1333_v8, %v1245_v39  ;;  %v1247_v31 = vadd.f32 %v1246_v29, %v1157_v28  ;;  %v543_v39 = vld [vmem:[#allocation5 + $0x470] sm:$0xff]  ;;  %v540_v8 = vld [vmem:[#allocation5 + $0x458] sm:$0xff] }
 0x203   : > { %v1423_v41 = vadd.f32 %v1422_v7, %v1334_v19  ;;  %v727_v19 = vpack.c.bf16 %v543_v39, %v539_v10  ;;  %v544_v7 = vld [vmem:[#allocation5 + $0x478] sm:$0xff] }
 0x204   : > { %v728_v29 = vpack.c.bf16 %v544_v7, %v540_v8 }
 0x205   : > { %2218 = vst [vmem:[%s3027_s17 + $0x48] sm:$0xff] %v1423_v41  ;;  %1681 = vmatpush.bf16.xpose.msra.mxu2 %v727_v19 }
 0x206   : > { %1770 = vmatpush.bf16.xpose.msra.mxu3 %v728_v29 }
 0x207   : > { %v1424_v38 = vpop.f32.mrf.mxu3  ;;  %v1160_v61 = vpop.f32.mrf.mxu0 }
 0x208   : > { %v1335_v9 = vpop.f32.mrf.mxu2  ;;  %v1249_v30 = vpop.f32.mrf.mxu1 }
 0x209   : > { %v1336_v11 = vadd.f32 %v1335_v9, %v1247_v31  ;;  %v1250_v18 = vadd.f32 %v1249_v30, %v1160_v61  ;;  %v537_v61 = vld [vmem:[#allocation5 + $0x440] sm:$0xff] }
 0x20a   : > { %1199 = vmatmul.bf16.gmra.mxu0 %v3594_v60  ;;  %1288 = vmatmul.bf16.gmra.mxu1 %v3595_v17  ;;  %v541_v30 = vld [vmem:[#allocation5 + $0x460] sm:$0xff] }
 0x20b   : > { %v1425_v62 = vadd.f32 %v1424_v38, %v1336_v11 }
 0x20c   : > { %1466 = vmatmul.bf16.gmra.mxu3 %v3597_v37  ;;  %v725_v37 = vpack.c.bf16 %v541_v30, %v537_v61 }
 0x20d   : > { %2222 = vst [vmem:[%s3027_s17 + $0x68] sm:$0xff] %v1425_v62  ;;  %1377 = vmatmul.bf16.gmra.mxu2 %v3596_v16  ;;  %v538_v62 = vld [vmem:[#allocation5 + $0x448] sm:$0xff] }
 0x20e   : > { %v542_v16 = vld [vmem:[#allocation5 + $0x468] sm:$0xff]  ;;  %1503 = vmatpush.bf16.xpose.msra.mxu0 %v725_v37 }
 0x20f   : > { %v1427_v31 = vpop.f32.mrf.mxu3  ;;  %v1162_v9 = vpop.f32.mrf.mxu0  ;;  %v726_v60 = vpack.c.bf16 %v542_v16, %v538_v62 }
 0x210   : > { %v1338_v28 = vpop.f32.mrf.mxu2  ;;  %v1251_v11 = vpop.f32.mrf.mxu1 }
 0x211   : > { %v1339_v41 = vadd.f32 %v1338_v28, %v1250_v18  ;;  %v1252_v17 = vadd.f32 %v1251_v11, %v1162_v9  ;;  %1592 = vmatpush.bf16.xpose.msra.mxu1 %v726_v60  ;;  %v3598_v28 = vld [vmem:[#allocation15_spill] sm:$0xff] }
 0x213   : > { %v1428_v38 = vadd.f32 %v1427_v31, %v1339_v41  ;;  %v3599_v41 = vld [vmem:[#allocation16_spill] sm:$0xff]  ;;  %v3600_v31 = vld [vmem:[#allocation17_spill] sm:$0xff] }
 0x215   : > { %2226 = vst [vmem:[%s3027_s17 + $0x88] sm:$0xff] %v1428_v38  ;;  %v3601_v38 = vld [vmem:[#allocation18_spill] sm:$0xff] }
 0x217   : > { %v1429_v8 = vpop.f32.mrf.mxu3  ;;  %v1165_v18 = vpop.f32.mrf.mxu0 }
 0x218   : > { %v1340_v10 = vpop.f32.mrf.mxu2  ;;  %v1254_v19 = vpop.f32.mrf.mxu1 }
 0x219   : > { %v1341_v39 = vadd.f32 %v1340_v10, %v1252_v17  ;;  %v1255_v29 = vadd.f32 %v1254_v19, %v1165_v18  ;;  %v3602_v19 = vld [vmem:[#allocation19_spill] sm:$0xff] }
 0x21a   : > { %1204 = vmatmul.bf16.gmra.mxu0 %v3598_v28  ;;  %1293 = vmatmul.bf16.gmra.mxu1 %v3599_v41 }
 0x21b   : > { %v1430_v7 = vadd.f32 %v1429_v8, %v1341_v39 }
 0x21c   : > { %1471 = vmatmul.bf16.gmra.mxu3 %v3601_v38  ;;  %v3603_v38 = vld [vmem:[#allocation20_spill] sm:$0xff] }
 0x21d   : > { %2230 = vst [vmem:[%s3027_s17 + $0xa8] sm:$0xff] %v1430_v7  ;;  %1382 = vmatmul.bf16.gmra.mxu2 %v3600_v31  ;;  %v3604_v31 = vld [vmem:[#allocation21_spill] sm:$0xff] }
 0x21f   : > { %v1432_v17 = vpop.f32.mrf.mxu3  ;;  %v1167_v9 = vpop.f32.mrf.mxu0 }
 0x220   : > { %v1343_v16 = vpop.f32.mrf.mxu2  ;;  %v1256_v11 = vpop.f32.mrf.mxu1 }
 0x221   : > { %v1344_v37 = vadd.f32 %v1343_v16, %v1255_v29  ;;  %v1257_v60 = vadd.f32 %v1256_v11, %v1167_v9  ;;  %v3605_v29 = vld [vmem:[#allocation22_spill] sm:$0xff]  ;;  %v531_v16 = vld [vmem:[#allocation5 + $0x410] sm:$0xff] }
 0x222   : > { %v536_v11 = vld [vmem:[#allocation5 + $0x438] sm:$0xff] }
 0x223   : > { %v1433_v61 = vadd.f32 %v1432_v17, %v1344_v37  ;;  %v535_v37 = vld [vmem:[#allocation5 + $0x430] sm:$0xff]  ;;  %v532_v17 = vld [vmem:[#allocation5 + $0x418] sm:$0xff] }
 0x224   : > { %v723_v9 = vpack.c.bf16 %v535_v37, %v531_v16 }
 0x225   : > { %2234 = vst [vmem:[%s3027_s17 + $0xc8] sm:$0xff] %v1433_v61 }
 0x226   : > { %1682 = vmatpush.bf16.xpose.msra.mxu2 %v723_v9 }
 0x227   : > { %v1434_v10 = vpop.f32.mrf.mxu3  ;;  %v1170_v39 = vpop.f32.mrf.mxu0 }
 0x228   : > { %v1345_v30 = vpop.f32.mrf.mxu2  ;;  %v1259_v8 = vpop.f32.mrf.mxu1 }
 0x229   : > { %v1346_v62 = vadd.f32 %v1345_v30, %v1257_v60  ;;  %v1260_v7 = vadd.f32 %v1259_v8, %v1170_v39  ;;  %v724_v60 = vpack.c.bf16 %v536_v11, %v532_v17  ;;  %v529_v8 = vld [vmem:[#allocation5 + $0x400] sm:$0xff] }
 0x22a   : > { %1209 = vmatmul.bf16.gmra.mxu0 %v3602_v19  ;;  %1298 = vmatmul.bf16.gmra.mxu1 %v3603_v38  ;;  %v530_v38 = vld [vmem:[#allocation5 + $0x408] sm:$0xff] }
 0x22b   : > { %v1435_v18 = vadd.f32 %v1434_v10, %v1346_v62  ;;  %1771 = vmatpush.bf16.xpose.msra.mxu3 %v724_v60  ;;  %v534_v19 = vld [vmem:[#allocation5 + $0x428] sm:$0xff] }
 0x22c   : > { %1476 = vmatmul.bf16.gmra.mxu3 %v3605_v29  ;;  %v722_v28 = vpack.c.bf16 %v534_v19, %v530_v38 }
 0x22d   : > { %2238 = vst [vmem:[%s3027_s17 + $0xe8] sm:$0xff] %v1435_v18  ;;  %1387 = vmatmul.bf16.gmra.mxu2 %v3604_v31  ;;  %v533_v31 = vld [vmem:[#allocation5 + $0x420] sm:$0xff] }
 0x22e   : > { %v721_v29 = vpack.c.bf16 %v533_v31, %v529_v8  ;;  %1593 = vmatpush.bf16.xpose.msra.mxu1 %v722_v28  ;;  %v3609_v31 = vld [vmem:[#allocation26_spill] sm:$0xff] }
 0x22f   : > { %v1437_v62 = vpop.f32.mrf.mxu3  ;;  %v1172_v10 = vpop.f32.mrf.mxu0 }
 0x230   : > { %v1348_v61 = vpop.f32.mrf.mxu2  ;;  %v1261_v18 = vpop.f32.mrf.mxu1  ;;  %1504 = vmatpush.bf16.xpose.msra.mxu0 %v721_v29 }
 0x231   : > { %v1349_v30 = vadd.f32 %v1348_v61, %v1260_v7  ;;  %v1262_v41 = vadd.f32 %v1261_v18, %v1172_v10  ;;  %v3606_v61 = vld [vmem:[#allocation23_spill] sm:$0xff] }
 0x233   : > { %v1438_v39 = vadd.f32 %v1437_v62, %v1349_v30  ;;  %v3607_v30 = vld [vmem:[#allocation24_spill] sm:$0xff]  ;;  %v3608_v62 = vld [vmem:[#allocation25_spill] sm:$0xff] }
 0x235   : > { %2242 = vst [vmem:[%s3027_s17 + $0x108] sm:$0xff] %v1438_v39 }
 0x237   : > { %v1439_v17 = vpop.f32.mrf.mxu3  ;;  %v1175_v7 = vpop.f32.mrf.mxu0 }
 0x238   : > { %v1350_v16 = vpop.f32.mrf.mxu2  ;;  %v1264_v9 = vpop.f32.mrf.mxu1 }
 0x239   : > { %v1351_v37 = vadd.f32 %v1350_v16, %v1262_v41  ;;  %v1265_v60 = vadd.f32 %v1264_v9, %v1175_v7  ;;  %v3610_v9 = vld [vmem:[#allocation27_spill] sm:$0xff] }
 0x23a   : > { %1214 = vmatmul.bf16.gmra.mxu0 %v3606_v61  ;;  %1303 = vmatmul.bf16.gmra.mxu1 %v3607_v30 }
 0x23b   : > { %v1440_v11 = vadd.f32 %v1439_v17, %v1351_v37 }
 0x23c   : > { %1481 = vmatmul.bf16.gmra.mxu3 %v3609_v31  ;;  %v3611_v31 = vld [vmem:[#allocation28_spill] sm:$0xff] }
 0x23d   : > { %2246 = vst [vmem:[%s3027_s17 + $0x128] sm:$0xff] %v1440_v11  ;;  %1392 = vmatmul.bf16.gmra.mxu2 %v3608_v62  ;;  %v3612_v62 = vld [vmem:[#allocation29_spill] sm:$0xff] }
 0x23f   : > { %v1442_v41 = vpop.f32.mrf.mxu3  ;;  %v1177_v29 = vpop.f32.mrf.mxu0 }
 0x240   : > { %v1353_v38 = vpop.f32.mrf.mxu2  ;;  %v1266_v10 = vpop.f32.mrf.mxu1 }
 0x241   : > { %v1354_v19 = vadd.f32 %v1353_v38, %v1265_v60  ;;  %v1267_v28 = vadd.f32 %v1266_v10, %v1177_v29  ;;  %v3613_v60 = vld [vmem:[#allocation30_spill] sm:$0xff]  ;;  %v651_v38 = vld [vmem:[#allocation5 + $0x7d0] sm:$0xff] }
 0x242   : > { %v656_v10 = vld [vmem:[#allocation5 + $0x7f8] sm:$0xff] }
 0x243   : > { %v1443_v18 = vadd.f32 %v1442_v41, %v1354_v19  ;;  %v655_v19 = vld [vmem:[#allocation5 + $0x7f0] sm:$0xff]  ;;  %v652_v41 = vld [vmem:[#allocation5 + $0x7d8] sm:$0xff] }
 0x244   : > { %v783_v29 = vpack.c.bf16 %v655_v19, %v651_v38 }
 0x245   : > { %2250 = vst [vmem:[%s3027_s17 + $0x148] sm:$0xff] %v1443_v18 }
 0x246   : > { %2031 = vmatpush.bf16.xpose.msrb.mxu2 %v783_v29 }
 0x247   : > { %v1444_v16 = vpop.f32.mrf.mxu3  ;;  %v1180_v37 = vpop.f32.mrf.mxu0 }
 0x248   : > { %v1355_v39 = vpop.f32.mrf.mxu2  ;;  %v1269_v17 = vpop.f32.mrf.mxu1 }
 0x249   : > { %v1356_v8 = vadd.f32 %v1355_v39, %v1267_v28  ;;  %v1270_v11 = vadd.f32 %v1269_v17, %v1180_v37  ;;  %v784_v28 = vpack.c.bf16 %v656_v10, %v652_v41  ;;  %v649_v17 = vld [vmem:[#allocation5 + $0x7c0] sm:$0xff] }
 0x24a   : > { %1219 = vmatmul.bf16.gmra.mxu0 %v3610_v9  ;;  %1308 = vmatmul.bf16.gmra.mxu1 %v3611_v31  ;;  %v650_v31 = vld [vmem:[#allocation5 + $0x7c8] sm:$0xff] }
 0x24b   : > { %v1445_v7 = vadd.f32 %v1444_v16, %v1356_v8  ;;  %2120 = vmatpush.bf16.xpose.msrb.mxu3 %v784_v28  ;;  %v654_v9 = vld [vmem:[#allocation5 + $0x7e8] sm:$0xff] }
 0x24c   : > { %1486 = vmatmul.bf16.gmra.mxu3 %v3613_v60  ;;  %v782_v61 = vpack.c.bf16 %v654_v9, %v650_v31 }
 0x24d   : > { %2254 = vst [vmem:[%s3027_s17 + $0x168] sm:$0xff] %v1445_v7  ;;  %1397 = vmatmul.bf16.gmra.mxu2 %v3612_v62  ;;  %v653_v62 = vld [vmem:[#allocation5 + $0x7e0] sm:$0xff] }
 0x24e   : > { %v781_v60 = vpack.c.bf16 %v653_v62, %v649_v17  ;;  %1942 = vmatpush.bf16.xpose.msrb.mxu1 %v782_v61 }
 0x24f   : > { %v1447_v8 = vpop.f32.mrf.mxu3  ;;  %v1182_v16 = vpop.f32.mrf.mxu0 }
 0x250   : > { %v1358_v18 = vpop.f32.mrf.mxu2  ;;  %v1271_v7 = vpop.f32.mrf.mxu1  ;;  %1853 = vmatpush.bf16.xpose.msrb.mxu0 %v781_v60 }
 0x251   : > { %v1359_v39 = vadd.f32 %v1358_v18, %v1270_v11  ;;  %v1272_v30 = vadd.f32 %v1271_v7, %v1182_v16 }
 0x253   : > { %v1448_v37 = vadd.f32 %v1447_v8, %v1359_v39 }
 0x255   : > { %2258 = vst [vmem:[%s3027_s17 + $0x188] sm:$0xff] %v1448_v37 }
 0x257   : > { %v1449_v41 = vpop.f32.mrf.mxu3  ;;  %v1185_v11 = vpop.f32.mrf.mxu0 }
 0x258   : > { %v1360_v38 = vpop.f32.mrf.mxu2  ;;  %v1274_v29 = vpop.f32.mrf.mxu1 }
 0x259   : > { %v1361_v19 = vadd.f32 %v1360_v38, %v1272_v30  ;;  %v1275_v18 = vadd.f32 %v1274_v29, %v1185_v11  ;;  %v644_v11 = vld [vmem:[#allocation5 + $0x798] sm:$0xff] }
 0x25a   : > { %1224 = vmatmul.bf16.gmra.mxu0 %v3166_v5  ;;  %1313 = vmatmul.bf16.gmra.mxu1 %v3168_v36 }
 0x25b   : > { %v1450_v10 = vadd.f32 %v1449_v41, %v1361_v19  ;;  %v643_v19 = vld [vmem:[#allocation5 + $0x790] sm:$0xff] }
 0x25c   : > { %1491 = vmatmul.bf16.gmra.mxu3 %v3172_v58  ;;  %v647_v41 = vld [vmem:[#allocation5 + $0x7b0] sm:$0xff] }
 0x25d   : > { %2262 = vst [vmem:[%s3027_s17 + $0x1a8] sm:$0xff] %v1450_v10  ;;  %1402 = vmatmul.bf16.gmra.mxu2 %v3170_v56  ;;  %v779_v29 = vpack.c.bf16 %v647_v41, %v643_v19  ;;  %v648_v10 = vld [vmem:[#allocation5 + $0x7b8] sm:$0xff] }
 0x25f   : > { %v1452_v30 = vpop.f32.mrf.mxu3  ;;  %v1187_v9 = vpop.f32.mrf.mxu0  ;;  %2032 = vmatpush.bf16.xpose.msrb.mxu2 %v779_v29 }
 0x260   : > { %v1363_v62 = vpop.f32.mrf.mxu2  ;;  %v1276_v60 = vpop.f32.mrf.mxu1 }
 0x261   : > { %v1364_v31 = vadd.f32 %v1363_v62, %v1275_v18  ;;  %v1277_v61 = vadd.f32 %v1276_v60, %v1187_v9  ;;  %v780_v62 = vpack.c.bf16 %v648_v10, %v644_v11 }
 0x263   : > { %v1453_v28 = vadd.f32 %v1452_v30, %v1364_v31  ;;  %2121 = vmatpush.bf16.xpose.msrb.mxu3 %v780_v62 }
 0x265   : > { %2266 = vst [vmem:[%s3027_s17 + $0x1c8] sm:$0xff] %v1453_v28 }
 0x267   : > { %v1454_v16 = vpop.f32.mrf.mxu3  ;;  %v1190_v7 = vpop.f32.mrf.mxu0 }
 0x268   : > { %v1365_v39 = vpop.f32.mrf.mxu2  ;;  %v1279_v37 = vpop.f32.mrf.mxu1 }
 0x269   : > { %v1366_v8 = vadd.f32 %v1365_v39, %v1277_v61  ;;  %v1280_v38 = vadd.f32 %v1279_v37, %v1190_v7  ;;  %v641_v61 = vld [vmem:[#allocation5 + $0x780] sm:$0xff]  ;;  %v646_v7 = vld [vmem:[#allocation5 + $0x7a8] sm:$0xff] }
 0x26a   : > { %1505 = vmatmul.bf16.vlgmr.msra.gmra.mxu0 %v2849_v52  ;;  %1594 = vmatmul.bf16.vlgmr.msra.gmra.mxu1 %v2851_v53  ;;  %v645_v39 = vld [vmem:[#allocation5 + $0x7a0] sm:$0xff] }
 0x26b   : > { %v1455_v17 = vadd.f32 %v1454_v16, %v1366_v8  ;;  %v642_v8 = vld [vmem:[#allocation5 + $0x788] sm:$0xff]  ;;  %v777_v16 = vpack.c.bf16 %v645_v39, %v641_v61 }
 0x26c   : > { %1772 = vmatmul.bf16.vlgmr.msra.gmra.mxu3 %v2855_v55 }
 0x26d   : > { %2270 = vst [vmem:[%s3027_s17 + $0x1e8] sm:$0xff] %v1455_v17  ;;  %1683 = vmatmul.bf16.vlgmr.msra.gmra.mxu2 %v2853_v54  ;;  %v778_v17 = vpack.c.bf16 %v646_v7, %v642_v8  ;;  %1854 = vmatpush.bf16.xpose.msrb.mxu0 %v777_v16 }
 0x26f   : > { %v1457_v30 = vpop.f32.mrf.mxu3  ;;  %v1192_v9 = vpop.f32.mrf.mxu0  ;;  %1943 = vmatpush.bf16.xpose.msrb.mxu1 %v778_v17 }
 0x270   : > { %v1368_v18 = vpop.f32.mrf.mxu2  ;;  %v1281_v60 = vpop.f32.mrf.mxu1 }
 0x271   : > { %v1369_v31 = vadd.f32 %v1368_v18, %v1280_v38  ;;  %v1282_v37 = vadd.f32 %v1281_v60, %v1192_v9 }
 0x273   : > { %v1458_v28 = vadd.f32 %v1457_v30, %v1369_v31 }
 0x275   : > { %2274 = vst [vmem:[%s3027_s17 + $0x208] sm:$0xff] %v1458_v28 }
 0x277   : > { %v1459_v11 = vpop.f32.mrf.mxu3  ;;  %v1195_v38 = vpop.f32.mrf.mxu0 }
 0x278   : > { %v1370_v19 = vpop.f32.mrf.mxu2  ;;  %v1284_v29 = vpop.f32.mrf.mxu1 }
 0x279   : > { %v1371_v41 = vadd.f32 %v1370_v19, %v1282_v37  ;;  %v1285_v18 = vadd.f32 %v1284_v29, %v1195_v38  ;;  %v636_v38 = vld [vmem:[#allocation5 + $0x758] sm:$0xff] }
 0x27a   : > { %1510 = vmatmul.bf16.gmra.mxu0 %v2869_v12  ;;  %1599 = vmatmul.bf16.gmra.mxu1 %v2871_v13 }
 0x27b   : > { %v1460_v10 = vadd.f32 %v1459_v11, %v1371_v41  ;;  %v635_v41 = vld [vmem:[#allocation5 + $0x750] sm:$0xff] }
 0x27c   : > { %1777 = vmatmul.bf16.gmra.mxu3 %v2875_v15  ;;  %v639_v11 = vld [vmem:[#allocation5 + $0x770] sm:$0xff] }
 0x27d   : > { %2278 = vst [vmem:[%s3027_s17 + $0x228] sm:$0xff] %v1460_v10  ;;  %1688 = vmatmul.bf16.gmra.mxu2 %v2873_v14  ;;  %v775_v29 = vpack.c.bf16 %v639_v11, %v635_v41  ;;  %v640_v10 = vld [vmem:[#allocation5 + $0x778] sm:$0xff] }
 0x27f   : > { %v1462_v30 = vpop.f32.mrf.mxu3  ;;  %v1197_v9 = vpop.f32.mrf.mxu0  ;;  %2033 = vmatpush.bf16.xpose.msrb.mxu2 %v775_v29 }
 0x280   : > { %v1373_v62 = vpop.f32.mrf.mxu2  ;;  %v1286_v60 = vpop.f32.mrf.mxu1 }
 0x281   : > { %v1374_v31 = vadd.f32 %v1373_v62, %v1285_v18  ;;  %v1287_v61 = vadd.f32 %v1286_v60, %v1197_v9  ;;  %v776_v62 = vpack.c.bf16 %v640_v10, %v636_v38 }
 0x283   : > { %v1463_v28 = vadd.f32 %v1462_v30, %v1374_v31  ;;  %2122 = vmatpush.bf16.xpose.msrb.mxu3 %v776_v62 }
 0x285   : > { %2282 = vst [vmem:[%s3027_s17 + $0x248] sm:$0xff] %v1463_v28 }
 0x287   : > { %v1464_v16 = vpop.f32.mrf.mxu3  ;;  %v1200_v7 = vpop.f32.mrf.mxu0 }
 0x288   : > { %v1375_v39 = vpop.f32.mrf.mxu2  ;;  %v1289_v37 = vpop.f32.mrf.mxu1 }
 0x289   : > { %v1376_v8 = vadd.f32 %v1375_v39, %v1287_v61  ;;  %v1290_v19 = vadd.f32 %v1289_v37, %v1200_v7  ;;  %v633_v61 = vld [vmem:[#allocation5 + $0x740] sm:$0xff]  ;;  %v638_v7 = vld [vmem:[#allocation5 + $0x768] sm:$0xff] }
 0x28a   : > { %1515 = vmatmul.bf16.gmra.mxu0 %v2889_v24  ;;  %1604 = vmatmul.bf16.gmra.mxu1 %v2891_v25  ;;  %v637_v39 = vld [vmem:[#allocation5 + $0x760] sm:$0xff] }
 0x28b   : > { %v1465_v17 = vadd.f32 %v1464_v16, %v1376_v8  ;;  %v634_v8 = vld [vmem:[#allocation5 + $0x748] sm:$0xff]  ;;  %v773_v16 = vpack.c.bf16 %v637_v39, %v633_v61 }
 0x28c   : > { %1782 = vmatmul.bf16.gmra.mxu3 %v2895_v27 }
 0x28d   : > { %2286 = vst [vmem:[%s3027_s17 + $0x268] sm:$0xff] %v1465_v17  ;;  %1693 = vmatmul.bf16.gmra.mxu2 %v2893_v26  ;;  %v774_v17 = vpack.c.bf16 %v638_v7, %v634_v8  ;;  %1855 = vmatpush.bf16.xpose.msrb.mxu0 %v773_v16 }
 0x28f   : > { %v1467_v30 = vpop.f32.mrf.mxu3  ;;  %v1202_v9 = vpop.f32.mrf.mxu0  ;;  %1944 = vmatpush.bf16.xpose.msrb.mxu1 %v774_v17 }
 0x290   : > { %v1378_v18 = vpop.f32.mrf.mxu2  ;;  %v1291_v60 = vpop.f32.mrf.mxu1 }
 0x291   : > { %v1379_v31 = vadd.f32 %v1378_v18, %v1290_v19  ;;  %v1292_v37 = vadd.f32 %v1291_v60, %v1202_v9 }
 0x293   : > { %v1468_v28 = vadd.f32 %v1467_v30, %v1379_v31 }
 0x295   : > { %2290 = vst [vmem:[%s3027_s17 + $0x288] sm:$0xff] %v1468_v28 }
 0x297   : > { %v1469_v38 = vpop.f32.mrf.mxu3  ;;  %v1205_v19 = vpop.f32.mrf.mxu0 }
 0x298   : > { %v1380_v41 = vpop.f32.mrf.mxu2  ;;  %v1294_v29 = vpop.f32.mrf.mxu1 }
 0x299   : > { %v1381_v11 = vadd.f32 %v1380_v41, %v1292_v37  ;;  %v1295_v18 = vadd.f32 %v1294_v29, %v1205_v19  ;;  %v628_v19 = vld [vmem:[#allocation5 + $0x718] sm:$0xff] }
 0x29a   : > { %1520 = vmatmul.bf16.gmra.mxu0 %v2909_v48  ;;  %1609 = vmatmul.bf16.gmra.mxu1 %v2911_v49 }
 0x29b   : > { %v1470_v10 = vadd.f32 %v1469_v38, %v1381_v11  ;;  %v627_v11 = vld [vmem:[#allocation5 + $0x710] sm:$0xff] }
 0x29c   : > { %1787 = vmatmul.bf16.gmra.mxu3 %v2915_v51  ;;  %v631_v38 = vld [vmem:[#allocation5 + $0x730] sm:$0xff] }
 0x29d   : > { %2294 = vst [vmem:[%s3027_s17 + $0x2a8] sm:$0xff] %v1470_v10  ;;  %1698 = vmatmul.bf16.gmra.mxu2 %v2913_v50  ;;  %v771_v29 = vpack.c.bf16 %v631_v38, %v627_v11  ;;  %v632_v10 = vld [vmem:[#allocation5 + $0x738] sm:$0xff] }
 0x29f   : > { %v1472_v30 = vpop.f32.mrf.mxu3  ;;  %v1207_v9 = vpop.f32.mrf.mxu0  ;;  %2034 = vmatpush.bf16.xpose.msrb.mxu2 %v771_v29 }
 0x2a0   : > { %v1383_v62 = vpop.f32.mrf.mxu2  ;;  %v1296_v60 = vpop.f32.mrf.mxu1 }
 0x2a1   : > { %v1384_v31 = vadd.f32 %v1383_v62, %v1295_v18  ;;  %v1297_v61 = vadd.f32 %v1296_v60, %v1207_v9  ;;  %v772_v62 = vpack.c.bf16 %v632_v10, %v628_v19 }
 0x2a3   : > { %v1473_v28 = vadd.f32 %v1472_v30, %v1384_v31  ;;  %2123 = vmatpush.bf16.xpose.msrb.mxu3 %v772_v62 }
 0x2a5   : > { %2298 = vst [vmem:[%s3027_s17 + $0x2c8] sm:$0xff] %v1473_v28 }
 0x2a7   : > { %v1474_v16 = vpop.f32.mrf.mxu3  ;;  %v1210_v7 = vpop.f32.mrf.mxu0 }
 0x2a8   : > { %v1385_v39 = vpop.f32.mrf.mxu2  ;;  %v1299_v37 = vpop.f32.mrf.mxu1 }
 0x2a9   : > { %v1386_v8 = vadd.f32 %v1385_v39, %v1297_v61  ;;  %v1300_v41 = vadd.f32 %v1299_v37, %v1210_v7  ;;  %v625_v61 = vld [vmem:[#allocation5 + $0x700] sm:$0xff]  ;;  %v630_v7 = vld [vmem:[#allocation5 + $0x728] sm:$0xff] }
 0x2aa   : > { %1525 = vmatmul.bf16.gmra.mxu0 %v2929_v0  ;;  %1614 = vmatmul.bf16.gmra.mxu1 %v2931_v1  ;;  %v629_v39 = vld [vmem:[#allocation5 + $0x720] sm:$0xff] }
 0x2ab   : > { %v1475_v17 = vadd.f32 %v1474_v16, %v1386_v8  ;;  %v626_v8 = vld [vmem:[#allocation5 + $0x708] sm:$0xff]  ;;  %v769_v16 = vpack.c.bf16 %v629_v39, %v625_v61 }
 0x2ac   : > { %1792 = vmatmul.bf16.gmra.mxu3 %v2935_v3 }
 0x2ad   : > { %2302 = vst [vmem:[%s3027_s17 + $0x2e8] sm:$0xff] %v1475_v17  ;;  %1703 = vmatmul.bf16.gmra.mxu2 %v2933_v2  ;;  %v770_v17 = vpack.c.bf16 %v630_v7, %v626_v8  ;;  %1856 = vmatpush.bf16.xpose.msrb.mxu0 %v769_v16 }
 0x2af   : > { %v1477_v30 = vpop.f32.mrf.mxu3  ;;  %v1212_v9 = vpop.f32.mrf.mxu0  ;;  %1945 = vmatpush.bf16.xpose.msrb.mxu1 %v770_v17 }
 0x2b0   : > { %v1388_v18 = vpop.f32.mrf.mxu2  ;;  %v1301_v60 = vpop.f32.mrf.mxu1 }
 0x2b1   : > { %v1389_v31 = vadd.f32 %v1388_v18, %v1300_v41  ;;  %v1302_v37 = vadd.f32 %v1301_v60, %v1212_v9 }
 0x2b3   : > { %v1478_v28 = vadd.f32 %v1477_v30, %v1389_v31 }
 0x2b5   : > { %2306 = vst [vmem:[%s3027_s17 + $0x308] sm:$0xff] %v1478_v28 }
 0x2b7   : > { %v1479_v19 = vpop.f32.mrf.mxu3  ;;  %v1215_v41 = vpop.f32.mrf.mxu0 }
 0x2b8   : > { %v1390_v11 = vpop.f32.mrf.mxu2  ;;  %v1304_v29 = vpop.f32.mrf.mxu1 }
 0x2b9   : > { %v1391_v38 = vadd.f32 %v1390_v11, %v1302_v37  ;;  %v1305_v18 = vadd.f32 %v1304_v29, %v1215_v41  ;;  %v620_v41 = vld [vmem:[#allocation5 + $0x6d8] sm:$0xff] }
 0x2ba   : > { %1530 = vmatmul.bf16.gmra.mxu0 %v2949_v32  ;;  %1619 = vmatmul.bf16.gmra.mxu1 %v2951_v33 }
 0x2bb   : > { %v1480_v10 = vadd.f32 %v1479_v19, %v1391_v38  ;;  %v619_v38 = vld [vmem:[#allocation5 + $0x6d0] sm:$0xff] }
 0x2bc   : > { %1797 = vmatmul.bf16.gmra.mxu3 %v2955_v35  ;;  %v623_v19 = vld [vmem:[#allocation5 + $0x6f0] sm:$0xff] }
 0x2bd   : > { %2310 = vst [vmem:[%s3027_s17 + $0x328] sm:$0xff] %v1480_v10  ;;  %1708 = vmatmul.bf16.gmra.mxu2 %v2953_v34  ;;  %v767_v29 = vpack.c.bf16 %v623_v19, %v619_v38  ;;  %v624_v10 = vld [vmem:[#allocation5 + $0x6f8] sm:$0xff] }
 0x2bf   : > { %v1482_v30 = vpop.f32.mrf.mxu3  ;;  %v1217_v9 = vpop.f32.mrf.mxu0  ;;  %2035 = vmatpush.bf16.xpose.msrb.mxu2 %v767_v29 }
 0x2c0   : > { %v1393_v62 = vpop.f32.mrf.mxu2  ;;  %v1306_v60 = vpop.f32.mrf.mxu1 }
 0x2c1   : > { %v1394_v31 = vadd.f32 %v1393_v62, %v1305_v18  ;;  %v1307_v61 = vadd.f32 %v1306_v60, %v1217_v9  ;;  %v768_v62 = vpack.c.bf16 %v624_v10, %v620_v41 }
 0x2c3   : > { %v1483_v28 = vadd.f32 %v1482_v30, %v1394_v31  ;;  %2124 = vmatpush.bf16.xpose.msrb.mxu3 %v768_v62 }
 0x2c5   : > { %2314 = vst [vmem:[%s3027_s17 + $0x348] sm:$0xff] %v1483_v28 }
 0x2c7   : > { %v1484_v16 = vpop.f32.mrf.mxu3  ;;  %v1220_v7 = vpop.f32.mrf.mxu0 }
 0x2c8   : > { %v1395_v39 = vpop.f32.mrf.mxu2  ;;  %v1309_v37 = vpop.f32.mrf.mxu1 }
 0x2c9   : > { %v1396_v8 = vadd.f32 %v1395_v39, %v1307_v61  ;;  %v1310_v11 = vadd.f32 %v1309_v37, %v1220_v7  ;;  %v617_v61 = vld [vmem:[#allocation5 + $0x6c0] sm:$0xff]  ;;  %v622_v7 = vld [vmem:[#allocation5 + $0x6e8] sm:$0xff] }
 0x2ca   : > { %1535 = vmatmul.bf16.gmra.mxu0 %v2969_v44  ;;  %1624 = vmatmul.bf16.gmra.mxu1 %v2971_v45  ;;  %v621_v39 = vld [vmem:[#allocation5 + $0x6e0] sm:$0xff] }
 0x2cb   : > { %v1485_v17 = vadd.f32 %v1484_v16, %v1396_v8  ;;  %v618_v8 = vld [vmem:[#allocation5 + $0x6c8] sm:$0xff]  ;;  %v765_v16 = vpack.c.bf16 %v621_v39, %v617_v61 }
 0x2cc   : > { %1802 = vmatmul.bf16.gmra.mxu3 %v2975_v47 }
 0x2cd   : > { %2318 = vst [vmem:[%s3027_s17 + $0x368] sm:$0xff] %v1485_v17  ;;  %1713 = vmatmul.bf16.gmra.mxu2 %v2973_v46  ;;  %v766_v17 = vpack.c.bf16 %v622_v7, %v618_v8  ;;  %1857 = vmatpush.bf16.xpose.msrb.mxu0 %v765_v16 }
 0x2cf   : > { %v1487_v30 = vpop.f32.mrf.mxu3  ;;  %v1222_v9 = vpop.f32.mrf.mxu0  ;;  %1946 = vmatpush.bf16.xpose.msrb.mxu1 %v766_v17 }
 0x2d0   : > { %v1398_v18 = vpop.f32.mrf.mxu2  ;;  %v1311_v60 = vpop.f32.mrf.mxu1 }
 0x2d1   : > { %v1399_v31 = vadd.f32 %v1398_v18, %v1310_v11  ;;  %v1312_v37 = vadd.f32 %v1311_v60, %v1222_v9 }
 0x2d3   : > { %v1488_v28 = vadd.f32 %v1487_v30, %v1399_v31 }
 0x2d5   : > { %2322 = vst [vmem:[%s3027_s17 + $0x388] sm:$0xff] %v1488_v28 }
 0x2d7   : > { %v1489_v41 = vpop.f32.mrf.mxu3  ;;  %v1225_v11 = vpop.f32.mrf.mxu0 }
 0x2d8   : > { %v1400_v38 = vpop.f32.mrf.mxu2  ;;  %v1314_v29 = vpop.f32.mrf.mxu1 }
 0x2d9   : > { %v1401_v19 = vadd.f32 %v1400_v38, %v1312_v37  ;;  %v1315_v18 = vadd.f32 %v1314_v29, %v1225_v11  ;;  %v612_v11 = vld [vmem:[#allocation5 + $0x698] sm:$0xff] }
 0x2da   : > { %1540 = vmatmul.bf16.gmra.mxu0 %v2989_v20  ;;  %1629 = vmatmul.bf16.gmra.mxu1 %v2991_v21 }
 0x2db   : > { %v1490_v10 = vadd.f32 %v1489_v41, %v1401_v19  ;;  %v611_v19 = vld [vmem:[#allocation5 + $0x690] sm:$0xff] }
 0x2dc   : > { %1807 = vmatmul.bf16.gmra.mxu3 %v2995_v23  ;;  %v615_v41 = vld [vmem:[#allocation5 + $0x6b0] sm:$0xff] }
 0x2dd   : > { %2326 = vst [vmem:[%s3027_s17 + $0x3a8] sm:$0xff] %v1490_v10  ;;  %1718 = vmatmul.bf16.gmra.mxu2 %v2993_v22  ;;  %v763_v29 = vpack.c.bf16 %v615_v41, %v611_v19  ;;  %v616_v10 = vld [vmem:[#allocation5 + $0x6b8] sm:$0xff] }
 0x2df   : > { %v1492_v30 = vpop.f32.mrf.mxu3  ;;  %v1227_v9 = vpop.f32.mrf.mxu0  ;;  %2036 = vmatpush.bf16.xpose.msrb.mxu2 %v763_v29 }
 0x2e0   : > { %v1403_v62 = vpop.f32.mrf.mxu2  ;;  %v1316_v60 = vpop.f32.mrf.mxu1 }
 0x2e1   : > { %v1404_v31 = vadd.f32 %v1403_v62, %v1315_v18  ;;  %v1317_v61 = vadd.f32 %v1316_v60, %v1227_v9  ;;  %v764_v62 = vpack.c.bf16 %v616_v10, %v612_v11 }
 0x2e3   : > { %v1493_v28 = vadd.f32 %v1492_v30, %v1404_v31  ;;  %2125 = vmatpush.bf16.xpose.msrb.mxu3 %v764_v62 }
 0x2e5   : > { %2330 = vst [vmem:[%s3027_s17 + $0x3c8] sm:$0xff] %v1493_v28 }
 0x2e7   : > { %v1494_v16 = vpop.f32.mrf.mxu3  ;;  %v1506_v7 = vpop.f32.mrf.mxu0 }
 0x2e8   : > { %v1405_v39 = vpop.f32.mrf.mxu2  ;;  %v1595_v37 = vpop.f32.mrf.mxu1 }
 0x2e9   : > { %v1406_v8 = vadd.f32 %v1405_v39, %v1317_v61  ;;  %v1596_v38 = vadd.f32 %v1595_v37, %v1506_v7  ;;  %v609_v61 = vld [vmem:[#allocation5 + $0x680] sm:$0xff]  ;;  %v614_v7 = vld [vmem:[#allocation5 + $0x6a8] sm:$0xff] }
 0x2ea   : > { %1545 = vmatmul.bf16.gmra.mxu0 %v3009_v40  ;;  %1634 = vmatmul.bf16.gmra.mxu1 %v3011_v42  ;;  %v613_v39 = vld [vmem:[#allocation5 + $0x6a0] sm:$0xff] }
 0x2eb   : > { %v1495_v17 = vadd.f32 %v1494_v16, %v1406_v8  ;;  %v610_v8 = vld [vmem:[#allocation5 + $0x688] sm:$0xff]  ;;  %v761_v16 = vpack.c.bf16 %v613_v39, %v609_v61 }
 0x2ec   : > { %1812 = vmatmul.bf16.gmra.mxu3 %v3015_v57 }
 0x2ed   : > { %2334 = vst [vmem:[%s3027_s17 + $0x3e8] sm:$0xff] %v1495_v17  ;;  %1723 = vmatmul.bf16.gmra.mxu2 %v3013_v43  ;;  %v762_v17 = vpack.c.bf16 %v614_v7, %v610_v8  ;;  %1858 = vmatpush.bf16.xpose.msrb.mxu0 %v761_v16 }
 0x2ef   : > { %v1773_v30 = vpop.f32.mrf.mxu3  ;;  %v1508_v9 = vpop.f32.mrf.mxu0  ;;  %1947 = vmatpush.bf16.xpose.msrb.mxu1 %v762_v17 }
 0x2f0   : > { %v1684_v18 = vpop.f32.mrf.mxu2  ;;  %v1597_v60 = vpop.f32.mrf.mxu1 }
 0x2f1   : > { %v1685_v31 = vadd.f32 %v1684_v18, %v1596_v38  ;;  %v1598_v37 = vadd.f32 %v1597_v60, %v1508_v9 }
 0x2f3   : > { %v1774_v28 = vadd.f32 %v1773_v30, %v1685_v31 }
 0x2f5   : > { %2211 = vst [vmem:[%s3027_s17 + $0x10] sm:$0xff] %v1774_v28 }
 0x2f7   : > { %v1775_v11 = vpop.f32.mrf.mxu3  ;;  %v1511_v38 = vpop.f32.mrf.mxu0 }
 0x2f8   : > { %v1686_v19 = vpop.f32.mrf.mxu2  ;;  %v1600_v29 = vpop.f32.mrf.mxu1 }
 0x2f9   : > { %v1687_v41 = vadd.f32 %v1686_v19, %v1598_v37  ;;  %v1601_v18 = vadd.f32 %v1600_v29, %v1511_v38  ;;  %v3614_v19 = vld [vmem:[#allocation11_spill] sm:$0xff]  ;;  %v3616_v38 = vld [vmem:[#allocation13_spill] sm:$0xff]  ;;  %v3617_v29 = vld [vmem:[#allocation14_spill] sm:$0xff] }
 0x2fa   : > { %1550 = vmatmul.bf16.gmra.mxu0 %v3034_v59  ;;  %1639 = vmatmul.bf16.gmra.mxu1 %v3036_v63 }
 0x2fb   : > { %v1776_v10 = vadd.f32 %v1775_v11, %v1687_v41  ;;  %v3615_v11 = vld [vmem:[#allocation12_spill] sm:$0xff] }
 0x2fc   : > { %1817 = vmatmul.bf16.gmra.mxu3 %v3040_v6 }
 0x2fd   : > { %2215 = vst [vmem:[%s3027_s17 + $0x30] sm:$0xff] %v1776_v10  ;;  %1728 = vmatmul.bf16.gmra.mxu2 %v3038_v4  ;;  %v603_v10 = vld [vmem:[#allocation5 + $0x650] sm:$0xff] }
 0x2ff   : > { %v1778_v30 = vpop.f32.mrf.mxu3  ;;  %v1513_v9 = vpop.f32.mrf.mxu0 }
 0x300   : > { %v1689_v62 = vpop.f32.mrf.mxu2  ;;  %v1602_v60 = vpop.f32.mrf.mxu1 }
 0x301   : > { %v1690_v31 = vadd.f32 %v1689_v62, %v1601_v18  ;;  %v1603_v61 = vadd.f32 %v1602_v60, %v1513_v9  ;;  %v607_v18 = vld [vmem:[#allocation5 + $0x670] sm:$0xff]  ;;  %v604_v62 = vld [vmem:[#allocation5 + $0x658] sm:$0xff] }
 0x303   : > { %v1779_v28 = vadd.f32 %v1778_v30, %v1690_v31  ;;  %v759_v31 = vpack.c.bf16 %v607_v18, %v603_v10  ;;  %v608_v30 = vld [vmem:[#allocation5 + $0x678] sm:$0xff] }
 0x304   : > { %v760_v60 = vpack.c.bf16 %v608_v30, %v604_v62 }
 0x305   : > { %2219 = vst [vmem:[%s3027_s17 + $0x50] sm:$0xff] %v1779_v28  ;;  %2037 = vmatpush.bf16.xpose.msrb.mxu2 %v759_v31 }
 0x306   : > { %2126 = vmatpush.bf16.xpose.msrb.mxu3 %v760_v60 }
 0x307   : > { %v1780_v16 = vpop.f32.mrf.mxu3  ;;  %v1516_v7 = vpop.f32.mrf.mxu0 }
 0x308   : > { %v1691_v39 = vpop.f32.mrf.mxu2  ;;  %v1605_v37 = vpop.f32.mrf.mxu1 }
 0x309   : > { %v1692_v8 = vadd.f32 %v1691_v39, %v1603_v61  ;;  %v1606_v41 = vadd.f32 %v1605_v37, %v1516_v7  ;;  %v601_v7 = vld [vmem:[#allocation5 + $0x640] sm:$0xff] }
 0x30a   : > { %1555 = vmatmul.bf16.gmra.mxu0 %v3614_v19  ;;  %1644 = vmatmul.bf16.gmra.mxu1 %v3615_v11  ;;  %v605_v37 = vld [vmem:[#allocation5 + $0x660] sm:$0xff] }
 0x30b   : > { %v1781_v17 = vadd.f32 %v1780_v16, %v1692_v8 }
 0x30c   : > { %1822 = vmatmul.bf16.gmra.mxu3 %v3617_v29  ;;  %v757_v29 = vpack.c.bf16 %v605_v37, %v601_v7 }
 0x30d   : > { %2223 = vst [vmem:[%s3027_s17 + $0x70] sm:$0xff] %v1781_v17  ;;  %1733 = vmatmul.bf16.gmra.mxu2 %v3616_v38  ;;  %v602_v17 = vld [vmem:[#allocation5 + $0x648] sm:$0xff] }
 0x30e   : > { %v606_v38 = vld [vmem:[#allocation5 + $0x668] sm:$0xff]  ;;  %1859 = vmatpush.bf16.xpose.msrb.mxu0 %v757_v29 }
 0x30f   : > { %v1783_v61 = vpop.f32.mrf.mxu3  ;;  %v1518_v39 = vpop.f32.mrf.mxu0  ;;  %v758_v19 = vpack.c.bf16 %v606_v38, %v602_v17 }
 0x310   : > { %v1694_v9 = vpop.f32.mrf.mxu2  ;;  %v1607_v8 = vpop.f32.mrf.mxu1 }
 0x311   : > { %v1695_v28 = vadd.f32 %v1694_v9, %v1606_v41  ;;  %v1608_v11 = vadd.f32 %v1607_v8, %v1518_v39  ;;  %1948 = vmatpush.bf16.xpose.msrb.mxu1 %v758_v19  ;;  %v3618_v9 = vld [vmem:[#allocation15_spill] sm:$0xff] }
 0x313   : > { %v1784_v16 = vadd.f32 %v1783_v61, %v1695_v28  ;;  %v3619_v28 = vld [vmem:[#allocation16_spill] sm:$0xff]  ;;  %v3620_v61 = vld [vmem:[#allocation17_spill] sm:$0xff] }
 0x315   : > { %2227 = vst [vmem:[%s3027_s17 + $0x90] sm:$0xff] %v1784_v16  ;;  %v3621_v16 = vld [vmem:[#allocation18_spill] sm:$0xff] }
 0x317   : > { %v1785_v62 = vpop.f32.mrf.mxu3  ;;  %v1521_v41 = vpop.f32.mrf.mxu0 }
 0x318   : > { %v1696_v10 = vpop.f32.mrf.mxu2  ;;  %v1610_v31 = vpop.f32.mrf.mxu1 }
 0x319   : > { %v1697_v18 = vadd.f32 %v1696_v10, %v1608_v11  ;;  %v1611_v60 = vadd.f32 %v1610_v31, %v1521_v41  ;;  %v3622_v31 = vld [vmem:[#allocation19_spill] sm:$0xff] }
 0x31a   : > { %1560 = vmatmul.bf16.gmra.mxu0 %v3618_v9  ;;  %1649 = vmatmul.bf16.gmra.mxu1 %v3619_v28 }
 0x31b   : > { %v1786_v30 = vadd.f32 %v1785_v62, %v1697_v18 }
 0x31c   : > { %1827 = vmatmul.bf16.gmra.mxu3 %v3621_v16  ;;  %v3623_v16 = vld [vmem:[#allocation20_spill] sm:$0xff] }
 0x31d   : > { %2231 = vst [vmem:[%s3027_s17 + $0xb0] sm:$0xff] %v1786_v30  ;;  %1738 = vmatmul.bf16.gmra.mxu2 %v3620_v61  ;;  %v3624_v61 = vld [vmem:[#allocation21_spill] sm:$0xff] }
 0x31f   : > { %v1788_v11 = vpop.f32.mrf.mxu3  ;;  %v1523_v39 = vpop.f32.mrf.mxu0 }
 0x320   : > { %v1699_v38 = vpop.f32.mrf.mxu2  ;;  %v1612_v8 = vpop.f32.mrf.mxu1 }
 0x321   : > { %v1700_v29 = vadd.f32 %v1699_v38, %v1611_v60  ;;  %v1613_v19 = vadd.f32 %v1612_v8, %v1523_v39  ;;  %v3625_v60 = vld [vmem:[#allocation22_spill] sm:$0xff]  ;;  %v595_v38 = vld [vmem:[#allocation5 + $0x610] sm:$0xff] }
 0x322   : > { %v600_v8 = vld [vmem:[#allocation5 + $0x638] sm:$0xff] }
 0x323   : > { %v1789_v7 = vadd.f32 %v1788_v11, %v1700_v29  ;;  %v599_v29 = vld [vmem:[#allocation5 + $0x630] sm:$0xff]  ;;  %v596_v11 = vld [vmem:[#allocation5 + $0x618] sm:$0xff] }
 0x324   : > { %v755_v39 = vpack.c.bf16 %v599_v29, %v595_v38 }
 0x325   : > { %2235 = vst [vmem:[%s3027_s17 + $0xd0] sm:$0xff] %v1789_v7 }
 0x326   : > { %2038 = vmatpush.bf16.xpose.msrb.mxu2 %v755_v39 }
 0x327   : > { %v1790_v10 = vpop.f32.mrf.mxu3  ;;  %v1526_v18 = vpop.f32.mrf.mxu0 }
 0x328   : > { %v1701_v37 = vpop.f32.mrf.mxu2  ;;  %v1615_v62 = vpop.f32.mrf.mxu1 }
 0x329   : > { %v1702_v17 = vadd.f32 %v1701_v37, %v1613_v19  ;;  %v1616_v30 = vadd.f32 %v1615_v62, %v1526_v18  ;;  %v756_v19 = vpack.c.bf16 %v600_v8, %v596_v11  ;;  %v593_v62 = vld [vmem:[#allocation5 + $0x600] sm:$0xff] }
 0x32a   : > { %1565 = vmatmul.bf16.gmra.mxu0 %v3622_v31  ;;  %1654 = vmatmul.bf16.gmra.mxu1 %v3623_v16  ;;  %v594_v16 = vld [vmem:[#allocation5 + $0x608] sm:$0xff] }
 0x32b   : > { %v1791_v41 = vadd.f32 %v1790_v10, %v1702_v17  ;;  %2127 = vmatpush.bf16.xpose.msrb.mxu3 %v756_v19  ;;  %v598_v31 = vld [vmem:[#allocation5 + $0x628] sm:$0xff] }
 0x32c   : > { %1832 = vmatmul.bf16.gmra.mxu3 %v3625_v60  ;;  %v754_v9 = vpack.c.bf16 %v598_v31, %v594_v16 }
 0x32d   : > { %2239 = vst [vmem:[%s3027_s17 + $0xf0] sm:$0xff] %v1791_v41  ;;  %1743 = vmatmul.bf16.gmra.mxu2 %v3624_v61  ;;  %v597_v61 = vld [vmem:[#allocation5 + $0x620] sm:$0xff] }
 0x32e   : > { %v753_v60 = vpack.c.bf16 %v597_v61, %v593_v62  ;;  %1949 = vmatpush.bf16.xpose.msrb.mxu1 %v754_v9  ;;  %v3629_v61 = vld [vmem:[#allocation26_spill] sm:$0xff] }
 0x32f   : > { %v1793_v17 = vpop.f32.mrf.mxu3  ;;  %v1528_v10 = vpop.f32.mrf.mxu0 }
 0x330   : > { %v1704_v7 = vpop.f32.mrf.mxu2  ;;  %v1617_v41 = vpop.f32.mrf.mxu1  ;;  %1860 = vmatpush.bf16.xpose.msrb.mxu0 %v753_v60 }
 0x331   : > { %v1705_v37 = vadd.f32 %v1704_v7, %v1616_v30  ;;  %v1618_v28 = vadd.f32 %v1617_v41, %v1528_v10  ;;  %v3626_v7 = vld [vmem:[#allocation23_spill] sm:$0xff] }
 0x333   : > { %v1794_v18 = vadd.f32 %v1793_v17, %v1705_v37  ;;  %v3627_v37 = vld [vmem:[#allocation24_spill] sm:$0xff]  ;;  %v3628_v17 = vld [vmem:[#allocation25_spill] sm:$0xff] }
 0x335   : > { %2243 = vst [vmem:[%s3027_s17 + $0x110] sm:$0xff] %v1794_v18 }
 0x337   : > { %v1795_v11 = vpop.f32.mrf.mxu3  ;;  %v1531_v30 = vpop.f32.mrf.mxu0 }
 0x338   : > { %v1706_v38 = vpop.f32.mrf.mxu2  ;;  %v1620_v39 = vpop.f32.mrf.mxu1 }
 0x339   : > { %v1707_v29 = vadd.f32 %v1706_v38, %v1618_v28  ;;  %v1621_v19 = vadd.f32 %v1620_v39, %v1531_v30  ;;  %v3630_v39 = vld [vmem:[#allocation27_spill] sm:$0xff] }
 0x33a   : > { %1570 = vmatmul.bf16.gmra.mxu0 %v3626_v7  ;;  %1659 = vmatmul.bf16.gmra.mxu1 %v3627_v37 }
 0x33b   : > { %v1796_v8 = vadd.f32 %v1795_v11, %v1707_v29 }
 0x33c   : > { %1837 = vmatmul.bf16.gmra.mxu3 %v3629_v61  ;;  %v3631_v61 = vld [vmem:[#allocation28_spill] sm:$0xff] }
 0x33d   : > { %2247 = vst [vmem:[%s3027_s17 + $0x130] sm:$0xff] %v1796_v8  ;;  %1748 = vmatmul.bf16.gmra.mxu2 %v3628_v17 }
 0x33f   : > { %v1798_v28 = vpop.f32.mrf.mxu3  ;;  %v1533_v60 = vpop.f32.mrf.mxu0 }
 0x340   : > { %v1709_v16 = vpop.f32.mrf.mxu2  ;;  %v1622_v10 = vpop.f32.mrf.mxu1 }
 0x341   : > { %v1710_v31 = vadd.f32 %v1709_v16, %v1621_v19  ;;  %v1623_v9 = vadd.f32 %v1622_v10, %v1533_v60  ;;  %v3632_v19 = vld [vmem:[#allocation29_spill] sm:$0xff]  ;;  %v3633_v16 = vld [vmem:[#allocation30_spill] sm:$0xff] }
 0x343   : > { %v1799_v41 = vadd.f32 %v1798_v28, %v1710_v31 }
 0x345   : > { %2251 = vst [vmem:[%s3027_s17 + $0x150] sm:$0xff] %v1799_v41 }
 0x347   : > { %v1800_v38 = vpop.f32.mrf.mxu3  ;;  %v1536_v29 = vpop.f32.mrf.mxu0 }
 0x348   : > { %v1711_v18 = vpop.f32.mrf.mxu2  ;;  %v1625_v11 = vpop.f32.mrf.mxu1 }
 0x349   : > { %v1712_v62 = vadd.f32 %v1711_v18, %v1623_v9  ;;  %v1626_v8 = vadd.f32 %v1625_v11, %v1536_v29 }
 0x34a   : > { %1575 = vmatmul.bf16.gmra.mxu0 %v3630_v39  ;;  %1664 = vmatmul.bf16.gmra.mxu1 %v3631_v61 }
 0x34b   : > { %v1801_v30 = vadd.f32 %v1800_v38, %v1712_v62 }
 0x34c   : > { %1842 = vmatmul.bf16.gmra.mxu3 %v3633_v16 }
 0x34d   : > { %2255 = vst [vmem:[%s3027_s17 + $0x170] sm:$0xff] %v1801_v30  ;;  %1753 = vmatmul.bf16.gmra.mxu2 %v3632_v19 }
 0x34f   : > { %v1803_v60 = vpop.f32.mrf.mxu3  ;;  %v1538_v10 = vpop.f32.mrf.mxu0 }
 0x350   : > { %v1714_v31 = vpop.f32.mrf.mxu2  ;;  %v1627_v41 = vpop.f32.mrf.mxu1 }
 0x351   : > { %v1715_v28 = vadd.f32 %v1714_v31, %v1626_v8  ;;  %v1628_v18 = vadd.f32 %v1627_v41, %v1538_v10 }
 0x353   : > { %v1804_v9 = vadd.f32 %v1803_v60, %v1715_v28 }
 0x355   : > { %2259 = vst [vmem:[%s3027_s17 + $0x190] sm:$0xff] %v1804_v9 }
 0x357   : > { %v1805_v39 = vpop.f32.mrf.mxu3  ;;  %v1541_v29 = vpop.f32.mrf.mxu0 }
 0x358   : > { %v1716_v62 = vpop.f32.mrf.mxu2  ;;  %v1630_v11 = vpop.f32.mrf.mxu1 }
 0x359   : > { %v1717_v38 = vadd.f32 %v1716_v62, %v1628_v18  ;;  %v1631_v16 = vadd.f32 %v1630_v11, %v1541_v29 }
 0x35a   : > { %1580 = vmatmul.bf16.gmra.mxu0 %v3166_v5  ;;  %1669 = vmatmul.bf16.gmra.mxu1 %v3168_v36 }
 0x35b   : > { %v1806_v30 = vadd.f32 %v1805_v39, %v1717_v38 }
 0x35c   : > { %1847 = vmatmul.bf16.gmra.mxu3 %v3172_v58 }
 0x35d   : > { %2263 = vst [vmem:[%s3027_s17 + $0x1b0] sm:$0xff] %v1806_v30  ;;  %1758 = vmatmul.bf16.gmra.mxu2 %v3170_v56 }
 0x35f   : > { %v1808_v28 = vpop.f32.mrf.mxu3  ;;  %v1543_v60 = vpop.f32.mrf.mxu0 }
 0x360   : > { %v1719_v8 = vpop.f32.mrf.mxu2  ;;  %v1632_v10 = vpop.f32.mrf.mxu1 }
 0x361   : > { %v1720_v31 = vadd.f32 %v1719_v8, %v1631_v16  ;;  %v1633_v9 = vadd.f32 %v1632_v10, %v1543_v60 }
 0x363   : > { %v1809_v41 = vadd.f32 %v1808_v28, %v1720_v31 }
 0x365   : > { %2267 = vst [vmem:[%s3027_s17 + $0x1d0] sm:$0xff] %v1809_v41 }
 0x367   : > { %v1810_v62 = vpop.f32.mrf.mxu3  ;;  %v1546_v38 = vpop.f32.mrf.mxu0 }
 0x368   : > { %v1721_v39 = vpop.f32.mrf.mxu2  ;;  %v1635_v29 = vpop.f32.mrf.mxu1 }
 0x369   : > { %v1722_v18 = vadd.f32 %v1721_v39, %v1633_v9  ;;  %v1636_v30 = vadd.f32 %v1635_v29, %v1546_v38 }
 0x36a   : > { %1861 = vmatmul.bf16.vlgmr.msrb.gmra.mxu0 %v2849_v52  ;;  %1950 = vmatmul.bf16.vlgmr.msrb.gmra.mxu1 %v2851_v53 }
 0x36b   : > { %v1811_v11 = vadd.f32 %v1810_v62, %v1722_v18 }
 0x36c   : > { %2128 = vmatmul.bf16.vlgmr.msrb.gmra.mxu3 %v2855_v55 }
 0x36d   : > { %2271 = vst [vmem:[%s3027_s17 + $0x1f0] sm:$0xff] %v1811_v11  ;;  %2039 = vmatmul.bf16.vlgmr.msrb.gmra.mxu2 %v2853_v54 }
 0x36f   : > { %v1813_v31 = vpop.f32.mrf.mxu3  ;;  %v1548_v28 = vpop.f32.mrf.mxu0 }
 0x370   : > { %v1724_v16 = vpop.f32.mrf.mxu2  ;;  %v1637_v60 = vpop.f32.mrf.mxu1 }
 0x371   : > { %v1725_v8 = vadd.f32 %v1724_v16, %v1636_v30  ;;  %v1638_v41 = vadd.f32 %v1637_v60, %v1548_v28 }
 0x373   : > { %v1814_v10 = vadd.f32 %v1813_v31, %v1725_v8 }
 0x375   : > { %2275 = vst [vmem:[%s3027_s17 + $0x210] sm:$0xff] %v1814_v10 }
 0x377   : > { %v1815_v52 = vpop.f32.mrf.mxu3  ;;  %v1551_v18 = vpop.f32.mrf.mxu0 }
 0x378   : > { %v1726_v9 = vpop.f32.mrf.mxu2  ;;  %v1640_v62 = vpop.f32.mrf.mxu1 }
 0x379   : > { %v1727_v39 = vadd.f32 %v1726_v9, %v1638_v41  ;;  %v1641_v54 = vadd.f32 %v1640_v62, %v1551_v18 }
 0x37a   : > { %1866 = vmatmul.bf16.gmra.mxu0 %v2869_v12  ;;  %1955 = vmatmul.bf16.gmra.mxu1 %v2871_v13 }
 0x37b   : > { %v1816_v53 = vadd.f32 %v1815_v52, %v1727_v39 }
 0x37c   : > { %2133 = vmatmul.bf16.gmra.mxu3 %v2875_v15 }
 0x37d   : > { %2279 = vst [vmem:[%s3027_s17 + $0x230] sm:$0xff] %v1816_v53  ;;  %2044 = vmatmul.bf16.gmra.mxu2 %v2873_v14 }
 0x37f   : > { %v1818_v29 = vpop.f32.mrf.mxu3  ;;  %v1553_v11 = vpop.f32.mrf.mxu0 }
 0x380   : > { %v1729_v55 = vpop.f32.mrf.mxu2  ;;  %v1642_v30 = vpop.f32.mrf.mxu1 }
 0x381   : > { %v1730_v38 = vadd.f32 %v1729_v55, %v1641_v54  ;;  %v1643_v8 = vadd.f32 %v1642_v30, %v1553_v11 }
 0x383   : > { %v1819_v16 = vadd.f32 %v1818_v29, %v1730_v38 }
 0x385   : > { %2283 = vst [vmem:[%s3027_s17 + $0x250] sm:$0xff] %v1819_v16 }
 0x387   : > { %v1820_v12 = vpop.f32.mrf.mxu3  ;;  %v1556_v60 = vpop.f32.mrf.mxu0 }
 0x388   : > { %v1731_v31 = vpop.f32.mrf.mxu2  ;;  %v1645_v10 = vpop.f32.mrf.mxu1 }
 0x389   : > { %v1732_v28 = vadd.f32 %v1731_v31, %v1643_v8  ;;  %v1646_v14 = vadd.f32 %v1645_v10, %v1556_v60 }
 0x38a   : > { %1871 = vmatmul.bf16.gmra.mxu0 %v2889_v24  ;;  %1960 = vmatmul.bf16.gmra.mxu1 %v2891_v25 }
 0x38b   : > { %v1821_v13 = vadd.f32 %v1820_v12, %v1732_v28 }
 0x38c   : > { %2138 = vmatmul.bf16.gmra.mxu3 %v2895_v27 }
 0x38d   : > { %2287 = vst [vmem:[%s3027_s17 + $0x270] sm:$0xff] %v1821_v13  ;;  %2049 = vmatmul.bf16.gmra.mxu2 %v2893_v26 }
 0x38f   : > { %v1823_v9 = vpop.f32.mrf.mxu3  ;;  %v1558_v39 = vpop.f32.mrf.mxu0 }
 0x390   : > { %v1734_v15 = vpop.f32.mrf.mxu2  ;;  %v1647_v52 = vpop.f32.mrf.mxu1 }
 0x391   : > { %v1735_v41 = vadd.f32 %v1734_v15, %v1646_v14  ;;  %v1648_v62 = vadd.f32 %v1647_v52, %v1558_v39 }
 0x393   : > { %v1824_v18 = vadd.f32 %v1823_v9, %v1735_v41 }
 0x395   : > { %2291 = vst [vmem:[%s3027_s17 + $0x290] sm:$0xff] %v1824_v18 }
 0x397   : > { %v1825_v24 = vpop.f32.mrf.mxu3  ;;  %v1561_v55 = vpop.f32.mrf.mxu0 }
 0x398   : > { %v1736_v53 = vpop.f32.mrf.mxu2  ;;  %v1650_v38 = vpop.f32.mrf.mxu1 }
 0x399   : > { %v1737_v54 = vadd.f32 %v1736_v53, %v1648_v62  ;;  %v1651_v26 = vadd.f32 %v1650_v38, %v1561_v55 }
 0x39a   : > { %1876 = vmatmul.bf16.gmra.mxu0 %v2909_v48  ;;  %1965 = vmatmul.bf16.gmra.mxu1 %v2911_v49 }
 0x39b   : > { %v1826_v25 = vadd.f32 %v1825_v24, %v1737_v54 }
 0x39c   : > { %2143 = vmatmul.bf16.gmra.mxu3 %v2915_v51 }
 0x39d   : > { %2295 = vst [vmem:[%s3027_s17 + $0x2b0] sm:$0xff] %v1826_v25  ;;  %2054 = vmatmul.bf16.gmra.mxu2 %v2913_v50 }
 0x39f   : > { %v1828_v11 = vpop.f32.mrf.mxu3  ;;  %v1563_v30 = vpop.f32.mrf.mxu0 }
 0x3a0   : > { %v1739_v27 = vpop.f32.mrf.mxu2  ;;  %v1652_v16 = vpop.f32.mrf.mxu1 }
 0x3a1   : > { %v1740_v29 = vadd.f32 %v1739_v27, %v1651_v26  ;;  %v1653_v31 = vadd.f32 %v1652_v16, %v1563_v30 }
 0x3a3   : > { %v1829_v8 = vadd.f32 %v1828_v11, %v1740_v29 }
 0x3a5   : > { %2299 = vst [vmem:[%s3027_s17 + $0x2d0] sm:$0xff] %v1829_v8 }
 0x3a7   : > { %v1830_v48 = vpop.f32.mrf.mxu3  ;;  %v1566_v60 = vpop.f32.mrf.mxu0 }
 0x3a8   : > { %v1741_v28 = vpop.f32.mrf.mxu2  ;;  %v1655_v10 = vpop.f32.mrf.mxu1 }
 0x3a9   : > { %v1742_v12 = vadd.f32 %v1741_v28, %v1653_v31  ;;  %v1656_v50 = vadd.f32 %v1655_v10, %v1566_v60 }
 0x3aa   : > { %1881 = vmatmul.bf16.gmra.mxu0 %v2929_v0  ;;  %1970 = vmatmul.bf16.gmra.mxu1 %v2931_v1 }
 0x3ab   : > { %v1831_v49 = vadd.f32 %v1830_v48, %v1742_v12 }
 0x3ac   : > { %2148 = vmatmul.bf16.gmra.mxu3 %v2935_v3 }
 0x3ad   : > { %2303 = vst [vmem:[%s3027_s17 + $0x2f0] sm:$0xff] %v1831_v49  ;;  %2059 = vmatmul.bf16.gmra.mxu2 %v2933_v2 }
 0x3af   : > { %v1833_v14 = vpop.f32.mrf.mxu3  ;;  %v1568_v15 = vpop.f32.mrf.mxu0 }
 0x3b0   : > { %v1744_v51 = vpop.f32.mrf.mxu2  ;;  %v1657_v41 = vpop.f32.mrf.mxu1 }
 0x3b1   : > { %v1745_v13 = vadd.f32 %v1744_v51, %v1656_v50  ;;  %v1658_v39 = vadd.f32 %v1657_v41, %v1568_v15 }
 0x3b3   : > { %v1834_v9 = vadd.f32 %v1833_v14, %v1745_v13 }
 0x3b5   : > { %2307 = vst [vmem:[%s3027_s17 + $0x310] sm:$0xff] %v1834_v9 }
 0x3b7   : > { %v1835_v0 = vpop.f32.mrf.mxu3  ;;  %v1571_v62 = vpop.f32.mrf.mxu0 }
 0x3b8   : > { %v1746_v52 = vpop.f32.mrf.mxu2  ;;  %v1660_v53 = vpop.f32.mrf.mxu1 }
 0x3b9   : > { %v1747_v18 = vadd.f32 %v1746_v52, %v1658_v39  ;;  %v1661_v2 = vadd.f32 %v1660_v53, %v1571_v62 }
 0x3ba   : > { %1886 = vmatmul.bf16.gmra.mxu0 %v2949_v32  ;;  %1975 = vmatmul.bf16.gmra.mxu1 %v2951_v33 }
 0x3bb   : > { %v1836_v1 = vadd.f32 %v1835_v0, %v1747_v18 }
 0x3bc   : > { %2153 = vmatmul.bf16.gmra.mxu3 %v2955_v35 }
 0x3bd   : > { %2311 = vst [vmem:[%s3027_s17 + $0x330] sm:$0xff] %v1836_v1  ;;  %2064 = vmatmul.bf16.gmra.mxu2 %v2953_v34 }
 0x3bf   : > { %v1838_v24 = vpop.f32.mrf.mxu3  ;;  %v1573_v55 = vpop.f32.mrf.mxu0 }
 0x3c0   : > { %v1749_v3 = vpop.f32.mrf.mxu2  ;;  %v1662_v38 = vpop.f32.mrf.mxu1 }
 0x3c1   : > { %v1750_v54 = vadd.f32 %v1749_v3, %v1661_v2  ;;  %v1663_v26 = vadd.f32 %v1662_v38, %v1573_v55 }
 0x3c3   : > { %v1839_v25 = vadd.f32 %v1838_v24, %v1750_v54 }
 0x3c5   : > { %2315 = vst [vmem:[%s3027_s17 + $0x350] sm:$0xff] %v1839_v25 }
 0x3c7   : > { %v1840_v32 = vpop.f32.mrf.mxu3  ;;  %v1576_v11 = vpop.f32.mrf.mxu0 }
 0x3c8   : > { %v1751_v27 = vpop.f32.mrf.mxu2  ;;  %v1665_v30 = vpop.f32.mrf.mxu1 }
 0x3c9   : > { %v1752_v29 = vadd.f32 %v1751_v27, %v1663_v26  ;;  %v1666_v34 = vadd.f32 %v1665_v30, %v1576_v11 }
 0x3ca   : > { %1891 = vmatmul.bf16.gmra.mxu0 %v2969_v44  ;;  %1980 = vmatmul.bf16.gmra.mxu1 %v2971_v45 }
 0x3cb   : > { %v1841_v33 = vadd.f32 %v1840_v32, %v1752_v29 }
 0x3cc   : > { %2158 = vmatmul.bf16.gmra.mxu3 %v2975_v47 }
 0x3cd   : > { %2319 = vst [vmem:[%s3027_s17 + $0x370] sm:$0xff] %v1841_v33  ;;  %2069 = vmatmul.bf16.gmra.mxu2 %v2973_v46 }
 0x3cf   : > { %v1843_v8 = vpop.f32.mrf.mxu3  ;;  %v1578_v31 = vpop.f32.mrf.mxu0 }
 0x3d0   : > { %v1754_v35 = vpop.f32.mrf.mxu2  ;;  %v1667_v28 = vpop.f32.mrf.mxu1 }
 0x3d1   : > { %v1755_v16 = vadd.f32 %v1754_v35, %v1666_v34  ;;  %v1668_v48 = vadd.f32 %v1667_v28, %v1578_v31  ;;  %v3636_v31 = vld [vmem:[#allocation13_spill] sm:$0xff]  ;;  %v3637_v28 = vld [vmem:[#allocation14_spill] sm:$0xff] }
 0x3d3   : > { %v1844_v12 = vadd.f32 %v1843_v8, %v1755_v16  ;;  %v3634_v8 = vld [vmem:[#allocation11_spill] sm:$0xff] }
 0x3d5   : > { %2323 = vst [vmem:[%s3027_s17 + $0x390] sm:$0xff] %v1844_v12 }
 0x3d7   : > { %v1845_v44 = vpop.f32.mrf.mxu3  ;;  %v1581_v49 = vpop.f32.mrf.mxu0 }
 0x3d8   : > { %v1756_v60 = vpop.f32.mrf.mxu2  ;;  %v1670_v50 = vpop.f32.mrf.mxu1 }
 0x3d9   : > { %v1757_v10 = vadd.f32 %v1756_v60, %v1668_v48  ;;  %v1671_v46 = vadd.f32 %v1670_v50, %v1581_v49 }
 0x3da   : > { %1896 = vmatmul.bf16.gmra.mxu0 %v2989_v20  ;;  %1985 = vmatmul.bf16.gmra.mxu1 %v2991_v21 }
 0x3db   : > { %v1846_v45 = vadd.f32 %v1845_v44, %v1757_v10 }
 0x3dc   : > { %2163 = vmatmul.bf16.gmra.mxu3 %v2995_v23 }
 0x3dd   : > { %2327 = vst [vmem:[%s3027_s17 + $0x3b0] sm:$0xff] %v1846_v45  ;;  %2074 = vmatmul.bf16.gmra.mxu2 %v2993_v22 }
 0x3df   : > { %v1848_v13 = vpop.f32.mrf.mxu3  ;;  %v1583_v14 = vpop.f32.mrf.mxu0 }
 0x3e0   : > { %v1759_v47 = vpop.f32.mrf.mxu2  ;;  %v1672_v15 = vpop.f32.mrf.mxu1 }
 0x3e1   : > { %v1760_v51 = vadd.f32 %v1759_v47, %v1671_v46  ;;  %v1673_v9 = vadd.f32 %v1672_v15, %v1583_v14  ;;  %v3638_v15 = vld [vmem:[#allocation15_spill] sm:$0xff] }
 0x3e3   : > { %v1849_v41 = vadd.f32 %v1848_v13, %v1760_v51 }
 0x3e5   : > { %2331 = vst [vmem:[%s3027_s17 + $0x3d0] sm:$0xff] %v1849_v41 }
 0x3e7   : > { %v1850_v20 = vpop.f32.mrf.mxu3  ;;  %v1862_v18 = vpop.f32.mrf.mxu0 }
 0x3e8   : > { %v1761_v39 = vpop.f32.mrf.mxu2  ;;  %v1951_v0 = vpop.f32.mrf.mxu1 }
 0x3e9   : > { %v1762_v52 = vadd.f32 %v1761_v39, %v1673_v9  ;;  %v1952_v22 = vadd.f32 %v1951_v0, %v1862_v18  ;;  %v3639_v9 = vld [vmem:[#allocation16_spill] sm:$0xff]  ;;  %v3640_v39 = vld [vmem:[#allocation17_spill] sm:$0xff] }
 0x3ea   : > { %1901 = vmatmul.bf16.gmra.mxu0 %v3009_v40  ;;  %1990 = vmatmul.bf16.gmra.mxu1 %v3011_v42 }
 0x3eb   : > { %v1851_v21 = vadd.f32 %v1850_v20, %v1762_v52  ;;  %v3641_v52 = vld [vmem:[#allocation18_spill] sm:$0xff] }
 0x3ec   : > { %2168 = vmatmul.bf16.gmra.mxu3 %v3015_v57 }
 0x3ed   : > { %2335 = vst [vmem:[%s3027_s17 + $0x3f0] sm:$0xff] %v1851_v21  ;;  %2079 = vmatmul.bf16.gmra.mxu2 %v3013_v43 }
 0x3ef   : > { %v2129_v53 = vpop.f32.mrf.mxu3  ;;  %v1864_v1 = vpop.f32.mrf.mxu0 }
 0x3f0   : > { %v2040_v23 = vpop.f32.mrf.mxu2  ;;  %v1953_v2 = vpop.f32.mrf.mxu1 }
 0x3f1   : > { %v2041_v62 = vadd.f32 %v2040_v23, %v1952_v22  ;;  %v1954_v54 = vadd.f32 %v1953_v2, %v1864_v1 }
 0x3f3   : > { %v2130_v3 = vadd.f32 %v2129_v53, %v2041_v62 }
 0x3f5   : > { %2212 = vst [vmem:[%s3027_s17 + $0x18] sm:$0xff] %v2130_v3 }
 0x3f7   : > { %v2131_v40 = vpop.f32.mrf.mxu3  ;;  %v1867_v38 = vpop.f32.mrf.mxu0 }
 0x3f8   : > { %v2042_v24 = vpop.f32.mrf.mxu2  ;;  %v1956_v25 = vpop.f32.mrf.mxu1 }
 0x3f9   : > { %v2043_v55 = vadd.f32 %v2042_v24, %v1954_v54  ;;  %v1957_v43 = vadd.f32 %v1956_v25, %v1867_v38  ;;  %v3643_v38 = vld [vmem:[#allocation20_spill] sm:$0xff]  ;;  %v3644_v25 = vld [vmem:[#allocation21_spill] sm:$0xff] }
 0x3fa   : > { %1906 = vmatmul.bf16.gmra.mxu0 %v3034_v59  ;;  %1995 = vmatmul.bf16.gmra.mxu1 %v3036_v63 }
 0x3fb   : > { %v2132_v42 = vadd.f32 %v2131_v40, %v2043_v55  ;;  %v3642_v55 = vld [vmem:[#allocation19_spill] sm:$0xff] }
 0x3fc   : > { %2173 = vmatmul.bf16.gmra.mxu3 %v3040_v6  ;;  %v3635_v6 = vld [vmem:[#allocation12_spill] sm:$0xff] }
 0x3fd   : > { %2216 = vst [vmem:[%s3027_s17 + $0x38] sm:$0xff] %v2132_v42  ;;  %2084 = vmatmul.bf16.gmra.mxu2 %v3038_v4  ;;  %v3645_v42 = vld [vmem:[#allocation22_spill] sm:$0xff] }
 0x3ff   : > { %v2134_v27 = vpop.f32.mrf.mxu3  ;;  %v1869_v29 = vpop.f32.mrf.mxu0 }
 0x400   : > { %v2045_v57 = vpop.f32.mrf.mxu2  ;;  %v1958_v32 = vpop.f32.mrf.mxu1 }
 0x401   : > { %v2046_v26 = vadd.f32 %v2045_v57, %v1957_v43  ;;  %v1959_v30 = vadd.f32 %v1958_v32, %v1869_v29 }
 0x403   : > { %v2135_v11 = vadd.f32 %v2134_v27, %v2046_v26 }
 0x405   : > { %2220 = vst [vmem:[%s3027_s17 + $0x58] sm:$0xff] %v2135_v11 }
 0x407   : > { %v2136_v59 = vpop.f32.mrf.mxu3  ;;  %v1872_v35 = vpop.f32.mrf.mxu0 }
 0x408   : > { %v2047_v33 = vpop.f32.mrf.mxu2  ;;  %v1961_v16 = vpop.f32.mrf.mxu1 }
 0x409   : > { %v2048_v34 = vadd.f32 %v2047_v33, %v1959_v30  ;;  %v1962_v4 = vadd.f32 %v1961_v16, %v1872_v35 }
 0x40a   : > { %1911 = vmatmul.bf16.gmra.mxu0 %v3634_v8  ;;  %2000 = vmatmul.bf16.gmra.mxu1 %v3635_v6  ;;  %v3646_v8 = vld [vmem:[#allocation26_spill] sm:$0xff] }
 0x40b   : > { %v2137_v63 = vadd.f32 %v2136_v59, %v2048_v34 }
 0x40c   : > { %2178 = vmatmul.bf16.gmra.mxu3 %v3637_v28 }
 0x40d   : > { %2224 = vst [vmem:[%s3027_s17 + $0x78] sm:$0xff] %v2137_v63  ;;  %2089 = vmatmul.bf16.gmra.mxu2 %v3636_v31 }
 0x40f   : > { %v2139_v60 = vpop.f32.mrf.mxu3  ;;  %v1874_v10 = vpop.f32.mrf.mxu0 }
 0x410   : > { %v2050_v12 = vpop.f32.mrf.mxu2  ;;  %v1963_v44 = vpop.f32.mrf.mxu1 }
 0x411   : > { %v2051_v48 = vadd.f32 %v2050_v12, %v1962_v4  ;;  %v1964_v50 = vadd.f32 %v1963_v44, %v1874_v10 }
 0x413   : > { %v2140_v49 = vadd.f32 %v2139_v60, %v2051_v48 }
 0x415   : > { %2228 = vst [vmem:[%s3027_s17 + $0x98] sm:$0xff] %v2140_v49 }
 0x417   : > { %v2141_v47 = vpop.f32.mrf.mxu3  ;;  %v1877_v51 = vpop.f32.mrf.mxu0 }
 0x418   : > { %v2052_v45 = vpop.f32.mrf.mxu2  ;;  %v1966_v13 = vpop.f32.mrf.mxu1 }
 0x419   : > { %v2053_v46 = vadd.f32 %v2052_v45, %v1964_v50  ;;  %v1967_v41 = vadd.f32 %v1966_v13, %v1877_v51  ;;  %v3647_v45 = vld [vmem:[#allocation27_spill] sm:$0xff] }
 0x41a   : > { %1916 = vmatmul.bf16.gmra.mxu0 %v3638_v15  ;;  %2005 = vmatmul.bf16.gmra.mxu1 %v3639_v9 }
 0x41b   : > { %v2142_v14 = vadd.f32 %v2141_v47, %v2053_v46  ;;  %v3648_v46 = vld [vmem:[#allocation30_spill] sm:$0xff] }
 0x41c   : > { %2183 = vmatmul.bf16.gmra.mxu3 %v3641_v52 }
 0x41d   : > { %2232 = vst [vmem:[%s3027_s17 + $0xb8] sm:$0xff] %v2142_v14  ;;  %2094 = vmatmul.bf16.gmra.mxu2 %v3640_v39 }
 0x41f   : > { %v2144_v0 = vpop.f32.mrf.mxu3  ;;  %v1879_v21 = vpop.f32.mrf.mxu0 }
 0x420   : > { %v2055_v20 = vpop.f32.mrf.mxu2  ;;  %v1968_v22 = vpop.f32.mrf.mxu1 }
 0x421   : > { %v2056_v18 = vadd.f32 %v2055_v20, %v1967_v41  ;;  %v1969_v62 = vadd.f32 %v1968_v22, %v1879_v21 }
 0x423   : > { %v2145_v23 = vadd.f32 %v2144_v0, %v2056_v18 }
 0x425   : > { %2236 = vst [vmem:[%s3027_s17 + $0xd8] sm:$0xff] %v2145_v23 }
 0x427   : > { %v2146_v2 = vpop.f32.mrf.mxu3  ;;  %v1882_v3 = vpop.f32.mrf.mxu0 }
 0x428   : > { %v2057_v53 = vpop.f32.mrf.mxu2  ;;  %v1971_v54 = vpop.f32.mrf.mxu1 }
 0x429   : > { %v2058_v1 = vadd.f32 %v2057_v53, %v1969_v62  ;;  %v1972_v40 = vadd.f32 %v1971_v54, %v1882_v3 }
 0x42a   : > { %1921 = vmatmul.bf16.gmra.mxu0 %v3642_v55  ;;  %2010 = vmatmul.bf16.gmra.mxu1 %v3643_v38 }
 0x42b   : > { %v2147_v24 = vadd.f32 %v2146_v2, %v2058_v1 }
 0x42c   : > { %2188 = vmatmul.bf16.gmra.mxu3 %v3645_v42 }
 0x42d   : > { %2240 = vst [vmem:[%s3027_s17 + $0xf8] sm:$0xff] %v2147_v24  ;;  %2099 = vmatmul.bf16.gmra.mxu2 %v3644_v25 }
 0x42f   : > { %v2149_v26 = vpop.f32.mrf.mxu3  ;;  %v1884_v27 = vpop.f32.mrf.mxu0 }
 0x430   : > { %v2060_v43 = vpop.f32.mrf.mxu2  ;;  %v1973_v29 = vpop.f32.mrf.mxu1 }
 0x431   : > { %v2061_v57 = vadd.f32 %v2060_v43, %v1972_v40  ;;  %v1974_v11 = vadd.f32 %v1973_v29, %v1884_v27 }
 0x433   : > { %v2150_v32 = vadd.f32 %v2149_v26, %v2061_v57 }
 0x435   : > { %2244 = vst [vmem:[%s3027_s17 + $0x118] sm:$0xff] %v2150_v32 }
 0x437   : > { %v2151_v34 = vpop.f32.mrf.mxu3  ;;  %v1887_v59 = vpop.f32.mrf.mxu0 }
 0x438   : > { %v2062_v30 = vpop.f32.mrf.mxu2  ;;  %v1976_v35 = vpop.f32.mrf.mxu1 }
 0x439   : > { %v2063_v33 = vadd.f32 %v2062_v30, %v1974_v11  ;;  %v1977_v63 = vadd.f32 %v1976_v35, %v1887_v59 }
 0x43a   : > { %1926 = vmatmul.bf16.gmra.mxu0 %v3626_v7  ;;  %2015 = vmatmul.bf16.gmra.mxu1 %v3627_v37 }
 0x43b   : > { %v2152_v16 = vadd.f32 %v2151_v34, %v2063_v33 }
 0x43c   : > { %2193 = vmatmul.bf16.gmra.mxu3 %v3646_v8 }
 0x43d   : > { %2248 = vst [vmem:[%s3027_s17 + $0x138] sm:$0xff] %v2152_v16  ;;  %2104 = vmatmul.bf16.gmra.mxu2 %v3628_v17 }
 0x43f   : > { %v2154_v31 = vpop.f32.mrf.mxu3  ;;  %v1889_v28 = vpop.f32.mrf.mxu0 }
 0x440   : > { %v2065_v4 = vpop.f32.mrf.mxu2  ;;  %v1978_v12 = vpop.f32.mrf.mxu1 }
 0x441   : > { %v2066_v6 = vadd.f32 %v2065_v4, %v1977_v63  ;;  %v1979_v60 = vadd.f32 %v1978_v12, %v1889_v28 }
 0x443   : > { %v2155_v48 = vadd.f32 %v2154_v31, %v2066_v6 }
 0x445   : > { %2252 = vst [vmem:[%s3027_s17 + $0x158] sm:$0xff] %v2155_v48 }
 0x447   : > { %v2156_v7 = vpop.f32.mrf.mxu3  ;;  %v1892_v49 = vpop.f32.mrf.mxu0 }
 0x448   : > { %v2067_v10 = vpop.f32.mrf.mxu2  ;;  %v1981_v50 = vpop.f32.mrf.mxu1 }
 0x449   : > { %v2068_v44 = vadd.f32 %v2067_v10, %v1979_v60  ;;  %v1982_v17 = vadd.f32 %v1981_v50, %v1892_v49 }
 0x44a   : > { %1931 = vmatmul.bf16.gmra.mxu0 %v3647_v45  ;;  %2020 = vmatmul.bf16.gmra.mxu1 %v3631_v61 }
 0x44b   : > { %v2157_v37 = vadd.f32 %v2156_v7, %v2068_v44 }
 0x44c   : > { %2198 = vmatmul.bf16.gmra.mxu3 %v3648_v46 }
 0x44d   : > { %2256 = vst [vmem:[%s3027_s17 + $0x178] sm:$0xff] %v2157_v37  ;;  %2109 = vmatmul.bf16.gmra.mxu2 %v3632_v19 }
 0x44f   : > { %v2159_v13 = vpop.f32.mrf.mxu3  ;;  %v1894_v14 = vpop.f32.mrf.mxu0 }
 0x450   : > { %v2070_v47 = vpop.f32.mrf.mxu2  ;;  %v1983_v15 = vpop.f32.mrf.mxu1 }
 0x451   : > { %v2071_v51 = vadd.f32 %v2070_v47, %v1982_v17  ;;  %v1984_v9 = vadd.f32 %v1983_v15, %v1894_v14 }
 0x453   : > { %v2160_v41 = vadd.f32 %v2159_v13, %v2071_v51 }
 0x455   : > { %2260 = vst [vmem:[%s3027_s17 + $0x198] sm:$0xff] %v2160_v41 }
 0x457   : > { %v2161_v20 = vpop.f32.mrf.mxu3  ;;  %v1897_v18 = vpop.f32.mrf.mxu0 }
 0x458   : > { %v2072_v39 = vpop.f32.mrf.mxu2  ;;  %v1986_v0 = vpop.f32.mrf.mxu1 }
 0x459   : > { %v2073_v52 = vadd.f32 %v2072_v39, %v1984_v9  ;;  %v1987_v19 = vadd.f32 %v1986_v0, %v1897_v18 }
 0x45a   : > { %1936 = vmatmul.bf16.gmra.mxu0 %v3166_v5  ;;  %2025 = vmatmul.bf16.gmra.mxu1 %v3168_v36 }
 0x45b   : > { %v2162_v61 = vadd.f32 %v2161_v20, %v2073_v52 }
 0x45c   : > { %2203 = vmatmul.bf16.gmra.mxu3 %v3172_v58 }
 0x45d   : > { %2264 = vst [vmem:[%s3027_s17 + $0x1b8] sm:$0xff] %v2162_v61  ;;  %2114 = vmatmul.bf16.gmra.mxu2 %v3170_v56 }
 0x45f   : > { %v2164_v23 = vpop.f32.mrf.mxu3  ;;  %v1899_v62 = vpop.f32.mrf.mxu0 }
 0x460   : > { %v2075_v21 = vpop.f32.mrf.mxu2  ;;  %v1988_v53 = vpop.f32.mrf.mxu1 }
 0x461   : > { %v2076_v22 = vadd.f32 %v2075_v21, %v1987_v19  ;;  %v1989_v2 = vadd.f32 %v1988_v53, %v1899_v62 }
 0x463   : > { %v2165_v1 = vadd.f32 %v2164_v23, %v2076_v22 }
 0x465   : > { %2268 = vst [vmem:[%s3027_s17 + $0x1d8] sm:$0xff] %v2165_v1 }
 0x467   : > { %v2166_v54 = vpop.f32.mrf.mxu3  ;;  %v1902_v24 = vpop.f32.mrf.mxu0 }
 0x468   : > { %v2077_v3 = vpop.f32.mrf.mxu2  ;;  %v1991_v55 = vpop.f32.mrf.mxu1 }
 0x469   : > { %v2078_v5 = vadd.f32 %v2077_v3, %v1989_v2  ;;  %v1992_v56 = vadd.f32 %v1991_v55, %v1902_v24 }
 0x46b   : > { %v2167_v36 = vadd.f32 %v2166_v54, %v2078_v5 }
 0x46d   : > { %2272 = vst [vmem:[%s3027_s17 + $0x1f8] sm:$0xff] %v2167_v36 }
 0x46f   : > { %v2169_v38 = vpop.f32.mrf.mxu3  ;;  %v1904_v25 = vpop.f32.mrf.mxu0 }
 0x470   : > { %v2080_v40 = vpop.f32.mrf.mxu2  ;;  %v1993_v42 = vpop.f32.mrf.mxu1 }
 0x471   : > { %v2081_v58 = vadd.f32 %v2080_v40, %v1992_v56  ;;  %v1994_v57 = vadd.f32 %v1993_v42, %v1904_v25 }
 0x473   : > { %v2170_v43 = vadd.f32 %v2169_v38, %v2081_v58 }
 0x475   : > { %2276 = vst [vmem:[%s3027_s17 + $0x218] sm:$0xff] %v2170_v43 }
 0x477   : > { %v2171_v29 = vpop.f32.mrf.mxu3  ;;  %v1907_v32 = vpop.f32.mrf.mxu0 }
 0x478   : > { %v2082_v26 = vpop.f32.mrf.mxu2  ;;  %v1996_v11 = vpop.f32.mrf.mxu1 }
 0x479   : > { %v2083_v27 = vadd.f32 %v2082_v26, %v1994_v57  ;;  %v1997_v33 = vadd.f32 %v1996_v11, %v1907_v32 }
 0x47b   : > { %v2172_v30 = vadd.f32 %v2171_v29, %v2083_v27 }
 0x47d   : > { %2280 = vst [vmem:[%s3027_s17 + $0x238] sm:$0xff] %v2172_v30 }
 0x47f   : > { %v2174_v35 = vpop.f32.mrf.mxu3  ;;  %v1909_v16 = vpop.f32.mrf.mxu0 }
 0x480   : > { %v2085_v34 = vpop.f32.mrf.mxu2  ;;  %v1998_v63 = vpop.f32.mrf.mxu1 }
 0x481   : > { %v2086_v59 = vadd.f32 %v2085_v34, %v1997_v33  ;;  %v1999_v4 = vadd.f32 %v1998_v63, %v1909_v16 }
 0x483   : > { %v2175_v8 = vadd.f32 %v2174_v35, %v2086_v59 }
 0x485   : > { %2284 = vst [vmem:[%s3027_s17 + $0x258] sm:$0xff] %v2175_v8 }
 0x487   : > { %v2176_v28 = vpop.f32.mrf.mxu3  ;;  %v1912_v12 = vpop.f32.mrf.mxu0 }
 0x488   : > { %v2087_v6 = vpop.f32.mrf.mxu2  ;;  %v2001_v48 = vpop.f32.mrf.mxu1 }
 0x489   : > { %v2088_v31 = vadd.f32 %v2087_v6, %v1999_v4  ;;  %v2002_v10 = vadd.f32 %v2001_v48, %v1912_v12 }
 0x48b   : > { %v2177_v60 = vadd.f32 %v2176_v28, %v2088_v31 }
 0x48d   : > { %2288 = vst [vmem:[%s3027_s17 + $0x278] sm:$0xff] %v2177_v60 }
 0x48f   : > { %v2179_v49 = vpop.f32.mrf.mxu3  ;;  %v1914_v50 = vpop.f32.mrf.mxu0 }
 0x490   : > { %v2090_v44 = vpop.f32.mrf.mxu2  ;;  %v2003_v37 = vpop.f32.mrf.mxu1 }
 0x491   : > { %v2091_v7 = vadd.f32 %v2090_v44, %v2002_v10  ;;  %v2004_v17 = vadd.f32 %v2003_v37, %v1914_v50 }
 0x493   : > { %v2180_v45 = vadd.f32 %v2179_v49, %v2091_v7 }
 0x495   : > { %2292 = vst [vmem:[%s3027_s17 + $0x298] sm:$0xff] %v2180_v45 }
 0x497   : > { %v2181_v51 = vpop.f32.mrf.mxu3  ;;  %v1917_v13 = vpop.f32.mrf.mxu0 }
 0x498   : > { %v2092_v46 = vpop.f32.mrf.mxu2  ;;  %v2006_v14 = vpop.f32.mrf.mxu1 }
 0x499   : > { %v2093_v47 = vadd.f32 %v2092_v46, %v2004_v17  ;;  %v2007_v41 = vadd.f32 %v2006_v14, %v1917_v13 }
 0x49b   : > { %v2182_v15 = vadd.f32 %v2181_v51, %v2093_v47 }
 0x49d   : > { %2296 = vst [vmem:[%s3027_s17 + $0x2b8] sm:$0xff] %v2182_v15 }
 0x49f   : > { %v2184_v52 = vpop.f32.mrf.mxu3  ;;  %v1919_v20 = vpop.f32.mrf.mxu0 }
 0x4a0   : > { %v2095_v9 = vpop.f32.mrf.mxu2  ;;  %v2008_v18 = vpop.f32.mrf.mxu1 }
 0x4a1   : > { %v2096_v39 = vadd.f32 %v2095_v9, %v2007_v41  ;;  %v2009_v61 = vadd.f32 %v2008_v18, %v1919_v20 }
 0x4a3   : > { %v2185_v0 = vadd.f32 %v2184_v52, %v2096_v39 }
 0x4a5   : > { %2300 = vst [vmem:[%s3027_s17 + $0x2d8] sm:$0xff] %v2185_v0 }
 0x4a7   : > { %v2186_v22 = vpop.f32.mrf.mxu3  ;;  %v1922_v23 = vpop.f32.mrf.mxu0 }
 0x4a8   : > { %v2097_v19 = vpop.f32.mrf.mxu2  ;;  %v2011_v62 = vpop.f32.mrf.mxu1 }
 0x4a9   : > { %v2098_v21 = vadd.f32 %v2097_v19, %v2009_v61  ;;  %v2012_v1 = vadd.f32 %v2011_v62, %v1922_v23 }
 0x4ab   : > { %v2187_v53 = vadd.f32 %v2186_v22, %v2098_v21 }
 0x4ad   : > { %2304 = vst [vmem:[%s3027_s17 + $0x2f8] sm:$0xff] %v2187_v53 }
 0x4af   : > { %v2189_v5 = vpop.f32.mrf.mxu3  ;;  %v1924_v54 = vpop.f32.mrf.mxu0 }
 0x4b0   : > { %v2100_v2 = vpop.f32.mrf.mxu2  ;;  %v2013_v24 = vpop.f32.mrf.mxu1 }
 0x4b1   : > { %v2101_v3 = vadd.f32 %v2100_v2, %v2012_v1  ;;  %v2014_v36 = vadd.f32 %v2013_v24, %v1924_v54 }
 0x4b3   : > { %v2190_v55 = vadd.f32 %v2189_v5, %v2101_v3 }
 0x4b5   : > { %2308 = vst [vmem:[%s3027_s17 + $0x318] sm:$0xff] %v2190_v55 }
 0x4b7   : > { %v2191_v58 = vpop.f32.mrf.mxu3  ;;  %v1927_v38 = vpop.f32.mrf.mxu0 }
 0x4b8   : > { %v2102_v56 = vpop.f32.mrf.mxu2  ;;  %v2016_v25 = vpop.f32.mrf.mxu1 }
 0x4b9   : > { %v2103_v40 = vadd.f32 %v2102_v56, %v2014_v36  ;;  %v2017_v43 = vadd.f32 %v2016_v25, %v1927_v38 }
 0x4bb   : > { %v2192_v42 = vadd.f32 %v2191_v58, %v2103_v40 }
 0x4bd   : > { %2312 = vst [vmem:[%s3027_s17 + $0x338] sm:$0xff] %v2192_v42 }
 0x4bf   : > { %v2194_v27 = vpop.f32.mrf.mxu3  ;;  %v1929_v29 = vpop.f32.mrf.mxu0 }
 0x4c0   : > { %v2105_v57 = vpop.f32.mrf.mxu2  ;;  %v2018_v32 = vpop.f32.mrf.mxu1 }
 0x4c1   : > { %v2106_v26 = vadd.f32 %v2105_v57, %v2017_v43  ;;  %v2019_v30 = vadd.f32 %v2018_v32, %v1929_v29 }
 0x4c3   : > { %v2195_v11 = vadd.f32 %v2194_v27, %v2106_v26 }
 0x4c5   : > { %2316 = vst [vmem:[%s3027_s17 + $0x358] sm:$0xff] %v2195_v11 }
 0x4c7   : > { %v2196_v59 = vpop.f32.mrf.mxu3  ;;  %v1932_v35 = vpop.f32.mrf.mxu0 }
 0x4c8   : > { %v2107_v33 = vpop.f32.mrf.mxu2  ;;  %v2021_v16 = vpop.f32.mrf.mxu1 }
 0x4c9   : > { %v2108_v34 = vadd.f32 %v2107_v33, %v2019_v30  ;;  %v2022_v8 = vadd.f32 %v2021_v16, %v1932_v35 }
 0x4cb   : > { %v2197_v63 = vadd.f32 %v2196_v59, %v2108_v34 }
 0x4cd   : > { %2320 = vst [vmem:[%s3027_s17 + $0x378] sm:$0xff] %v2197_v63 }
 0x4cf   : > { %v2199_v31 = vpop.f32.mrf.mxu3  ;;  %v1934_v28 = vpop.f32.mrf.mxu0 }
 0x4d0   : > { %v2110_v4 = vpop.f32.mrf.mxu2  ;;  %v2023_v12 = vpop.f32.mrf.mxu1 }
 0x4d1   : > { %v2111_v6 = vadd.f32 %v2110_v4, %v2022_v8  ;;  %v2024_v60 = vadd.f32 %v2023_v12, %v1934_v28 }
 0x4d3   : > { %v2200_v48 = vadd.f32 %v2199_v31, %v2111_v6 }
 0x4d5   : > { %2324 = vst [vmem:[%s3027_s17 + $0x398] sm:$0xff] %v2200_v48 }
 0x4d7   : > { %v2201_v7 = vpop.f32.mrf.mxu3  ;;  %v1937_v49 = vpop.f32.mrf.mxu0 }
 0x4d8   : > { %v2112_v10 = vpop.f32.mrf.mxu2  ;;  %v2026_v50 = vpop.f32.mrf.mxu1 }
 0x4d9   : > { %v2113_v44 = vadd.f32 %v2112_v10, %v2024_v60  ;;  %v2027_v45 = vadd.f32 %v2026_v50, %v1937_v49 }
 0x4db   : > { %v2202_v37 = vadd.f32 %v2201_v7, %v2113_v44 }
 0x4dd   : > { %2328 = vst [vmem:[%s3027_s17 + $0x3b8] sm:$0xff] %v2202_v37 }
 0x4df   : > { %v2204_v47 = vpop.f32.mrf.mxu3  ;;  %v1939_v13 = vpop.f32.mrf.mxu0 }
 0x4e0   : > { %v2115_v17 = vpop.f32.mrf.mxu2  ;;  %v2028_v14 = vpop.f32.mrf.mxu1 }
 0x4e1   : > { %v2116_v46 = vadd.f32 %v2115_v17, %v2027_v45  ;;  %v2029_v15 = vadd.f32 %v2028_v14, %v1939_v13 }
 0x4e3   : > { %v2205_v51 = vadd.f32 %v2204_v47, %v2116_v46 }
 0x4e5   : > { %2332 = vst [vmem:[%s3027_s17 + $0x3d8] sm:$0xff] %v2205_v51 }
 0x4e7   : > { %v2206_v39 = vpop.f32.mrf.mxu3 }
 0x4e8   : > { %v2117_v41 = vpop.f32.mrf.mxu2 }
 0x4e9   : > { %v2118_v9 = vadd.f32 %v2117_v41, %v2029_v15 }
 0x4eb   : > { %v2207_v52 = vadd.f32 %v2206_v39, %v2118_v9 }
 0x4ed   : > { %2336 = vst [vmem:[%s3027_s17 + $0x3f8] sm:$0xff] %v2207_v52 }
 0x4ee   : > { %2639 = shalt.err (!%p2636_p0)
}
 0x4ef   : > { %s2703_s30 = smov 512   ;;  %s2704_s5 = smov 32  }
 0x4f0   : > { %2481 = dma.vmem_to_hbm [thread:$0]  (%p2802_p5), %s2354_s6, 16384, %s2356_s15, %s2338_s12, %s2703_s30, %s2703_s30, %s2704_s5  }
 0x4f1 PF: > { %s2370_s7 = sand.u32 1, %s2678_s9   ;;  %p2492_p3 = pnand %p2456_p11, %p2769_p6 }
 0x4f2   : > { %s2371_s3 = scalar_lea.sflag [#allocation4], %s2370_s7 }
 0x4f3   : > { %p2493_p7 = pneg %p2492_p3 }
 0x4f5   : > { %2673 = dma.done.wait (%p2493_p7), %s2371_s3, 16384  }
 0x4f6   : > { %2675 = vsyncadd (%p2493_p7), %s2371_s3, 4294950912  ;;  %s19_s14 = sadd.s32 1, %s2698_s14   ;;  %s3649_s9 = smov %s2682_s10 }
 0x4f7   : > { %p16_p9 = scmp.ge.s32.totalorder %s19_s14, 4   ;;  %s3650_s10 = smov %s2686_s11 }
 0x4f8   : > { %s3651_s11 = smov %s2811_s8  ;;  %s3652_s12 = smov %s2694_s13 }
 0x4f9   : > { %s3653_s13 = smov %s3655_s29  ;;  %18 = sbr.rel (!%p16_p9) target bundleno = 7 (0x7), region = 78 }
 0x4fe   :  { %2377 = vsyncpa [#allocation3], 1 }
 0x4ff   :  { %2379 = vsyncpa [#allocation3 + $0x1], 1 }
 0x500   :  { %2380 = vsyncpa [#allocation6], 1 }
 0x501   :  { %2381 = vsyncpa [#allocation4], 1 }
 0x502   :  { %2383 = vsyncpa [#allocation4 + $0x1], 1 }

</bundles_post_ra>
